<compile_context>
chip_gen: v7x
topology: tpu7x:2x2x1
jax: 0.10.0
libtpu: 0.0.40
codegen_flags: <defaults>
</compile_context>

<pallas_src>
import random

import jax
import jax.numpy as jnp
from jax.experimental import pallas as pl
from jax.experimental.pallas import tpu as pltpu

# ----------------------------- model / padding config -----------------------------

SRC_VOCAB, TRG_VOCAB = 16, 12
EMB, ENC_HID, DEC_HID, ATTN = 16, 32, 32, 16
SRC_LEN, TRG_LEN, BATCH = 6, 5, 2

LANE, SUB = 128, 8
B_P = SUB          # batch padded to sublane multiple
E_P = LANE         # embedding dim padded
HE_P = LANE        # encoder hidden padded
HD_P = LANE        # decoder hidden padded
A_P = LANE         # attention dim padded
V_P = LANE         # vocab padded (lane-dense fc_out / logits)
TV_P = LANE        # decoder embedding rows padded (one-hot K dim)

F32 = jnp.float32
BF16 = jnp.bfloat16
VMEM = pl.BlockSpec(memory_space=pltpu.MemorySpace.VMEM)


def _mxu(a, w_bf16):
    """MXU matmul: activations cast to bf16, weights pre-stored bf16, f32 accumulation."""
    return jnp.dot(a.astype(BF16), w_bf16, preferred_element_type=F32)


# ----------------------------- encoder kernel (one call, unrolled over S) -----------------------------

def _encoder_kernel(emb_ref, wih_ref, whh_ref, bih_ref, bhh_ref, awe_ref,
                    enc_ref, encp_ref):
    wih, whh, awe = wih_ref[...], whh_ref[...], awe_ref[...]
    bih, bhh = bih_ref[...], bhh_ref[...]
    h = jnp.zeros((B_P, HE_P), F32)
    for t in range(SRC_LEN):                      # static unroll: x@W_ih of future steps overlaps gate math
        x = emb_ref[t]                            # [B_P, E_P]
        gi = _mxu(x, wih) + bih
        gh = _mxu(h, whh) + bhh
        r = jax.nn.sigmoid(gi[:, :HE_P] + gh[:, :HE_P])
        z = jax.nn.sigmoid(gi[:, HE_P:2 * HE_P] + gh[:, HE_P:2 * HE_P])
        n = jnp.tanh(gi[:, 2 * HE_P:] + r * gh[:, 2 * HE_P:])
        h = (1.0 - z) * n + z * h
        enc_ref[t] = h                            # [S, B_P, HE_P] layout consumed directly by decoder
        encp_ref[t] = _mxu(h, awe)                # hoisted attention keys h_t @ W_e


def encoder_forward(emb_seq, enc_p, align_w_e):
    return pl.pallas_call(
        _encoder_kernel,
        out_shape=(
            jax.ShapeDtypeStruct((SRC_LEN, B_P, HE_P), F32),
            jax.ShapeDtypeStruct((SRC_LEN, B_P, A_P), F32),
        ),
        in_specs=[VMEM] * 6,
        out_specs=(VMEM, VMEM),
    )(emb_seq, enc_p["w_ih"], enc_p["w_hh"], enc_p["b_ih"], enc_p["b_hh"], align_w_e)


# ----------------------------- fused decode-loop kernel (one call, grid over T-1) -----------------------------

def _decoder_kernel(tf_ref,                       # scalar prefetch: [T-1] int32 teacher-forcing flags (SMEM)
                    trg_ref, enc_ref, encp_ref, emb_tbl_ref,
                    awh_ref, ab_ref, av_ref,
                    wih_ref, whh_ref, bih_ref, bhh_ref,
                    fcw_ref, fcb_ref,
                    out_ref, hid_scr, tok_scr):
    t = pl.program_id(0)

    @pl.when(t == 0)
    def _():
        # TODO(synk): reference decoder receives hidden=None on step 1; zero-init assumed here.
        hid_scr[...] = jnp.zeros_like(hid_scr)
        tok_scr[...] = trg_ref[0]                 # input token for step 1 is trg[0]

    @pl.when(t != 0)
    def _():
        tf = tf_ref[t - 1]                        # teacher-forcing decision drawn at previous step
        tok_scr[...] = jnp.where(tf != 0, trg_ref[0], tok_scr[...])

    tok = tok_scr[...]                            # [B_P, 1] int32
    hid = hid_scr[...]                            # [B_P, HD_P]

    # --- embedding gather: one-hot @ resident bf16 table ---
    col = jax.lax.broadcasted_iota(jnp.int32, (B_P, TV_P), 1)
    one_hot = jnp.where(col == tok, 1.0, 0.0).astype(BF16)
    emb = jnp.dot(one_hot, emb_tbl_ref[...], preferred_element_type=F32)   # [B_P, E_P]

    # --- Bahdanau alignment in [S, B, *] layout; softmax over the leading S axis ---
    hid_proj = _mxu(hid, awh_ref[...]) + ab_ref[...]                        # [B_P, A_P]
    energy = jnp.tanh(encp_ref[...] + hid_proj[None, :, :])                 # [S, B_P, A_P]
    scores = jnp.sum(energy * av_ref[...][None, :, :], axis=-1, keepdims=True)  # [S, B_P, 1]
    m = jnp.max(scores, axis=0, keepdims=True)
    e = jnp.exp(scores - m)
    attn = e / jnp.sum(e, axis=0, keepdims=True)                            # exact normalization
    # context: VPU broadcast-multiply + leading-axis reduce (no tiny MXU batched matmul)
    ctx = jnp.sum(attn * enc_ref[...], axis=0)                              # [B_P, HE_P]

    # --- GRU cell on cat([emb, ctx]): single fused-K (256-wide) matmul ---
    gi = _mxu(jnp.concatenate([emb, ctx], axis=-1), wih_ref[...]) + bih_ref[...]
    gh = _mxu(hid, whh_ref[...]) + bhh_ref[...]
    H = HD_P
    r = jax.nn.sigmoid(gi[:, :H] + gh[:, :H])
    z = jax.nn.sigmoid(gi[:, H:2 * H] + gh[:, H:2 * H])
    n = jnp.tanh(gi[:, 2 * H:] + r * gh[:, 2 * H:])
    h_new = (1.0 - z) * n + z * hid
    hid_scr[...] = h_new

    # --- fc_out on cat([emb, ctx, h_new]): single fused-K (384-wide) matmul ---
    # TODO(synk): for a real vocab, tile the N (vocab) axis with a "parallel" grid axis
    # (blocks multiple of 256, sized for v7x's 64 MiB VMEM) instead of whole-weight VMEM.
    logits = _mxu(jnp.concatenate([emb, ctx, h_new], axis=-1), fcw_ref[...]) + fcb_ref[...]
    out_ref[0] = logits                                                     # [B_P, V_P]

    # --- argmax over the real vocab lanes -> candidate input token for the next step ---
    vcol = jax.lax.broadcasted_iota(jnp.int32, (B_P, V_P), 1)
    valid = vcol < TRG_VOCAB
    masked = jnp.where(valid, logits, -1e30)
    lmax = jnp.max(masked, axis=-1, keepdims=True)
    is_max = jnp.logical_and(masked == lmax, valid)
    top1 = jnp.min(jnp.where(is_max, vcol.astype(F32), float(V_P)),
                   axis=-1, keepdims=True).astype(jnp.int32)                # first max (torch argmax)
    tok_scr[...] = top1


def decoder_forward(tf_mask, trg_steps, enc_sbh, encp_sba, dp):
    T1 = TRG_LEN - 1
    c2 = lambda t, tf: (0, 0)
    c3 = lambda t, tf: (0, 0, 0)
    grid_spec = pltpu.PrefetchScalarGridSpec(
        num_scalar_prefetch=1,
        grid=(T1,),
        in_specs=[
            pl.BlockSpec((1, B_P, 1), lambda t, tf: (t, 0, 0)),      # trg token for this step
            pl.BlockSpec((SRC_LEN, B_P, HE_P), c3),                  # encoder outputs (resident)
            pl.BlockSpec((SRC_LEN, B_P, A_P), c3),                   # hoisted attention keys (resident)
            pl.BlockSpec((TV_P, E_P), c2),                           # decoder embedding table (resident)
            pl.BlockSpec((HD_P, A_P), c2),                           # align_w_h
            pl.BlockSpec((1, A_P), c2),                              # align_b
            pl.BlockSpec((1, A_P), c2),                              # align_v
            pl.BlockSpec((E_P + HE_P, 3 * HD_P), c2),                # w_ih  (K-fused [emb|ctx])
            pl.BlockSpec((HD_P, 3 * HD_P), c2),                      # w_hh
            pl.BlockSpec((1, 3 * HD_P), c2),                         # b_ih
            pl.BlockSpec((1, 3 * HD_P), c2),                         # b_hh
            pl.BlockSpec((E_P + HE_P + HD_P, V_P), c2),              # fc_w (K-fused [emb|ctx|h])
            pl.BlockSpec((1, V_P), c2),                              # fc_b
        ],
        out_specs=pl.BlockSpec((1, B_P, V_P), lambda t, tf: (t, 0, 0)),
        scratch_shapes=[
            pltpu.VMEM((B_P, HD_P), F32),                            # hidden state (carried)
            pltpu.VMEM((B_P, 1), jnp.int32),                         # current/top1 token (carried)
        ],
    )
    return pl.pallas_call(
        _decoder_kernel,
        out_shape=jax.ShapeDtypeStruct((T1, B_P, V_P), F32),
        grid_spec=grid_spec,
        compiler_params=pltpu.CompilerParams(dimension_semantics=("arbitrary",)),
    )(tf_mask, trg_steps, enc_sbh, encp_sba, dp["embedding"],
      dp["align_w_h"], dp["align_b"], dp["align_v"],
      dp["w_ih"], dp["w_hh"], dp["b_ih"], dp["b_hh"],
      dp["fc_w"], dp["fc_b"])


# ----------------------------- full forward (jit: 2 pallas_calls + glue) -----------------------------

@jax.jit
def attention_forward(enc_p, dec_p, src_p, trg_p, tf_mask):
    emb_seq = jnp.take(enc_p["embedding"], src_p, axis=0)             # [S, B_P, E_P]
    enc_sbh, encp_sba = encoder_forward(emb_seq, enc_p, dec_p["align_w_e"])
    trg_steps = trg_p[:TRG_LEN - 1][:, :, None]                       # [T-1, B_P, 1] int32
    logits_seq = decoder_forward(tf_mask, trg_steps, enc_sbh, encp_sba, dec_p)
    outputs = jnp.concatenate([jnp.zeros((1, B_P, V_P), F32), logits_seq], axis=0)
    return outputs[:, :BATCH, :TRG_VOCAB]                             # strip padding once


# ----------------------------- deterministic init -----------------------------

def _orthogonal(key, shape):
    rows, cols = shape
    flip = rows < cols
    a = jax.random.normal(key, (max(rows, cols), min(rows, cols)), F32)
    q, r = jnp.linalg.qr(a)
    q = q * jnp.sign(jnp.diagonal(r))
    if flip:
        q = q.T
    return q[:rows, :cols]


def build_params(key, src_vocab, trg_vocab, emb_dim, enc_hid, dec_hid, attn_dim):
    ks = list(jax.random.split(key, 16))

    def normal(k, shape, std):
        return std * jax.random.normal(k, shape, F32)

    enc = {
        "embedding": normal(ks[0], (src_vocab, emb_dim), 0.01),
        "w_ih": _orthogonal(ks[1], (3 * enc_hid, emb_dim)).T,        # 'rnn.weight' -> orthogonal
        "w_hh": _orthogonal(ks[2], (3 * enc_hid, enc_hid)).T,
        "b_ih": jnp.zeros((3 * enc_hid,), F32),
        "b_hh": jnp.zeros((3 * enc_hid,), F32),
    }

    align_w = normal(ks[3], (attn_dim, dec_hid + enc_hid), 0.001).T  # decoder.align.attn.weight
    dec = {
        "embedding": normal(ks[4], (trg_vocab, emb_dim), 0.01),
        "align_w_h": align_w[:dec_hid, :],                           # hidden part of cat([hidden, enc])
        "align_w_e": align_w[dec_hid:, :],                           # encoder-output part
        "align_b": jnp.zeros((attn_dim,), F32),                      # bias -> 0
        "align_v": jnp.zeros((attn_dim,), F32),                      # decoder.align.v.* -> 0 (per spec init)
        "w_ih": _orthogonal(ks[5], (3 * dec_hid, emb_dim + enc_hid)).T,
        "w_hh": _orthogonal(ks[6], (3 * dec_hid, dec_hid)).T,
        "b_ih": jnp.zeros((3 * dec_hid,), F32),
        "b_hh": jnp.zeros((3 * dec_hid,), F32),
        "fc_w": normal(ks[7], (trg_vocab, emb_dim + enc_hid + dec_hid), 0.01).T,
        "fc_b": jnp.zeros((trg_vocab,), F32),
    }
    return enc, dec


# ----------------------------- padding / gate packing (weights -> bf16) -----------------------------

def _pad2(x, shape):
    return jnp.pad(x, [(0, s - d) for d, s in zip(x.shape, shape)])


def _pack_gates(w, h, h_p):
    """[In, 3h] -> [In, 3*h_p]; each gate (r,z,n) occupies its own h_p-wide block."""
    blocks = [jnp.pad(w[:, g * h:(g + 1) * h], [(0, 0), (0, h_p - h)]) for g in range(3)]
    return jnp.concatenate(blocks, axis=1)


def _pack_gate_bias(b, h, h_p):
    blocks = [jnp.pad(b[g * h:(g + 1) * h], (0, h_p - h)) for g in range(3)]
    return jnp.concatenate(blocks).reshape(1, -1)


def pad_encoder_params(p):
    return {
        "embedding": _pad2(p["embedding"], (SRC_VOCAB, E_P)),        # f32, gathered host-side
        "w_ih": _pad2(_pack_gates(p["w_ih"], ENC_HID, HE_P), (E_P, 3 * HE_P)).astype(BF16),
        "w_hh": _pad2(_pack_gates(p["w_hh"], ENC_HID, HE_P), (HE_P, 3 * HE_P)).astype(BF16),
        "b_ih": _pack_gate_bias(p["b_ih"], ENC_HID, HE_P),
        "b_hh": _pack_gate_bias(p["b_hh"], ENC_HID, HE_P),
    }


def pad_decoder_params(p):
    w_ih = p["w_ih"]          # [EMB+ENC_HID, 3*DEC_HID], rows ordered [emb | ctx]
    fc_w = p["fc_w"]          # [EMB+ENC_HID+DEC_HID, V], rows ordered [emb | ctx | hidden]
    w_ih_cat = jnp.concatenate([
        _pad2(_pack_gates(w_ih[:EMB], DEC_HID, HD_P), (E_P, 3 * HD_P)),
        _pad2(_pack_gates(w_ih[EMB:], DEC_HID, HD_P), (HE_P, 3 * HD_P)),
    ], axis=0)                                                        # [E_P+HE_P, 3*HD_P]
    fc_w_cat = jnp.concatenate([
        _pad2(fc_w[:EMB], (E_P, V_P)),
        _pad2(fc_w[EMB:EMB + ENC_HID], (HE_P, V_P)),
        _pad2(fc_w[EMB + ENC_HID:], (HD_P, V_P)),
    ], axis=0)                                                        # [E_P+HE_P+HD_P, V_P]
    return {
        "embedding": _pad2(p["embedding"], (TV_P, E_P)).astype(BF16),
        "align_w_h": _pad2(p["align_w_h"], (HD_P, A_P)).astype(BF16),
        "align_w_e": _pad2(p["align_w_e"], (HE_P, A_P)).astype(BF16),
        "align_b": _pad2(p["align_b"].reshape(1, -1), (1, A_P)),
        "align_v": _pad2(p["align_v"].reshape(1, -1), (1, A_P)),
        "w_ih": w_ih_cat.astype(BF16),
        "w_hh": _pad2(_pack_gates(p["w_hh"], DEC_HID, HD_P), (HD_P, 3 * HD_P)).astype(BF16),
        "b_ih": _pack_gate_bias(p["b_ih"], DEC_HID, HD_P),
        "b_hh": _pack_gate_bias(p["b_hh"], DEC_HID, HD_P),
        "fc_w": fc_w_cat.astype(BF16),
        "fc_b": _pad2(p["fc_b"].reshape(1, -1), (1, V_P)),
    }


# ----------------------------- main -----------------------------

if __name__ == "__main__":
    random.seed(0)  # deterministic teacher-forcing decisions, same draw order as the torch loop

    key = jax.random.PRNGKey(0)
    kp, ksrc, ktrg = jax.random.split(key, 3)
    enc_raw, dec_raw = build_params(kp, SRC_VOCAB, TRG_VOCAB, EMB, ENC_HID, DEC_HID, ATTN)
    enc_p = pad_encoder_params(enc_raw)
    dec_p = pad_decoder_params(dec_raw)

    src = jax.random.randint(ksrc, (SRC_LEN, BATCH), 0, SRC_VOCAB, dtype=jnp.int32)
    trg = jax.random.randint(ktrg, (TRG_LEN, BATCH), 0, TRG_VOCAB, dtype=jnp.int32)

    # Pad the batch axis (padded rows are row-independent and sliced away at the end).
    src_p = jnp.pad(src, ((0, 0), (0, B_P - BATCH)))
    trg_p = jnp.pad(trg, ((0, 0), (0, B_P - BATCH)))

    # One random.random() per decode step t=1..T-1, exactly like the PyTorch loop.
    tf_mask = jnp.array([1 if random.random() < 0.5 else 0 for _ in range(1, TRG_LEN)],
                        dtype=jnp.int32)

    outputs = attention_forward(enc_p, dec_p, src_p, trg_p, tf_mask)
    outputs = jax.block_until_ready(outputs)
    assert outputs.shape == (TRG_LEN, BATCH, TRG_VOCAB)
    assert bool(jnp.all(jnp.isfinite(outputs)))
    print("KERNEL_OK")
</pallas_src>

<mosaic_0001>
module attributes {stable_mosaic.version = 11 : i64} {
  func.func @_encoder_kernel(%arg0: memref<6x8x128xf32, #tpu.memory_space<vmem>>, %arg1: memref<128x384xbf16, #tpu.memory_space<vmem>>, %arg2: memref<128x384xbf16, #tpu.memory_space<vmem>>, %arg3: memref<1x384xf32, #tpu.memory_space<vmem>>, %arg4: memref<1x384xf32, #tpu.memory_space<vmem>>, %arg5: memref<128x128xbf16, #tpu.memory_space<vmem>>, %arg6: memref<6x8x128xf32, #tpu.memory_space<vmem>>, %arg7: memref<6x8x128xf32, #tpu.memory_space<vmem>>) attributes {dimension_semantics = [], scalar_prefetch = 0 : i64, scratch_operands = 0 : i64, tpu.core_type = #tpu.core_type<tc>} {
    %c0 = arith.constant 0 : index
    %c0_0 = arith.constant 0 : index
    %0 = vector.load %arg1[%c0, %c0_0] : memref<128x384xbf16, #tpu.memory_space<vmem>>, vector<128x384xbf16>
    %c0_1 = arith.constant 0 : index
    %c0_2 = arith.constant 0 : index
    %1 = vector.load %arg2[%c0_1, %c0_2] : memref<128x384xbf16, #tpu.memory_space<vmem>>, vector<128x384xbf16>
    %c0_3 = arith.constant 0 : index
    %c0_4 = arith.constant 0 : index
    %2 = vector.load %arg5[%c0_3, %c0_4] : memref<128x128xbf16, #tpu.memory_space<vmem>>, vector<128x128xbf16>
    %c0_5 = arith.constant 0 : index
    %c0_6 = arith.constant 0 : index
    %3 = vector.load %arg3[%c0_5, %c0_6] : memref<1x384xf32, #tpu.memory_space<vmem>>, vector<1x384xf32>
    %c0_7 = arith.constant 0 : index
    %c0_8 = arith.constant 0 : index
    %4 = vector.load %arg4[%c0_7, %c0_8] : memref<1x384xf32, #tpu.memory_space<vmem>>, vector<1x384xf32>
    %cst = arith.constant 0.000000e+00 : f32
    %5 = vector.broadcast %cst : f32 to vector<8x128xf32>
    %c0_9 = arith.constant 0 : index
    %c0_10 = arith.constant 0 : index
    %c0_11 = arith.constant 0 : index
    %6 = vector.load %arg0[%c0_9, %c0_10, %c0_11] : memref<6x8x128xf32, #tpu.memory_space<vmem>>, vector<1x8x128xf32>
    %7 = vector.shape_cast %6 : vector<1x8x128xf32> to vector<8x128xf32>
    %8 = arith.truncf %7 : vector<8x128xf32> to vector<8x128xbf16>
    %cst_12 = arith.constant dense<0.000000e+00> : vector<8x384xf32>
    %9 = tpu.matmul %8, %0, %cst_12 {dimension_numbers = #tpu.dot_dimension_numbers<[1], [0], [0], [1], [0, 0, 1, 1], [], []>} : vector<8x128xbf16>, vector<128x384xbf16>, vector<8x384xf32> -> vector<8x384xf32>
    %10 = vector.broadcast %3 : vector<1x384xf32> to vector<8x384xf32>
    %11 = arith.addf %9, %10 : vector<8x384xf32>
    %12 = arith.truncf %5 : vector<8x128xf32> to vector<8x128xbf16>
    %cst_13 = arith.constant dense<0.000000e+00> : vector<8x384xf32>
    %13 = tpu.matmul %12, %1, %cst_13 {dimension_numbers = #tpu.dot_dimension_numbers<[1], [0], [0], [1], [0, 0, 1, 1], [], []>} : vector<8x128xbf16>, vector<128x384xbf16>, vector<8x384xf32> -> vector<8x384xf32>
    %14 = vector.broadcast %4 : vector<1x384xf32> to vector<8x384xf32>
    %15 = arith.addf %13, %14 : vector<8x384xf32>
    %16 = vector.extract_strided_slice %11 {offsets = [0, 0], sizes = [8, 128], strides = [1, 1]} : vector<8x384xf32> to vector<8x128xf32>
    %17 = vector.extract_strided_slice %15 {offsets = [0, 0], sizes = [8, 128], strides = [1, 1]} : vector<8x384xf32> to vector<8x128xf32>
    %18 = arith.addf %16, %17 : vector<8x128xf32>
    %19 = arith.negf %18 : vector<8x128xf32>
    %20 = math.exp %19 : vector<8x128xf32>
    %cst_14 = arith.constant 1.000000e+00 : f32
    %21 = vector.broadcast %cst_14 : f32 to vector<8x128xf32>
    %22 = arith.addf %21, %20 : vector<8x128xf32>
    %23 = arith.divf %21, %22 : vector<8x128xf32>
    %24 = vector.extract_strided_slice %11 {offsets = [0, 128], sizes = [8, 128], strides = [1, 1]} : vector<8x384xf32> to vector<8x128xf32>
    %25 = vector.extract_strided_slice %15 {offsets = [0, 128], sizes = [8, 128], strides = [1, 1]} : vector<8x384xf32> to vector<8x128xf32>
    %26 = arith.addf %24, %25 : vector<8x128xf32>
    %27 = arith.negf %26 : vector<8x128xf32>
    %28 = math.exp %27 : vector<8x128xf32>
    %cst_15 = arith.constant 1.000000e+00 : f32
    %29 = vector.broadcast %cst_15 : f32 to vector<8x128xf32>
    %30 = arith.addf %29, %28 : vector<8x128xf32>
    %31 = arith.divf %29, %30 : vector<8x128xf32>
    %32 = vector.extract_strided_slice %11 {offsets = [0, 256], sizes = [8, 128], strides = [1, 1]} : vector<8x384xf32> to vector<8x128xf32>
    %33 = vector.extract_strided_slice %15 {offsets = [0, 256], sizes = [8, 128], strides = [1, 1]} : vector<8x384xf32> to vector<8x128xf32>
    %34 = arith.mulf %23, %33 : vector<8x128xf32>
    %35 = arith.addf %32, %34 : vector<8x128xf32>
    %36 = math.tanh %35 : vector<8x128xf32>
    %cst_16 = arith.constant 1.000000e+00 : f32
    %37 = vector.broadcast %cst_16 : f32 to vector<8x128xf32>
    %38 = arith.subf %37, %31 : vector<8x128xf32>
    %39 = arith.mulf %38, %36 : vector<8x128xf32>
    %40 = arith.mulf %31, %5 : vector<8x128xf32>
    %41 = arith.addf %39, %40 : vector<8x128xf32>
    %c0_17 = arith.constant 0 : index
    %c0_18 = arith.constant 0 : index
    %c0_19 = arith.constant 0 : index
    %42 = vector.load %arg6[%c0_17, %c0_18, %c0_19] : memref<6x8x128xf32, #tpu.memory_space<vmem>>, vector<1x8x128xf32>
    %43 = vector.shape_cast %42 : vector<1x8x128xf32> to vector<8x128xf32>
    %44 = vector.shape_cast %41 : vector<8x128xf32> to vector<1x8x128xf32>
    tpu.vector_store %arg6[%c0_17, %c0_18, %c0_19], %44 {strides = array<i32>} : memref<6x8x128xf32, #tpu.memory_space<vmem>>, vector<1x8x128xf32>,
    %45 = arith.truncf %41 : vector<8x128xf32> to vector<8x128xbf16>
    %cst_20 = arith.constant dense<0.000000e+00> : vector<8x128xf32>
    %46 = tpu.matmul %45, %2, %cst_20 {dimension_numbers = #tpu.dot_dimension_numbers<[1], [0], [0], [1], [0, 0, 1, 1], [], []>} : vector<8x128xbf16>, vector<128x128xbf16>, vector<8x128xf32> -> vector<8x128xf32>
    %c0_21 = arith.constant 0 : index
    %c0_22 = arith.constant 0 : index
    %c0_23 = arith.constant 0 : index
    %47 = vector.load %arg7[%c0_21, %c0_22, %c0_23] : memref<6x8x128xf32, #tpu.memory_space<vmem>>, vector<1x8x128xf32>
    %48 = vector.shape_cast %47 : vector<1x8x128xf32> to vector<8x128xf32>
    %49 = vector.shape_cast %46 : vector<8x128xf32> to vector<1x8x128xf32>
    tpu.vector_store %arg7[%c0_21, %c0_22, %c0_23], %49 {strides = array<i32>} : memref<6x8x128xf32, #tpu.memory_space<vmem>>, vector<1x8x128xf32>,
    %c1 = arith.constant 1 : index
    %c0_24 = arith.constant 0 : index
    %c0_25 = arith.constant 0 : index
    %50 = vector.load %arg0[%c1, %c0_24, %c0_25] : memref<6x8x128xf32, #tpu.memory_space<vmem>>, vector<1x8x128xf32>
    %51 = vector.shape_cast %50 : vector<1x8x128xf32> to vector<8x128xf32>
    %52 = arith.truncf %51 : vector<8x128xf32> to vector<8x128xbf16>
    %cst_26 = arith.constant dense<0.000000e+00> : vector<8x384xf32>
    %53 = tpu.matmul %52, %0, %cst_26 {dimension_numbers = #tpu.dot_dimension_numbers<[1], [0], [0], [1], [0, 0, 1, 1], [], []>} : vector<8x128xbf16>, vector<128x384xbf16>, vector<8x384xf32> -> vector<8x384xf32>
    %54 = vector.broadcast %3 : vector<1x384xf32> to vector<8x384xf32>
    %55 = arith.addf %53, %54 : vector<8x384xf32>
    %56 = arith.truncf %41 : vector<8x128xf32> to vector<8x128xbf16>
    %cst_27 = arith.constant dense<0.000000e+00> : vector<8x384xf32>
    %57 = tpu.matmul %56, %1, %cst_27 {dimension_numbers = #tpu.dot_dimension_numbers<[1], [0], [0], [1], [0, 0, 1, 1], [], []>} : vector<8x128xbf16>, vector<128x384xbf16>, vector<8x384xf32> -> vector<8x384xf32>
    %58 = vector.broadcast %4 : vector<1x384xf32> to vector<8x384xf32>
    %59 = arith.addf %57, %58 : vector<8x384xf32>
    %60 = vector.extract_strided_slice %55 {offsets = [0, 0], sizes = [8, 128], strides = [1, 1]} : vector<8x384xf32> to vector<8x128xf32>
    %61 = vector.extract_strided_slice %59 {offsets = [0, 0], sizes = [8, 128], strides = [1, 1]} : vector<8x384xf32> to vector<8x128xf32>
    %62 = arith.addf %60, %61 : vector<8x128xf32>
    %63 = arith.negf %62 : vector<8x128xf32>
    %64 = math.exp %63 : vector<8x128xf32>
    %cst_28 = arith.constant 1.000000e+00 : f32
    %65 = vector.broadcast %cst_28 : f32 to vector<8x128xf32>
    %66 = arith.addf %65, %64 : vector<8x128xf32>
    %67 = arith.divf %65, %66 : vector<8x128xf32>
    %68 = vector.extract_strided_slice %55 {offsets = [0, 128], sizes = [8, 128], strides = [1, 1]} : vector<8x384xf32> to vector<8x128xf32>
    %69 = vector.extract_strided_slice %59 {offsets = [0, 128], sizes = [8, 128], strides = [1, 1]} : vector<8x384xf32> to vector<8x128xf32>
    %70 = arith.addf %68, %69 : vector<8x128xf32>
    %71 = arith.negf %70 : vector<8x128xf32>
    %72 = math.exp %71 : vector<8x128xf32>
    %cst_29 = arith.constant 1.000000e+00 : f32
    %73 = vector.broadcast %cst_29 : f32 to vector<8x128xf32>
    %74 = arith.addf %73, %72 : vector<8x128xf32>
    %75 = arith.divf %73, %74 : vector<8x128xf32>
    %76 = vector.extract_strided_slice %55 {offsets = [0, 256], sizes = [8, 128], strides = [1, 1]} : vector<8x384xf32> to vector<8x128xf32>
    %77 = vector.extract_strided_slice %59 {offsets = [0, 256], sizes = [8, 128], strides = [1, 1]} : vector<8x384xf32> to vector<8x128xf32>
    %78 = arith.mulf %67, %77 : vector<8x128xf32>
    %79 = arith.addf %76, %78 : vector<8x128xf32>
    %80 = math.tanh %79 : vector<8x128xf32>
    %cst_30 = arith.constant 1.000000e+00 : f32
    %81 = vector.broadcast %cst_30 : f32 to vector<8x128xf32>
    %82 = arith.subf %81, %75 : vector<8x128xf32>
    %83 = arith.mulf %82, %80 : vector<8x128xf32>
    %84 = arith.mulf %75, %41 : vector<8x128xf32>
    %85 = arith.addf %83, %84 : vector<8x128xf32>
    %c1_31 = arith.constant 1 : index
    %c0_32 = arith.constant 0 : index
    %c0_33 = arith.constant 0 : index
    %86 = vector.load %arg6[%c1_31, %c0_32, %c0_33] : memref<6x8x128xf32, #tpu.memory_space<vmem>>, vector<1x8x128xf32>
    %87 = vector.shape_cast %86 : vector<1x8x128xf32> to vector<8x128xf32>
    %88 = vector.shape_cast %85 : vector<8x128xf32> to vector<1x8x128xf32>
    tpu.vector_store %arg6[%c1_31, %c0_32, %c0_33], %88 {strides = array<i32>} : memref<6x8x128xf32, #tpu.memory_space<vmem>>, vector<1x8x128xf32>,
    %89 = arith.truncf %85 : vector<8x128xf32> to vector<8x128xbf16>
    %cst_34 = arith.constant dense<0.000000e+00> : vector<8x128xf32>
    %90 = tpu.matmul %89, %2, %cst_34 {dimension_numbers = #tpu.dot_dimension_numbers<[1], [0], [0], [1], [0, 0, 1, 1], [], []>} : vector<8x128xbf16>, vector<128x128xbf16>, vector<8x128xf32> -> vector<8x128xf32>
    %c1_35 = arith.constant 1 : index
    %c0_36 = arith.constant 0 : index
    %c0_37 = arith.constant 0 : index
    %91 = vector.load %arg7[%c1_35, %c0_36, %c0_37] : memref<6x8x128xf32, #tpu.memory_space<vmem>>, vector<1x8x128xf32>
    %92 = vector.shape_cast %91 : vector<1x8x128xf32> to vector<8x128xf32>
    %93 = vector.shape_cast %90 : vector<8x128xf32> to vector<1x8x128xf32>
    tpu.vector_store %arg7[%c1_35, %c0_36, %c0_37], %93 {strides = array<i32>} : memref<6x8x128xf32, #tpu.memory_space<vmem>>, vector<1x8x128xf32>,
    %c2 = arith.constant 2 : index
    %c0_38 = arith.constant 0 : index
    %c0_39 = arith.constant 0 : index
    %94 = vector.load %arg0[%c2, %c0_38, %c0_39] : memref<6x8x128xf32, #tpu.memory_space<vmem>>, vector<1x8x128xf32>
    %95 = vector.shape_cast %94 : vector<1x8x128xf32> to vector<8x128xf32>
    %96 = arith.truncf %95 : vector<8x128xf32> to vector<8x128xbf16>
    %cst_40 = arith.constant dense<0.000000e+00> : vector<8x384xf32>
    %97 = tpu.matmul %96, %0, %cst_40 {dimension_numbers = #tpu.dot_dimension_numbers<[1], [0], [0], [1], [0, 0, 1, 1], [], []>} : vector<8x128xbf16>, vector<128x384xbf16>, vector<8x384xf32> -> vector<8x384xf32>
    %98 = vector.broadcast %3 : vector<1x384xf32> to vector<8x384xf32>
    %99 = arith.addf %97, %98 : vector<8x384xf32>
    %100 = arith.truncf %85 : vector<8x128xf32> to vector<8x128xbf16>
    %cst_41 = arith.constant dense<0.000000e+00> : vector<8x384xf32>
    %101 = tpu.matmul %100, %1, %cst_41 {dimension_numbers = #tpu.dot_dimension_numbers<[1], [0], [0], [1], [0, 0, 1, 1], [], []>} : vector<8x128xbf16>, vector<128x384xbf16>, vector<8x384xf32> -> vector<8x384xf32>
    %102 = vector.broadcast %4 : vector<1x384xf32> to vector<8x384xf32>
    %103 = arith.addf %101, %102 : vector<8x384xf32>
    %104 = vector.extract_strided_slice %99 {offsets = [0, 0], sizes = [8, 128], strides = [1, 1]} : vector<8x384xf32> to vector<8x128xf32>
    %105 = vector.extract_strided_slice %103 {offsets = [0, 0], sizes = [8, 128], strides = [1, 1]} : vector<8x384xf32> to vector<8x128xf32>
    %106 = arith.addf %104, %105 : vector<8x128xf32>
    %107 = arith.negf %106 : vector<8x128xf32>
    %108 = math.exp %107 : vector<8x128xf32>
    %cst_42 = arith.constant 1.000000e+00 : f32
    %109 = vector.broadcast %cst_42 : f32 to vector<8x128xf32>
    %110 = arith.addf %109, %108 : vector<8x128xf32>
    %111 = arith.divf %109, %110 : vector<8x128xf32>
    %112 = vector.extract_strided_slice %99 {offsets = [0, 128], sizes = [8, 128], strides = [1, 1]} : vector<8x384xf32> to vector<8x128xf32>
    %113 = vector.extract_strided_slice %103 {offsets = [0, 128], sizes = [8, 128], strides = [1, 1]} : vector<8x384xf32> to vector<8x128xf32>
    %114 = arith.addf %112, %113 : vector<8x128xf32>
    %115 = arith.negf %114 : vector<8x128xf32>
    %116 = math.exp %115 : vector<8x128xf32>
    %cst_43 = arith.constant 1.000000e+00 : f32
    %117 = vector.broadcast %cst_43 : f32 to vector<8x128xf32>
    %118 = arith.addf %117, %116 : vector<8x128xf32>
    %119 = arith.divf %117, %118 : vector<8x128xf32>
    %120 = vector.extract_strided_slice %99 {offsets = [0, 256], sizes = [8, 128], strides = [1, 1]} : vector<8x384xf32> to vector<8x128xf32>
    %121 = vector.extract_strided_slice %103 {offsets = [0, 256], sizes = [8, 128], strides = [1, 1]} : vector<8x384xf32> to vector<8x128xf32>
    %122 = arith.mulf %111, %121 : vector<8x128xf32>
    %123 = arith.addf %120, %122 : vector<8x128xf32>
    %124 = math.tanh %123 : vector<8x128xf32>
    %cst_44 = arith.constant 1.000000e+00 : f32
    %125 = vector.broadcast %cst_44 : f32 to vector<8x128xf32>
    %126 = arith.subf %125, %119 : vector<8x128xf32>
    %127 = arith.mulf %126, %124 : vector<8x128xf32>
    %128 = arith.mulf %119, %85 : vector<8x128xf32>
    %129 = arith.addf %127, %128 : vector<8x128xf32>
    %c2_45 = arith.constant 2 : index
    %c0_46 = arith.constant 0 : index
    %c0_47 = arith.constant 0 : index
    %130 = vector.load %arg6[%c2_45, %c0_46, %c0_47] : memref<6x8x128xf32, #tpu.memory_space<vmem>>, vector<1x8x128xf32>
    %131 = vector.shape_cast %130 : vector<1x8x128xf32> to vector<8x128xf32>
    %132 = vector.shape_cast %129 : vector<8x128xf32> to vector<1x8x128xf32>
    tpu.vector_store %arg6[%c2_45, %c0_46, %c0_47], %132 {strides = array<i32>} : memref<6x8x128xf32, #tpu.memory_space<vmem>>, vector<1x8x128xf32>,
    %133 = arith.truncf %129 : vector<8x128xf32> to vector<8x128xbf16>
    %cst_48 = arith.constant dense<0.000000e+00> : vector<8x128xf32>
    %134 = tpu.matmul %133, %2, %cst_48 {dimension_numbers = #tpu.dot_dimension_numbers<[1], [0], [0], [1], [0, 0, 1, 1], [], []>} : vector<8x128xbf16>, vector<128x128xbf16>, vector<8x128xf32> -> vector<8x128xf32>
    %c2_49 = arith.constant 2 : index
    %c0_50 = arith.constant 0 : index
    %c0_51 = arith.constant 0 : index
    %135 = vector.load %arg7[%c2_49, %c0_50, %c0_51] : memref<6x8x128xf32, #tpu.memory_space<vmem>>, vector<1x8x128xf32>
    %136 = vector.shape_cast %135 : vector<1x8x128xf32> to vector<8x128xf32>
    %137 = vector.shape_cast %134 : vector<8x128xf32> to vector<1x8x128xf32>
    tpu.vector_store %arg7[%c2_49, %c0_50, %c0_51], %137 {strides = array<i32>} : memref<6x8x128xf32, #tpu.memory_space<vmem>>, vector<1x8x128xf32>,
    %c3 = arith.constant 3 : index
    %c0_52 = arith.constant 0 : index
    %c0_53 = arith.constant 0 : index
    %138 = vector.load %arg0[%c3, %c0_52, %c0_53] : memref<6x8x128xf32, #tpu.memory_space<vmem>>, vector<1x8x128xf32>
    %139 = vector.shape_cast %138 : vector<1x8x128xf32> to vector<8x128xf32>
    %140 = arith.truncf %139 : vector<8x128xf32> to vector<8x128xbf16>
    %cst_54 = arith.constant dense<0.000000e+00> : vector<8x384xf32>
    %141 = tpu.matmul %140, %0, %cst_54 {dimension_numbers = #tpu.dot_dimension_numbers<[1], [0], [0], [1], [0, 0, 1, 1], [], []>} : vector<8x128xbf16>, vector<128x384xbf16>, vector<8x384xf32> -> vector<8x384xf32>
    %142 = vector.broadcast %3 : vector<1x384xf32> to vector<8x384xf32>
    %143 = arith.addf %141, %142 : vector<8x384xf32>
    %144 = arith.truncf %129 : vector<8x128xf32> to vector<8x128xbf16>
    %cst_55 = arith.constant dense<0.000000e+00> : vector<8x384xf32>
    %145 = tpu.matmul %144, %1, %cst_55 {dimension_numbers = #tpu.dot_dimension_numbers<[1], [0], [0], [1], [0, 0, 1, 1], [], []>} : vector<8x128xbf16>, vector<128x384xbf16>, vector<8x384xf32> -> vector<8x384xf32>
    %146 = vector.broadcast %4 : vector<1x384xf32> to vector<8x384xf32>
    %147 = arith.addf %145, %146 : vector<8x384xf32>
    %148 = vector.extract_strided_slice %143 {offsets = [0, 0], sizes = [8, 128], strides = [1, 1]} : vector<8x384xf32> to vector<8x128xf32>
    %149 = vector.extract_strided_slice %147 {offsets = [0, 0], sizes = [8, 128], strides = [1, 1]} : vector<8x384xf32> to vector<8x128xf32>
    %150 = arith.addf %148, %149 : vector<8x128xf32>
    %151 = arith.negf %150 : vector<8x128xf32>
    %152 = math.exp %151 : vector<8x128xf32>
    %cst_56 = arith.constant 1.000000e+00 : f32
    %153 = vector.broadcast %cst_56 : f32 to vector<8x128xf32>
    %154 = arith.addf %153, %152 : vector<8x128xf32>
    %155 = arith.divf %153, %154 : vector<8x128xf32>
    %156 = vector.extract_strided_slice %143 {offsets = [0, 128], sizes = [8, 128], strides = [1, 1]} : vector<8x384xf32> to vector<8x128xf32>
    %157 = vector.extract_strided_slice %147 {offsets = [0, 128], sizes = [8, 128], strides = [1, 1]} : vector<8x384xf32> to vector<8x128xf32>
    %158 = arith.addf %156, %157 : vector<8x128xf32>
    %159 = arith.negf %158 : vector<8x128xf32>
    %160 = math.exp %159 : vector<8x128xf32>
    %cst_57 = arith.constant 1.000000e+00 : f32
    %161 = vector.broadcast %cst_57 : f32 to vector<8x128xf32>
    %162 = arith.addf %161, %160 : vector<8x128xf32>
    %163 = arith.divf %161, %162 : vector<8x128xf32>
    %164 = vector.extract_strided_slice %143 {offsets = [0, 256], sizes = [8, 128], strides = [1, 1]} : vector<8x384xf32> to vector<8x128xf32>
    %165 = vector.extract_strided_slice %147 {offsets = [0, 256], sizes = [8, 128], strides = [1, 1]} : vector<8x384xf32> to vector<8x128xf32>
    %166 = arith.mulf %155, %165 : vector<8x128xf32>
    %167 = arith.addf %164, %166 : vector<8x128xf32>
    %168 = math.tanh %167 : vector<8x128xf32>
    %cst_58 = arith.constant 1.000000e+00 : f32
    %169 = vector.broadcast %cst_58 : f32 to vector<8x128xf32>
    %170 = arith.subf %169, %163 : vector<8x128xf32>
    %171 = arith.mulf %170, %168 : vector<8x128xf32>
    %172 = arith.mulf %163, %129 : vector<8x128xf32>
    %173 = arith.addf %171, %172 : vector<8x128xf32>
    %c3_59 = arith.constant 3 : index
    %c0_60 = arith.constant 0 : index
    %c0_61 = arith.constant 0 : index
    %174 = vector.load %arg6[%c3_59, %c0_60, %c0_61] : memref<6x8x128xf32, #tpu.memory_space<vmem>>, vector<1x8x128xf32>
    %175 = vector.shape_cast %174 : vector<1x8x128xf32> to vector<8x128xf32>
    %176 = vector.shape_cast %173 : vector<8x128xf32> to vector<1x8x128xf32>
    tpu.vector_store %arg6[%c3_59, %c0_60, %c0_61], %176 {strides = array<i32>} : memref<6x8x128xf32, #tpu.memory_space<vmem>>, vector<1x8x128xf32>,
    %177 = arith.truncf %173 : vector<8x128xf32> to vector<8x128xbf16>
    %cst_62 = arith.constant dense<0.000000e+00> : vector<8x128xf32>
    %178 = tpu.matmul %177, %2, %cst_62 {dimension_numbers = #tpu.dot_dimension_numbers<[1], [0], [0], [1], [0, 0, 1, 1], [], []>} : vector<8x128xbf16>, vector<128x128xbf16>, vector<8x128xf32> -> vector<8x128xf32>
    %c3_63 = arith.constant 3 : index
    %c0_64 = arith.constant 0 : index
    %c0_65 = arith.constant 0 : index
    %179 = vector.load %arg7[%c3_63, %c0_64, %c0_65] : memref<6x8x128xf32, #tpu.memory_space<vmem>>, vector<1x8x128xf32>
    %180 = vector.shape_cast %179 : vector<1x8x128xf32> to vector<8x128xf32>
    %181 = vector.shape_cast %178 : vector<8x128xf32> to vector<1x8x128xf32>
    tpu.vector_store %arg7[%c3_63, %c0_64, %c0_65], %181 {strides = array<i32>} : memref<6x8x128xf32, #tpu.memory_space<vmem>>, vector<1x8x128xf32>,
    %c4 = arith.constant 4 : index
    %c0_66 = arith.constant 0 : index
    %c0_67 = arith.constant 0 : index
    %182 = vector.load %arg0[%c4, %c0_66, %c0_67] : memref<6x8x128xf32, #tpu.memory_space<vmem>>, vector<1x8x128xf32>
    %183 = vector.shape_cast %182 : vector<1x8x128xf32> to vector<8x128xf32>
    %184 = arith.truncf %183 : vector<8x128xf32> to vector<8x128xbf16>
    %cst_68 = arith.constant dense<0.000000e+00> : vector<8x384xf32>
    %185 = tpu.matmul %184, %0, %cst_68 {dimension_numbers = #tpu.dot_dimension_numbers<[1], [0], [0], [1], [0, 0, 1, 1], [], []>} : vector<8x128xbf16>, vector<128x384xbf16>, vector<8x384xf32> -> vector<8x384xf32>
    %186 = vector.broadcast %3 : vector<1x384xf32> to vector<8x384xf32>
    %187 = arith.addf %185, %186 : vector<8x384xf32>
    %188 = arith.truncf %173 : vector<8x128xf32> to vector<8x128xbf16>
    %cst_69 = arith.constant dense<0.000000e+00> : vector<8x384xf32>
    %189 = tpu.matmul %188, %1, %cst_69 {dimension_numbers = #tpu.dot_dimension_numbers<[1], [0], [0], [1], [0, 0, 1, 1], [], []>} : vector<8x128xbf16>, vector<128x384xbf16>, vector<8x384xf32> -> vector<8x384xf32>
    %190 = vector.broadcast %4 : vector<1x384xf32> to vector<8x384xf32>
    %191 = arith.addf %189, %190 : vector<8x384xf32>
    %192 = vector.extract_strided_slice %187 {offsets = [0, 0], sizes = [8, 128], strides = [1, 1]} : vector<8x384xf32> to vector<8x128xf32>
    %193 = vector.extract_strided_slice %191 {offsets = [0, 0], sizes = [8, 128], strides = [1, 1]} : vector<8x384xf32> to vector<8x128xf32>
    %194 = arith.addf %192, %193 : vector<8x128xf32>
    %195 = arith.negf %194 : vector<8x128xf32>
    %196 = math.exp %195 : vector<8x128xf32>
    %cst_70 = arith.constant 1.000000e+00 : f32
    %197 = vector.broadcast %cst_70 : f32 to vector<8x128xf32>
    %198 = arith.addf %197, %196 : vector<8x128xf32>
    %199 = arith.divf %197, %198 : vector<8x128xf32>
    %200 = vector.extract_strided_slice %187 {offsets = [0, 128], sizes = [8, 128], strides = [1, 1]} : vector<8x384xf32> to vector<8x128xf32>
    %201 = vector.extract_strided_slice %191 {offsets = [0, 128], sizes = [8, 128], strides = [1, 1]} : vector<8x384xf32> to vector<8x128xf32>
    %202 = arith.addf %200, %201 : vector<8x128xf32>
    %203 = arith.negf %202 : vector<8x128xf32>
    %204 = math.exp %203 : vector<8x128xf32>
    %cst_71 = arith.constant 1.000000e+00 : f32
    %205 = vector.broadcast %cst_71 : f32 to vector<8x128xf32>
    %206 = arith.addf %205, %204 : vector<8x128xf32>
    %207 = arith.divf %205, %206 : vector<8x128xf32>
    %208 = vector.extract_strided_slice %187 {offsets = [0, 256], sizes = [8, 128], strides = [1, 1]} : vector<8x384xf32> to vector<8x128xf32>
    %209 = vector.extract_strided_slice %191 {offsets = [0, 256], sizes = [8, 128], strides = [1, 1]} : vector<8x384xf32> to vector<8x128xf32>
    %210 = arith.mulf %199, %209 : vector<8x128xf32>
    %211 = arith.addf %208, %210 : vector<8x128xf32>
    %212 = math.tanh %211 : vector<8x128xf32>
    %cst_72 = arith.constant 1.000000e+00 : f32
    %213 = vector.broadcast %cst_72 : f32 to vector<8x128xf32>
    %214 = arith.subf %213, %207 : vector<8x128xf32>
    %215 = arith.mulf %214, %212 : vector<8x128xf32>
    %216 = arith.mulf %207, %173 : vector<8x128xf32>
    %217 = arith.addf %215, %216 : vector<8x128xf32>
    %c4_73 = arith.constant 4 : index
    %c0_74 = arith.constant 0 : index
    %c0_75 = arith.constant 0 : index
    %218 = vector.load %arg6[%c4_73, %c0_74, %c0_75] : memref<6x8x128xf32, #tpu.memory_space<vmem>>, vector<1x8x128xf32>
    %219 = vector.shape_cast %218 : vector<1x8x128xf32> to vector<8x128xf32>
    %220 = vector.shape_cast %217 : vector<8x128xf32> to vector<1x8x128xf32>
    tpu.vector_store %arg6[%c4_73, %c0_74, %c0_75], %220 {strides = array<i32>} : memref<6x8x128xf32, #tpu.memory_space<vmem>>, vector<1x8x128xf32>,
    %221 = arith.truncf %217 : vector<8x128xf32> to vector<8x128xbf16>
    %cst_76 = arith.constant dense<0.000000e+00> : vector<8x128xf32>
    %222 = tpu.matmul %221, %2, %cst_76 {dimension_numbers = #tpu.dot_dimension_numbers<[1], [0], [0], [1], [0, 0, 1, 1], [], []>} : vector<8x128xbf16>, vector<128x128xbf16>, vector<8x128xf32> -> vector<8x128xf32>
    %c4_77 = arith.constant 4 : index
    %c0_78 = arith.constant 0 : index
    %c0_79 = arith.constant 0 : index
    %223 = vector.load %arg7[%c4_77, %c0_78, %c0_79] : memref<6x8x128xf32, #tpu.memory_space<vmem>>, vector<1x8x128xf32>
    %224 = vector.shape_cast %223 : vector<1x8x128xf32> to vector<8x128xf32>
    %225 = vector.shape_cast %222 : vector<8x128xf32> to vector<1x8x128xf32>
    tpu.vector_store %arg7[%c4_77, %c0_78, %c0_79], %225 {strides = array<i32>} : memref<6x8x128xf32, #tpu.memory_space<vmem>>, vector<1x8x128xf32>,
    %c5 = arith.constant 5 : index
    %c0_80 = arith.constant 0 : index
    %c0_81 = arith.constant 0 : index
    %226 = vector.load %arg0[%c5, %c0_80, %c0_81] : memref<6x8x128xf32, #tpu.memory_space<vmem>>, vector<1x8x128xf32>
    %227 = vector.shape_cast %226 : vector<1x8x128xf32> to vector<8x128xf32>
    %228 = arith.truncf %227 : vector<8x128xf32> to vector<8x128xbf16>
    %cst_82 = arith.constant dense<0.000000e+00> : vector<8x384xf32>
    %229 = tpu.matmul %228, %0, %cst_82 {dimension_numbers = #tpu.dot_dimension_numbers<[1], [0], [0], [1], [0, 0, 1, 1], [], []>} : vector<8x128xbf16>, vector<128x384xbf16>, vector<8x384xf32> -> vector<8x384xf32>
    %230 = vector.broadcast %3 : vector<1x384xf32> to vector<8x384xf32>
    %231 = arith.addf %229, %230 : vector<8x384xf32>
    %232 = arith.truncf %217 : vector<8x128xf32> to vector<8x128xbf16>
    %cst_83 = arith.constant dense<0.000000e+00> : vector<8x384xf32>
    %233 = tpu.matmul %232, %1, %cst_83 {dimension_numbers = #tpu.dot_dimension_numbers<[1], [0], [0], [1], [0, 0, 1, 1], [], []>} : vector<8x128xbf16>, vector<128x384xbf16>, vector<8x384xf32> -> vector<8x384xf32>
    %234 = vector.broadcast %4 : vector<1x384xf32> to vector<8x384xf32>
    %235 = arith.addf %233, %234 : vector<8x384xf32>
    %236 = vector.extract_strided_slice %231 {offsets = [0, 0], sizes = [8, 128], strides = [1, 1]} : vector<8x384xf32> to vector<8x128xf32>
    %237 = vector.extract_strided_slice %235 {offsets = [0, 0], sizes = [8, 128], strides = [1, 1]} : vector<8x384xf32> to vector<8x128xf32>
    %238 = arith.addf %236, %237 : vector<8x128xf32>
    %239 = arith.negf %238 : vector<8x128xf32>
    %240 = math.exp %239 : vector<8x128xf32>
    %cst_84 = arith.constant 1.000000e+00 : f32
    %241 = vector.broadcast %cst_84 : f32 to vector<8x128xf32>
    %242 = arith.addf %241, %240 : vector<8x128xf32>
    %243 = arith.divf %241, %242 : vector<8x128xf32>
    %244 = vector.extract_strided_slice %231 {offsets = [0, 128], sizes = [8, 128], strides = [1, 1]} : vector<8x384xf32> to vector<8x128xf32>
    %245 = vector.extract_strided_slice %235 {offsets = [0, 128], sizes = [8, 128], strides = [1, 1]} : vector<8x384xf32> to vector<8x128xf32>
    %246 = arith.addf %244, %245 : vector<8x128xf32>
    %247 = arith.negf %246 : vector<8x128xf32>
    %248 = math.exp %247 : vector<8x128xf32>
    %cst_85 = arith.constant 1.000000e+00 : f32
    %249 = vector.broadcast %cst_85 : f32 to vector<8x128xf32>
    %250 = arith.addf %249, %248 : vector<8x128xf32>
    %251 = arith.divf %249, %250 : vector<8x128xf32>
    %252 = vector.extract_strided_slice %231 {offsets = [0, 256], sizes = [8, 128], strides = [1, 1]} : vector<8x384xf32> to vector<8x128xf32>
    %253 = vector.extract_strided_slice %235 {offsets = [0, 256], sizes = [8, 128], strides = [1, 1]} : vector<8x384xf32> to vector<8x128xf32>
    %254 = arith.mulf %243, %253 : vector<8x128xf32>
    %255 = arith.addf %252, %254 : vector<8x128xf32>
    %256 = math.tanh %255 : vector<8x128xf32>
    %cst_86 = arith.constant 1.000000e+00 : f32
    %257 = vector.broadcast %cst_86 : f32 to vector<8x128xf32>
    %258 = arith.subf %257, %251 : vector<8x128xf32>
    %259 = arith.mulf %258, %256 : vector<8x128xf32>
    %260 = arith.mulf %251, %217 : vector<8x128xf32>
    %261 = arith.addf %259, %260 : vector<8x128xf32>
    %c5_87 = arith.constant 5 : index
    %c0_88 = arith.constant 0 : index
    %c0_89 = arith.constant 0 : index
    %262 = vector.load %arg6[%c5_87, %c0_88, %c0_89] : memref<6x8x128xf32, #tpu.memory_space<vmem>>, vector<1x8x128xf32>
    %263 = vector.shape_cast %262 : vector<1x8x128xf32> to vector<8x128xf32>
    %264 = vector.shape_cast %261 : vector<8x128xf32> to vector<1x8x128xf32>
    tpu.vector_store %arg6[%c5_87, %c0_88, %c0_89], %264 {strides = array<i32>} : memref<6x8x128xf32, #tpu.memory_space<vmem>>, vector<1x8x128xf32>,
    %265 = arith.truncf %261 : vector<8x128xf32> to vector<8x128xbf16>
    %cst_90 = arith.constant dense<0.000000e+00> : vector<8x128xf32>
    %266 = tpu.matmul %265, %2, %cst_90 {dimension_numbers = #tpu.dot_dimension_numbers<[1], [0], [0], [1], [0, 0, 1, 1], [], []>} : vector<8x128xbf16>, vector<128x128xbf16>, vector<8x128xf32> -> vector<8x128xf32>
    %c5_91 = arith.constant 5 : index
    %c0_92 = arith.constant 0 : index
    %c0_93 = arith.constant 0 : index
    %267 = vector.load %arg7[%c5_91, %c0_92, %c0_93] : memref<6x8x128xf32, #tpu.memory_space<vmem>>, vector<1x8x128xf32>
    %268 = vector.shape_cast %267 : vector<1x8x128xf32> to vector<8x128xf32>
    %269 = vector.shape_cast %266 : vector<8x128xf32> to vector<1x8x128xf32>
    tpu.vector_store %arg7[%c5_91, %c0_92, %c0_93], %269 {strides = array<i32>} : memref<6x8x128xf32, #tpu.memory_space<vmem>>, vector<1x8x128xf32>,
    return
  }
}

module attributes {stable_mosaic.version = 11 : i64} {
  func.func @_decoder_kernel(%arg0: i32, %arg1: memref<4xi32, #tpu.memory_space<smem>>, %arg2: memref<1x8x1xi32, #tpu.memory_space<vmem>>, %arg3: memref<6x8x128xf32, #tpu.memory_space<vmem>>, %arg4: memref<6x8x128xf32, #tpu.memory_space<vmem>>, %arg5: memref<128x128xbf16, #tpu.memory_space<vmem>>, %arg6: memref<128x128xbf16, #tpu.memory_space<vmem>>, %arg7: memref<1x128xf32, #tpu.memory_space<vmem>>, %arg8: memref<1x128xf32, #tpu.memory_space<vmem>>, %arg9: memref<256x384xbf16, #tpu.memory_space<vmem>>, %arg10: memref<128x384xbf16, #tpu.memory_space<vmem>>, %arg11: memref<1x384xf32, #tpu.memory_space<vmem>>, %arg12: memref<1x384xf32, #tpu.memory_space<vmem>>, %arg13: memref<384x128xbf16, #tpu.memory_space<vmem>>, %arg14: memref<1x128xf32, #tpu.memory_space<vmem>>, %arg15: memref<1x8x128xf32, #tpu.memory_space<vmem>>, %arg16: memref<8x128xf32, #tpu.memory_space<vmem>>, %arg17: memref<8x1xi32, #tpu.memory_space<vmem>>) attributes {dimension_semantics = [#tpu.dimension_semantics<arbitrary>], iteration_bounds = array<i64: 4>, scalar_prefetch = 1 : i64, scratch_operands = 2 : i64, tpu.core_type = #tpu.core_type<tc>, window_params = [{transform_indices = @transform_0, window_bounds = array<i64: 1, 8, 1>}, {pipeline_mode = #tpu.pipeline_mode<synchronous>, transform_indices = @transform_1, window_bounds = array<i64: 6, 8, 128>}, {pipeline_mode = #tpu.pipeline_mode<synchronous>, transform_indices = @transform_2, window_bounds = array<i64: 6, 8, 128>}, {pipeline_mode = #tpu.pipeline_mode<synchronous>, transform_indices = @transform_3, window_bounds = array<i64: 128, 128>}, {pipeline_mode = #tpu.pipeline_mode<synchronous>, transform_indices = @transform_4, window_bounds = array<i64: 128, 128>}, {pipeline_mode = #tpu.pipeline_mode<synchronous>, transform_indices = @transform_5, window_bounds = array<i64: 1, 128>}, {pipeline_mode = #tpu.pipeline_mode<synchronous>, transform_indices = @transform_6, window_bounds = array<i64: 1, 128>}, {pipeline_mode = #tpu.pipeline_mode<synchronous>, transform_indices = @transform_7, window_bounds = array<i64: 256, 384>}, {pipeline_mode = #tpu.pipeline_mode<synchronous>, transform_indices = @transform_8, window_bounds = array<i64: 128, 384>}, {pipeline_mode = #tpu.pipeline_mode<synchronous>, transform_indices = @transform_9, window_bounds = array<i64: 1, 384>}, {pipeline_mode = #tpu.pipeline_mode<synchronous>, transform_indices = @transform_10, window_bounds = array<i64: 1, 384>}, {pipeline_mode = #tpu.pipeline_mode<synchronous>, transform_indices = @transform_11, window_bounds = array<i64: 384, 128>}, {pipeline_mode = #tpu.pipeline_mode<synchronous>, transform_indices = @transform_12, window_bounds = array<i64: 1, 128>}, {transform_indices = @transform_13, window_bounds = array<i64: 1, 8, 128>}]} {
    %c0_i32 = arith.constant 0 : i32
    %0 = arith.cmpi eq, %arg0, %c0_i32 : i32
    %1 = arith.extui %0 : i1 to i32
    %c0_i32_0 = arith.constant 0 : i32
    %2 = arith.cmpi ne, %1, %c0_i32_0 : i32
    scf.if %2 {
      %cst_56 = arith.constant 0.000000e+00 : f32
      %114 = vector.broadcast %cst_56 : f32 to vector<8x128xf32>
      %c0_57 = arith.constant 0 : index
      %c0_58 = arith.constant 0 : index
      %115 = vector.load %arg16[%c0_57, %c0_58] : memref<8x128xf32, #tpu.memory_space<vmem>>, vector<8x128xf32>
      tpu.vector_store %arg16[%c0_57, %c0_58], %114 {strides = array<i32>} : memref<8x128xf32, #tpu.memory_space<vmem>>, vector<8x128xf32>,
      %c0_59 = arith.constant 0 : index
      %c0_60 = arith.constant 0 : index
      %c0_61 = arith.constant 0 : index
      %116 = vector.load %arg2[%c0_59, %c0_60, %c0_61] : memref<1x8x1xi32, #tpu.memory_space<vmem>>, vector<1x8x1xi32>
      %117 = vector.shape_cast %116 : vector<1x8x1xi32> to vector<8x1xi32>
      %c0_62 = arith.constant 0 : index
      %c0_63 = arith.constant 0 : index
      %118 = vector.load %arg17[%c0_62, %c0_63] : memref<8x1xi32, #tpu.memory_space<vmem>>, vector<8x1xi32>
      tpu.vector_store %arg17[%c0_62, %c0_63], %117 {strides = array<i32>} : memref<8x1xi32, #tpu.memory_space<vmem>>, vector<8x1xi32>,
    } else {
    }
    %c0_i32_1 = arith.constant 0 : i32
    %3 = arith.cmpi ne, %arg0, %c0_i32_1 : i32
    %4 = arith.extui %3 : i1 to i32
    %c0_i32_2 = arith.constant 0 : i32
    %5 = arith.cmpi ne, %4, %c0_i32_2 : i32
    scf.if %5 {
      %c1_i32 = arith.constant 1 : i32
      %114 = arith.subi %arg0, %c1_i32 : i32
      %115 = arith.index_cast %114 : i32 to index
      %116 = memref.load %arg1[%115] : memref<4xi32, #tpu.memory_space<smem>>
      %c0_i32_56 = arith.constant 0 : i32
      %117 = arith.cmpi ne, %116, %c0_i32_56 : i32
      %c0_57 = arith.constant 0 : index
      %c0_58 = arith.constant 0 : index
      %c0_59 = arith.constant 0 : index
      %118 = vector.load %arg2[%c0_57, %c0_58, %c0_59] : memref<1x8x1xi32, #tpu.memory_space<vmem>>, vector<1x8x1xi32>
      %119 = vector.shape_cast %118 : vector<1x8x1xi32> to vector<8x1xi32>
      %c0_60 = arith.constant 0 : index
      %c0_61 = arith.constant 0 : index
      %120 = vector.load %arg17[%c0_60, %c0_61] : memref<8x1xi32, #tpu.memory_space<vmem>>, vector<8x1xi32>
      %121 = arith.select %117, %119, %120 : vector<8x1xi32>
      %c0_62 = arith.constant 0 : index
      %c0_63 = arith.constant 0 : index
      %122 = vector.load %arg17[%c0_62, %c0_63] : memref<8x1xi32, #tpu.memory_space<vmem>>, vector<8x1xi32>
      tpu.vector_store %arg17[%c0_62, %c0_63], %121 {strides = array<i32>} : memref<8x1xi32, #tpu.memory_space<vmem>>, vector<8x1xi32>,
    } else {
    }
    %c0 = arith.constant 0 : index
    %c0_3 = arith.constant 0 : index
    %6 = vector.load %arg17[%c0, %c0_3] : memref<8x1xi32, #tpu.memory_space<vmem>>, vector<8x1xi32>
    %c0_4 = arith.constant 0 : index
    %c0_5 = arith.constant 0 : index
    %7 = vector.load %arg16[%c0_4, %c0_5] : memref<8x128xf32, #tpu.memory_space<vmem>>, vector<8x128xf32>
    %8 = tpu.iota {dimensions = array<i32: 1>} : vector<8x128xi32>
    %9 = vector.broadcast %6 : vector<8x1xi32> to vector<8x128xi32>
    %10 = arith.cmpi eq, %8, %9 : vector<8x128xi32>
    %cst = arith.constant 1.000000e+00 : f32
    %cst_6 = arith.constant 0.000000e+00 : f32
    %11 = vector.broadcast %cst : f32 to vector<8x128xf32>
    %12 = vector.broadcast %cst_6 : f32 to vector<8x128xf32>
    %13 = arith.select %10, %11, %12 : vector<8x128xi1>, vector<8x128xf32>
    %14 = arith.truncf %13 : vector<8x128xf32> to vector<8x128xbf16>
    %c0_7 = arith.constant 0 : index
    %c0_8 = arith.constant 0 : index
    %15 = vector.load %arg5[%c0_7, %c0_8] : memref<128x128xbf16, #tpu.memory_space<vmem>>, vector<128x128xbf16>
    %cst_9 = arith.constant dense<0.000000e+00> : vector<8x128xf32>
    %16 = tpu.matmul %14, %15, %cst_9 {dimension_numbers = #tpu.dot_dimension_numbers<[1], [0], [0], [1], [0, 0, 1, 1], [], []>} : vector<8x128xbf16>, vector<128x128xbf16>, vector<8x128xf32> -> vector<8x128xf32>
    %c0_10 = arith.constant 0 : index
    %c0_11 = arith.constant 0 : index
    %17 = vector.load %arg6[%c0_10, %c0_11] : memref<128x128xbf16, #tpu.memory_space<vmem>>, vector<128x128xbf16>
    %18 = arith.truncf %7 : vector<8x128xf32> to vector<8x128xbf16>
    %cst_12 = arith.constant dense<0.000000e+00> : vector<8x128xf32>
    %19 = tpu.matmul %18, %17, %cst_12 {dimension_numbers = #tpu.dot_dimension_numbers<[1], [0], [0], [1], [0, 0, 1, 1], [], []>} : vector<8x128xbf16>, vector<128x128xbf16>, vector<8x128xf32> -> vector<8x128xf32>
    %c0_13 = arith.constant 0 : index
    %c0_14 = arith.constant 0 : index
    %20 = vector.load %arg7[%c0_13, %c0_14] : memref<1x128xf32, #tpu.memory_space<vmem>>, vector<1x128xf32>
    %21 = vector.broadcast %20 : vector<1x128xf32> to vector<8x128xf32>
    %22 = arith.addf %19, %21 : vector<8x128xf32>
    %c0_15 = arith.constant 0 : index
    %c0_16 = arith.constant 0 : index
    %c0_17 = arith.constant 0 : index
    %23 = vector.load %arg4[%c0_15, %c0_16, %c0_17] : memref<6x8x128xf32, #tpu.memory_space<vmem>>, vector<6x8x128xf32>
    %24 = vector.shape_cast %22 : vector<8x128xf32> to vector<1x8x128xf32>
    %25 = vector.broadcast %24 : vector<1x8x128xf32> to vector<6x8x128xf32>
    %26 = arith.addf %23, %25 : vector<6x8x128xf32>
    %27 = math.tanh %26 : vector<6x8x128xf32>
    %c0_18 = arith.constant 0 : index
    %c0_19 = arith.constant 0 : index
    %28 = vector.load %arg8[%c0_18, %c0_19] : memref<1x128xf32, #tpu.memory_space<vmem>>, vector<1x128xf32>
    %29 = vector.shape_cast %28 : vector<1x128xf32> to vector<1x1x128xf32>
    %30 = vector.broadcast %29 : vector<1x1x128xf32> to vector<6x8x128xf32>
    %31 = arith.mulf %27, %30 : vector<6x8x128xf32>
    %cst_20 = arith.constant dense<0.000000e+00> : vector<6x8xf32>
    %32 = vector.multi_reduction <add>, %31, %cst_20 [2] : vector<6x8x128xf32> to vector<6x8xf32>
    %33 = vector.shape_cast %32 : vector<6x8xf32> to vector<6x8x1xf32>
    %cst_21 = arith.constant dense<0xFF800000> : vector<8x1xf32>
    %34 = vector.multi_reduction <maximumf>, %33, %cst_21 [0] : vector<6x8x1xf32> to vector<8x1xf32>
    %35 = vector.shape_cast %34 : vector<8x1xf32> to vector<1x8x1xf32>
    %36 = vector.broadcast %35 : vector<1x8x1xf32> to vector<6x8x1xf32>
    %37 = arith.subf %33, %36 : vector<6x8x1xf32>
    %38 = math.exp %37 : vector<6x8x1xf32>
    %cst_22 = arith.constant dense<0.000000e+00> : vector<8x1xf32>
    %39 = vector.multi_reduction <add>, %38, %cst_22 [0] : vector<6x8x1xf32> to vector<8x1xf32>
    %40 = vector.shape_cast %39 : vector<8x1xf32> to vector<1x8x1xf32>
    %41 = vector.broadcast %40 : vector<1x8x1xf32> to vector<6x8x1xf32>
    %42 = arith.divf %38, %41 : vector<6x8x1xf32>
    %c0_23 = arith.constant 0 : index
    %c0_24 = arith.constant 0 : index
    %c0_25 = arith.constant 0 : index
    %43 = vector.load %arg3[%c0_23, %c0_24, %c0_25] : memref<6x8x128xf32, #tpu.memory_space<vmem>>, vector<6x8x128xf32>
    %44 = vector.broadcast %42 : vector<6x8x1xf32> to vector<6x8x128xf32>
    %45 = arith.mulf %44, %43 : vector<6x8x128xf32>
    %cst_26 = arith.constant dense<0.000000e+00> : vector<8x128xf32>
    %46 = vector.multi_reduction <add>, %45, %cst_26 [0] : vector<6x8x128xf32> to vector<8x128xf32>
    %47 = tpu.concatenate %16, %46 in 1 : vector<8x128xf32>, vector<8x128xf32> -> vector<8x256xf32>
    %c0_27 = arith.constant 0 : index
    %c0_28 = arith.constant 0 : index
    %48 = vector.load %arg9[%c0_27, %c0_28] : memref<256x384xbf16, #tpu.memory_space<vmem>>, vector<256x384xbf16>
    %49 = arith.truncf %47 : vector<8x256xf32> to vector<8x256xbf16>
    %cst_29 = arith.constant dense<0.000000e+00> : vector<8x384xf32>
    %50 = tpu.matmul %49, %48, %cst_29 {dimension_numbers = #tpu.dot_dimension_numbers<[1], [0], [0], [1], [0, 0, 1, 1], [], []>} : vector<8x256xbf16>, vector<256x384xbf16>, vector<8x384xf32> -> vector<8x384xf32>
    %c0_30 = arith.constant 0 : index
    %c0_31 = arith.constant 0 : index
    %51 = vector.load %arg11[%c0_30, %c0_31] : memref<1x384xf32, #tpu.memory_space<vmem>>, vector<1x384xf32>
    %52 = vector.broadcast %51 : vector<1x384xf32> to vector<8x384xf32>
    %53 = arith.addf %50, %52 : vector<8x384xf32>
    %c0_32 = arith.constant 0 : index
    %c0_33 = arith.constant 0 : index
    %54 = vector.load %arg10[%c0_32, %c0_33] : memref<128x384xbf16, #tpu.memory_space<vmem>>, vector<128x384xbf16>
    %55 = arith.truncf %7 : vector<8x128xf32> to vector<8x128xbf16>
    %cst_34 = arith.constant dense<0.000000e+00> : vector<8x384xf32>
    %56 = tpu.matmul %55, %54, %cst_34 {dimension_numbers = #tpu.dot_dimension_numbers<[1], [0], [0], [1], [0, 0, 1, 1], [], []>} : vector<8x128xbf16>, vector<128x384xbf16>, vector<8x384xf32> -> vector<8x384xf32>
    %c0_35 = arith.constant 0 : index
    %c0_36 = arith.constant 0 : index
    %57 = vector.load %arg12[%c0_35, %c0_36] : memref<1x384xf32, #tpu.memory_space<vmem>>, vector<1x384xf32>
    %58 = vector.broadcast %57 : vector<1x384xf32> to vector<8x384xf32>
    %59 = arith.addf %56, %58 : vector<8x384xf32>
    %60 = vector.extract_strided_slice %53 {offsets = [0, 0], sizes = [8, 128], strides = [1, 1]} : vector<8x384xf32> to vector<8x128xf32>
    %61 = vector.extract_strided_slice %59 {offsets = [0, 0], sizes = [8, 128], strides = [1, 1]} : vector<8x384xf32> to vector<8x128xf32>
    %62 = arith.addf %60, %61 : vector<8x128xf32>
    %63 = arith.negf %62 : vector<8x128xf32>
    %64 = math.exp %63 : vector<8x128xf32>
    %cst_37 = arith.constant 1.000000e+00 : f32
    %65 = vector.broadcast %cst_37 : f32 to vector<8x128xf32>
    %66 = arith.addf %65, %64 : vector<8x128xf32>
    %67 = arith.divf %65, %66 : vector<8x128xf32>
    %68 = vector.extract_strided_slice %53 {offsets = [0, 128], sizes = [8, 128], strides = [1, 1]} : vector<8x384xf32> to vector<8x128xf32>
    %69 = vector.extract_strided_slice %59 {offsets = [0, 128], sizes = [8, 128], strides = [1, 1]} : vector<8x384xf32> to vector<8x128xf32>
    %70 = arith.addf %68, %69 : vector<8x128xf32>
    %71 = arith.negf %70 : vector<8x128xf32>
    %72 = math.exp %71 : vector<8x128xf32>
    %cst_38 = arith.constant 1.000000e+00 : f32
    %73 = vector.broadcast %cst_38 : f32 to vector<8x128xf32>
    %74 = arith.addf %73, %72 : vector<8x128xf32>
    %75 = arith.divf %73, %74 : vector<8x128xf32>
    %76 = vector.extract_strided_slice %53 {offsets = [0, 256], sizes = [8, 128], strides = [1, 1]} : vector<8x384xf32> to vector<8x128xf32>
    %77 = vector.extract_strided_slice %59 {offsets = [0, 256], sizes = [8, 128], strides = [1, 1]} : vector<8x384xf32> to vector<8x128xf32>
    %78 = arith.mulf %67, %77 : vector<8x128xf32>
    %79 = arith.addf %76, %78 : vector<8x128xf32>
    %80 = math.tanh %79 : vector<8x128xf32>
    %cst_39 = arith.constant 1.000000e+00 : f32
    %81 = vector.broadcast %cst_39 : f32 to vector<8x128xf32>
    %82 = arith.subf %81, %75 : vector<8x128xf32>
    %83 = arith.mulf %82, %80 : vector<8x128xf32>
    %84 = arith.mulf %75, %7 : vector<8x128xf32>
    %85 = arith.addf %83, %84 : vector<8x128xf32>
    %c0_40 = arith.constant 0 : index
    %c0_41 = arith.constant 0 : index
    %86 = vector.load %arg16[%c0_40, %c0_41] : memref<8x128xf32, #tpu.memory_space<vmem>>, vector<8x128xf32>
    tpu.vector_store %arg16[%c0_40, %c0_41], %85 {strides = array<i32>} : memref<8x128xf32, #tpu.memory_space<vmem>>, vector<8x128xf32>,
    %87 = tpu.concatenate %16, %46, %85 in 1 : vector<8x128xf32>, vector<8x128xf32>, vector<8x128xf32> -> vector<8x384xf32>
    %c0_42 = arith.constant 0 : index
    %c0_43 = arith.constant 0 : index
    %88 = vector.load %arg13[%c0_42, %c0_43] : memref<384x128xbf16, #tpu.memory_space<vmem>>, vector<384x128xbf16>
    %89 = arith.truncf %87 : vector<8x384xf32> to vector<8x384xbf16>
    %cst_44 = arith.constant dense<0.000000e+00> : vector<8x128xf32>
    %90 = tpu.matmul %89, %88, %cst_44 {dimension_numbers = #tpu.dot_dimension_numbers<[1], [0], [0], [1], [0, 0, 1, 1], [], []>} : vector<8x384xbf16>, vector<384x128xbf16>, vector<8x128xf32> -> vector<8x128xf32>
    %c0_45 = arith.constant 0 : index
    %c0_46 = arith.constant 0 : index
    %91 = vector.load %arg14[%c0_45, %c0_46] : memref<1x128xf32, #tpu.memory_space<vmem>>, vector<1x128xf32>
    %92 = vector.broadcast %91 : vector<1x128xf32> to vector<8x128xf32>
    %93 = arith.addf %90, %92 : vector<8x128xf32>
    %c0_47 = arith.constant 0 : index
    %c0_48 = arith.constant 0 : index
    %c0_49 = arith.constant 0 : index
    %94 = vector.load %arg15[%c0_47, %c0_48, %c0_49] : memref<1x8x128xf32, #tpu.memory_space<vmem>>, vector<1x8x128xf32>
    %95 = vector.shape_cast %94 : vector<1x8x128xf32> to vector<8x128xf32>
    %96 = vector.shape_cast %93 : vector<8x128xf32> to vector<1x8x128xf32>
    tpu.vector_store %arg15[%c0_47, %c0_48, %c0_49], %96 {strides = array<i32>} : memref<1x8x128xf32, #tpu.memory_space<vmem>>, vector<1x8x128xf32>,
    %97 = tpu.iota {dimensions = array<i32: 1>} : vector<8x128xi32>
    %c12_i32 = arith.constant 12 : i32
    %98 = vector.broadcast %c12_i32 : i32 to vector<8x128xi32>
    %99 = arith.cmpi slt, %97, %98 : vector<8x128xi32>
    %cst_50 = arith.constant -1.000000e+30 : f32
    %100 = vector.broadcast %cst_50 : f32 to vector<8x128xf32>
    %101 = arith.select %99, %93, %100 : vector<8x128xi1>, vector<8x128xf32>
    %cst_51 = arith.constant dense<0xFF800000> : vector<8xf32>
    %102 = vector.multi_reduction <maximumf>, %101, %cst_51 [1] : vector<8x128xf32> to vector<8xf32>
    %103 = vector.shape_cast %102 : vector<8xf32> to vector<8x1xf32>
    %104 = vector.broadcast %103 : vector<8x1xf32> to vector<8x128xf32>
    %105 = arith.cmpf oeq, %101, %104 : vector<8x128xf32>
    %106 = arith.andi %105, %99 : vector<8x128xi1>
    %107 = arith.sitofp %97 : vector<8x128xi32> to vector<8x128xf32>
    %cst_52 = arith.constant 1.280000e+02 : f32
    %108 = vector.broadcast %cst_52 : f32 to vector<8x128xf32>
    %109 = arith.select %106, %107, %108 : vector<8x128xi1>, vector<8x128xf32>
    %cst_53 = arith.constant dense<0x7F800000> : vector<8xf32>
    %110 = vector.multi_reduction <minimumf>, %109, %cst_53 [1] : vector<8x128xf32> to vector<8xf32>
    %111 = vector.shape_cast %110 : vector<8xf32> to vector<8x1xf32>
    %112 = arith.fptosi %111 : vector<8x1xf32> to vector<8x1xi32>
    %c0_54 = arith.constant 0 : index
    %c0_55 = arith.constant 0 : index
    %113 = vector.load %arg17[%c0_54, %c0_55] : memref<8x1xi32, #tpu.memory_space<vmem>>, vector<8x1xi32>
    tpu.vector_store %arg17[%c0_54, %c0_55], %112 {strides = array<i32>} : memref<8x1xi32, #tpu.memory_space<vmem>>, vector<8x1xi32>,
    return
  }
  func.func @transform_0(%arg0: i32, %arg1: memref<4xi32, #tpu.memory_space<smem>>) -> (i32, i32, i32) {
    %c0_i32 = arith.constant 0 : i32
    %c0_i32_0 = arith.constant 0 : i32
    %c0_i32_1 = arith.constant 0 : i32
    return %arg0, %c0_i32, %c0_i32_0 : i32, i32, i32
  }
  func.func @transform_1(%arg0: i32, %arg1: memref<4xi32, #tpu.memory_space<smem>>) -> (i32, i32, i32) {
    %c0_i32 = arith.constant 0 : i32
    %c0_i32_0 = arith.constant 0 : i32
    %c0_i32_1 = arith.constant 0 : i32
    %c0_i32_2 = arith.constant 0 : i32
    return %c0_i32, %c0_i32_0, %c0_i32_1 : i32, i32, i32
  }
  func.func @transform_2(%arg0: i32, %arg1: memref<4xi32, #tpu.memory_space<smem>>) -> (i32, i32, i32) {
    %c0_i32 = arith.constant 0 : i32
    %c0_i32_0 = arith.constant 0 : i32
    %c0_i32_1 = arith.constant 0 : i32
    %c0_i32_2 = arith.constant 0 : i32
    return %c0_i32, %c0_i32_0, %c0_i32_1 : i32, i32, i32
  }
  func.func @transform_3(%arg0: i32, %arg1: memref<4xi32, #tpu.memory_space<smem>>) -> (i32, i32) {
    %c0_i32 = arith.constant 0 : i32
    %c0_i32_0 = arith.constant 0 : i32
    %c0_i32_1 = arith.constant 0 : i32
    return %c0_i32, %c0_i32_0 : i32, i32
  }
  func.func @transform_4(%arg0: i32, %arg1: memref<4xi32, #tpu.memory_space<smem>>) -> (i32, i32) {
    %c0_i32 = arith.constant 0 : i32
    %c0_i32_0 = arith.constant 0 : i32
    %c0_i32_1 = arith.constant 0 : i32
    return %c0_i32, %c0_i32_0 : i32, i32
  }
  func.func @transform_5(%arg0: i32, %arg1: memref<4xi32, #tpu.memory_space<smem>>) -> (i32, i32) {
    %c0_i32 = arith.constant 0 : i32
    %c0_i32_0 = arith.constant 0 : i32
    %c0_i32_1 = arith.constant 0 : i32
    return %c0_i32, %c0_i32_0 : i32, i32
  }
  func.func @transform_6(%arg0: i32, %arg1: memref<4xi32, #tpu.memory_space<smem>>) -> (i32, i32) {
    %c0_i32 = arith.constant 0 : i32
    %c0_i32_0 = arith.constant 0 : i32
    %c0_i32_1 = arith.constant 0 : i32
    return %c0_i32, %c0_i32_0 : i32, i32
  }
  func.func @transform_7(%arg0: i32, %arg1: memref<4xi32, #tpu.memory_space<smem>>) -> (i32, i32) {
    %c0_i32 = arith.constant 0 : i32
    %c0_i32_0 = arith.constant 0 : i32
    %c0_i32_1 = arith.constant 0 : i32
    return %c0_i32, %c0_i32_0 : i32, i32
  }
  func.func @transform_8(%arg0: i32, %arg1: memref<4xi32, #tpu.memory_space<smem>>) -> (i32, i32) {
    %c0_i32 = arith.constant 0 : i32
    %c0_i32_0 = arith.constant 0 : i32
    %c0_i32_1 = arith.constant 0 : i32
    return %c0_i32, %c0_i32_0 : i32, i32
  }
  func.func @transform_9(%arg0: i32, %arg1: memref<4xi32, #tpu.memory_space<smem>>) -> (i32, i32) {
    %c0_i32 = arith.constant 0 : i32
    %c0_i32_0 = arith.constant 0 : i32
    %c0_i32_1 = arith.constant 0 : i32
    return %c0_i32, %c0_i32_0 : i32, i32
  }
  func.func @transform_10(%arg0: i32, %arg1: memref<4xi32, #tpu.memory_space<smem>>) -> (i32, i32) {
    %c0_i32 = arith.constant 0 : i32
    %c0_i32_0 = arith.constant 0 : i32
    %c0_i32_1 = arith.constant 0 : i32
    return %c0_i32, %c0_i32_0 : i32, i32
  }
  func.func @transform_11(%arg0: i32, %arg1: memref<4xi32, #tpu.memory_space<smem>>) -> (i32, i32) {
    %c0_i32 = arith.constant 0 : i32
    %c0_i32_0 = arith.constant 0 : i32
    %c0_i32_1 = arith.constant 0 : i32
    return %c0_i32, %c0_i32_0 : i32, i32
  }
  func.func @transform_12(%arg0: i32, %arg1: memref<4xi32, #tpu.memory_space<smem>>) -> (i32, i32) {
    %c0_i32 = arith.constant 0 : i32
    %c0_i32_0 = arith.constant 0 : i32
    %c0_i32_1 = arith.constant 0 : i32
    return %c0_i32, %c0_i32_0 : i32, i32
  }
  func.func @transform_13(%arg0: i32, %arg1: memref<4xi32, #tpu.memory_space<smem>>) -> (i32, i32, i32) {
    %c0_i32 = arith.constant 0 : i32
    %c0_i32_0 = arith.constant 0 : i32
    %c0_i32_1 = arith.constant 0 : i32
    return %arg0, %c0_i32, %c0_i32_0 : i32, i32, i32
  }
}

</mosaic_0001>

<bundles_post_ra>
// kernel: attention_forward.2
= control target key start
LH: loop header
LB: loop body
LE: loop exit
PB: predicated region body
PF: predicated region fallthrough
CT: control target
= control target key end

     0   :  { %v3965_v1 = vmov 0.0   ;;  %v3949_v2 = vmov 0   ;;  %vm2681_vm0 = vmmov 0   ;;  %s3941_s1 = inlined_call_operand.vmem [shape: bf16[128,384], index: 1, kind: input, shape index: {}]   ;;  %s3942_s2 = inlined_call_operand.vmem [shape: bf16[128,384], index: 2, kind: input, shape index: {}]   ;;  %s3943_s0 = inlined_call_operand.vmem [shape: f32[6,8,128], index: 0, kind: input, shape index: {}]   ;;  %s3944_s5 = inlined_call_operand.vmem [shape: bf16[128,128], index: 5, kind: input, shape index: {}]   ;;  %s3945_s4 = inlined_call_operand.vmem [shape: f32[1,384], index: 4, kind: input, shape index: {}]   ;;  %s3946_s3 = inlined_call_operand.vmem [shape: f32[1,384], index: 3, kind: input, shape index: {}]   ;;  %s3947_s6 = inlined_call_operand.vmem [shape: f32[6,8,128], index: 6, kind: output, shape index: {0}]   ;;  %s3948_s7 = inlined_call_operand.vmem [shape: f32[6,8,128], index: 7, kind: output, shape index: {1}]  }
   0x1   :  { %v2725_v0 = vld [vmem:[%s3941_s1 + $0x4] ss:$12 sps:$4 sm:$0xff]   ;;  %2080 = vmatprep.subr.bf16.mxu1 %v3965_v1  ;;  %286 = vmatprep.mubr.bf16.mxu0 %v3949_v2  ;;  %v2732_v3 = vld [vmem:[%s3941_s1] ss:$12 sps:$4 sm:$0xff]   ;;  %v2740_v4 = vld [vmem:[%s3941_s1 + $0x1c] ss:$12 sps:$4 sm:$0xff]  }
   0x2   :  { %2096 = vmatprep.mubr.msk.bf16.mxu1 %vm2681_vm0, %v3965_v1  ;;  %254 = vmatprep.subr.bf16.mxu0 %v2725_v0  ;;  %v2746_v5 = vld [vmem:[%s3941_s1 + $0x18] ss:$12 sps:$4 sm:$0xff]   ;;  %v2752_v6 = vld [vmem:[%s3941_s1 + $0x34] ss:$12 sps:$4 sm:$0xff]   ;;  %v2758_v7 = vld [vmem:[%s3941_s1 + $0x30] ss:$12 sps:$4 sm:$0xff]  }
   0x3   :  { %255 = vmatpush1.bf16.msra.mxu0 %v2732_v3  ;;  %v2764_v8 = vld [vmem:[%s3941_s1 + $0x4c] ss:$12 sps:$4 sm:$0xff]   ;;  %v2769_v9 = vld [vmem:[%s3941_s1 + $0x8] ss:$12 sps:$4 sm:$0xff]   ;;  %v2782_v11 = vld [vmem:[%s3941_s1 + $0x64] ss:$12 sps:$4 sm:$0xff]  }
   0x4   :  { %256 = vmatprep.subr.bf16.mxu0 %v2740_v4  ;;  %v2775_v10 = vld [vmem:[%s3941_s1 + $0x48] ss:$12 sps:$4 sm:$0xff]   ;;  %2081 = vmatpush3.bf16.msra.mxu1 %v2769_v9  ;;  %v2788_v12 = vld [vmem:[%s3941_s1 + $0x20] ss:$12 sps:$4 sm:$0xff]   ;;  %v2800_v14 = vld [vmem:[%s3941_s1 + $0x38] ss:$12 sps:$4 sm:$0xff]  }
   0x5   :  { %2082 = vmatprep.subr.bf16.mxu1 %v3965_v1  ;;  %v2793_v13 = vld [vmem:[%s3941_s1 + $0x60] ss:$12 sps:$4 sm:$0xff]   ;;  %v2806_v15 = vld [vmem:[%s3941_s1 + $0x7c] ss:$12 sps:$4 sm:$0xff]   ;;  %v2813_v16 = vld [vmem:[%s3941_s1 + $0x78] ss:$12 sps:$4 sm:$0xff]  }
   0x6   :  { %v2819_v17 = vld [vmem:[%s3941_s1 + $0x50] ss:$12 sps:$4 sm:$0xff]   ;;  %v2825_v18 = vld [vmem:[%s3941_s1 + $0x94] ss:$12 sps:$4 sm:$0xff]   ;;  %v2844_v21 = vld [vmem:[%s3941_s1 + $0xac] ss:$12 sps:$4 sm:$0xff]  }
   0x7   :  { %257 = vmatpush1.bf16.msra.mxu0 %v2746_v5  ;;  %v2831_v19 = vld [vmem:[%s3941_s1 + $0x90] ss:$12 sps:$4 sm:$0xff]   ;;  %v2838_v20 = vld [vmem:[%s3941_s1 + $0x68] ss:$12 sps:$4 sm:$0xff]   ;;  %v108_v23 = vld [vmem:[%s3943_s0] sm:$0xff] }
   0x8   :  { %258 = vmatprep.subr.bf16.mxu0 %v2752_v6  ;;  %2083 = vmatpush3.bf16.msra.mxu1 %v2788_v12  ;;  %v2850_v22 = vld [vmem:[%s3941_s1 + $0xa8] ss:$12 sps:$4 sm:$0xff]   ;;  %v2860_v24 = vld [vmem:[%s3941_s1 + $0x80] ss:$12 sps:$4 sm:$0xff]   ;;  %v2866_v25 = vld [vmem:[%s3942_s2 + $0x4] ss:$12 sps:$4 sm:$0xff]   ;;  %v109_v26 = vpack.c.bf16 %v108_v23, %v108_v23 }
   0x9   :  { %2084 = vmatprep.subr.bf16.mxu1 %v3965_v1  ;;  %3994 = vst [vmem:[#allocation2_spill] sm:$0xff] %v2866_v25  ;;  %v2873_v27 = vld [vmem:[%s3942_s2] ss:$12 sps:$4 sm:$0xff]   ;;  %v2879_v28 = vld [vmem:[%s3941_s1 + $0x98] ss:$12 sps:$4 sm:$0xff]   ;;  %v3084_v56 = vld [vmem:[%s3944_s5 + $0x10] sm:$0xff]  }
   0xa   :  { %3995 = vst [vmem:[#allocation3_spill] sm:$0xff] %v2873_v27  ;;  %v2885_v29 = vld [vmem:[%s3942_s2 + $0x1c] ss:$12 sps:$4 sm:$0xff]   ;;  %v2891_v30 = vld [vmem:[%s3942_s2 + $0x18] ss:$12 sps:$4 sm:$0xff]   ;;  %v3119_v60 = vld [vmem:[%s3944_s5 + $0x30] sm:$0xff]  }
   0xb   :  { %259 = vmatpush1.bf16.msra.mxu0 %v2758_v7  ;;  %3996 = vst [vmem:[#allocation4_spill] sm:$0xff] %v2885_v29  ;;  %3997 = vst [vmem:[#allocation5_spill] sm:$0xff] %v2891_v30  ;;  %v2898_v31 = vld [vmem:[%s3941_s1 + $0xb0] ss:$12 sps:$4 sm:$0xff]   ;;  %v2904_v32 = vld [vmem:[%s3942_s2 + $0x34] ss:$12 sps:$4 sm:$0xff]  }
   0xc   :  { %260 = vmatprep.subr.bf16.mxu0 %v2764_v8  ;;  %2085 = vmatpush3.bf16.msra.mxu1 %v2800_v14  ;;  %3998 = vst [vmem:[#allocation6_spill] sm:$0xff] %v2904_v32  ;;  %v2912_v33 = vld [vmem:[%s3942_s2 + $0x30] ss:$12 sps:$4 sm:$0xff]   ;;  %v2918_v34 = vld [vmem:[%s3942_s2 + $0x8] ss:$12 sps:$4 sm:$0xff]   ;;  %v3061_v52 = vld [vmem:[%s3944_s5] sm:$0xff]  }
   0xd   :  { %2086 = vmatprep.subr.bf16.mxu1 %v3965_v1  ;;  %3999 = vst [vmem:[#allocation7_spill] sm:$0xff] %v2912_v33  ;;  %v2924_v35 = vld [vmem:[%s3942_s2 + $0x4c] ss:$12 sps:$4 sm:$0xff]   ;;  %v2931_v36 = vld [vmem:[%s3942_s2 + $0x48] ss:$12 sps:$4 sm:$0xff]   ;;  %v3102_v58 = vld [vmem:[%s3944_s5 + $0x20] sm:$0xff]  }
   0xe   :  { %4000 = vst [vmem:[#allocation8_spill] sm:$0xff] %v2924_v35  ;;  %4001 = vst [vmem:[#allocation9_spill] sm:$0xff] %v2931_v36  ;;  %v2937_v37 = vld [vmem:[%s3942_s2 + $0x20] ss:$12 sps:$4 sm:$0xff]   ;;  %v2943_v38 = vld [vmem:[%s3942_s2 + $0x64] ss:$12 sps:$4 sm:$0xff]  }
   0xf   :  { %261 = vmatpush1.bf16.msra.mxu0 %v2775_v10  ;;  %4002 = vst [vmem:[#allocation10_spill] sm:$0xff] %v2943_v38  ;;  %v2952_v39 = vld [vmem:[%s3942_s2 + $0x60] ss:$12 sps:$4 sm:$0xff]   ;;  %v2958_v40 = vld [vmem:[%s3942_s2 + $0x38] ss:$12 sps:$4 sm:$0xff]  }
  0x10   :  { %262 = vmatprep.subr.bf16.mxu0 %v2782_v11  ;;  %2087 = vmatpush3.bf16.msra.mxu1 %v2819_v17  ;;  %4003 = vst [vmem:[#allocation11_spill] sm:$0xff] %v2952_v39  ;;  %v2964_v41 = vld [vmem:[%s3942_s2 + $0x7c] ss:$12 sps:$4 sm:$0xff]   ;;  %v2971_v42 = vld [vmem:[%s3942_s2 + $0x78] ss:$12 sps:$4 sm:$0xff]  }
  0x11   :  { %2088 = vmatprep.subr.bf16.mxu1 %v3965_v1  ;;  %4004 = vst [vmem:[#allocation12_spill] sm:$0xff] %v2964_v41  ;;  %4005 = vst [vmem:[#allocation13_spill] sm:$0xff] %v2971_v42  ;;  %v2977_v43 = vld [vmem:[%s3942_s2 + $0x50] ss:$12 sps:$4 sm:$0xff]   ;;  %v2983_v44 = vld [vmem:[%s3942_s2 + $0x94] ss:$12 sps:$4 sm:$0xff]  }
  0x12   :  { %4006 = vst [vmem:[#allocation14_spill] sm:$0xff] %v2983_v44  ;;  %v2990_v45 = vld [vmem:[%s3942_s2 + $0x90] ss:$12 sps:$4 sm:$0xff]   ;;  %v2996_v46 = vld [vmem:[%s3942_s2 + $0x68] ss:$12 sps:$4 sm:$0xff]  }
  0x13   :  { %263 = vmatpush1.bf16.msra.mxu0 %v2793_v13  ;;  %4007 = vst [vmem:[#allocation15_spill] sm:$0xff] %v2990_v45  ;;  %v3002_v47 = vld [vmem:[%s3942_s2 + $0xac] ss:$12 sps:$4 sm:$0xff]   ;;  %v3009_v48 = vld [vmem:[%s3942_s2 + $0xa8] ss:$12 sps:$4 sm:$0xff]  }
  0x14   :  { %264 = vmatprep.subr.bf16.mxu0 %v2806_v15  ;;  %2089 = vmatpush3.bf16.msra.mxu1 %v2838_v20  ;;  %4008 = vst [vmem:[#allocation16_spill] sm:$0xff] %v3002_v47  ;;  %4009 = vst [vmem:[#allocation17_spill] sm:$0xff] %v3009_v48  ;;  %v3015_v49 = vld [vmem:[%s3942_s2 + $0x80] ss:$12 sps:$4 sm:$0xff]   ;;  %v3024_v50 = vld [vmem:[%s3942_s2 + $0x98] ss:$12 sps:$4 sm:$0xff]  }
  0x15   :  { %2090 = vmatprep.subr.bf16.mxu1 %v3965_v1  ;;  %v3033_v51 = vld [vmem:[%s3942_s2 + $0xb0] ss:$12 sps:$4 sm:$0xff]   ;;  %v1893_v53 = vld [vmem:[%s3943_s0 + $0x8] sm:$0xff] }
  0x16   :  { %v3067_v54 = vpack.c.bf16 %v1893_v53, %v1893_v53  ;;  %v3074_v55 = vld [vmem:[%s3944_s5 + $0x8] sm:$0xff]   ;;  %v3093_v57 = vld [vmem:[%s3944_s5 + $0x18] sm:$0xff]   ;;  %v111_v53 = vlaneseq }
  0x17   :  { %265 = vmatpush1.bf16.msra.mxu0 %v2813_v16  ;;  %v3110_v59 = vld [vmem:[%s3944_s5 + $0x28] sm:$0xff]   ;;  %v3128_v61 = vld [vmem:[%s3944_s5 + $0x38] sm:$0xff]  }
  0x18   :  { %266 = vmatprep.subr.bf16.mxu0 %v2825_v18  ;;  %2091 = vmatpush3.bf16.msra.mxu1 %v2860_v24 }
  0x19   :  { %2092 = vmatprep.subr.bf16.mxu1 %v3965_v1 }
  0x1b   :  { %267 = vmatpush1.bf16.msra.mxu0 %v2831_v19 }
  0x1c   :  { %268 = vmatprep.subr.bf16.mxu0 %v2844_v21  ;;  %2093 = vmatpush3.bf16.msra.mxu1 %v2879_v28 }
  0x1d   :  { %2094 = vmatprep.subr.bf16.mxu1 %v3965_v1 }
  0x1f   :  { %269 = vmatpush1.bf16.msra.mxu0 %v2850_v22 }
  0x20   :  { %479 = vmatprep.subr.bf16.mxu0 %v2866_v25  ;;  %2095 = vmatpush3.bf16.msra.mxu1 %v2898_v31 }
  0x21   :  { %2100 = vmatprep.subr.bf16.mxu1 %v3965_v1 }
  0x22   :  { %287 = vmatmul.mubr.bf16.vlgmr.msra.gmra.mrb[0].mxu0 %v109_v26 }
  0x23   :  { %480 = vmatpush1.bf16.msra.mxu0 %v2873_v27  ;;  %511 = vmatprep.mubr.bf16.mxu0 %v3949_v2 }
  0x24   :  { %481 = vmatprep.subr.bf16.mxu0 %v2885_v29  ;;  %2097 = vmatmul.mubr.bf16.vlgmr.msra.gmra.mrb[0].mxu1 %v109_v26 }
  0x25   :  { %2101 = vmatpush3.bf16.msra.mxu1 %v2918_v34  ;;  %2116 = vmatprep.mubr.msk.bf16.mxu1 %vm2681_vm0, %v3965_v1 }
  0x26   :  { %2102 = vmatprep.subr.bf16.mxu1 %v3965_v1 }
  0x27   :  { %482 = vmatpush1.bf16.msra.mxu0 %v2891_v30 }
  0x28   :  { %483 = vmatprep.subr.bf16.mxu0 %v2904_v32 }
  0x29   :  { %2103 = vmatpush3.bf16.msra.mxu1 %v2937_v37 }
  0x2a   :  { %2104 = vmatprep.subr.bf16.mxu1 %v3965_v1 }
  0x2b   :  { %484 = vmatpush1.bf16.msra.mxu0 %v2912_v33 }
  0x2c   :  { %485 = vmatprep.subr.bf16.mxu0 %v2924_v35 }
  0x2d   :  { %2105 = vmatpush3.bf16.msra.mxu1 %v2958_v40 }
  0x2e   :  { %2106 = vmatprep.subr.bf16.mxu1 %v3965_v1 }
  0x2f   :  { %486 = vmatpush1.bf16.msra.mxu0 %v2931_v36 }
  0x30   :  { %487 = vmatprep.subr.bf16.mxu0 %v2943_v38 }
  0x31   :  { %2107 = vmatpush3.bf16.msra.mxu1 %v2977_v43 }
  0x32   :  { %2108 = vmatprep.subr.bf16.mxu1 %v3965_v1 }
  0x33   :  { %488 = vmatpush1.bf16.msra.mxu0 %v2952_v39 }
  0x34   :  { %489 = vmatprep.subr.bf16.mxu0 %v2964_v41 }
  0x35   :  { %2109 = vmatpush3.bf16.msra.mxu1 %v2996_v46 }
  0x36   :  { %2110 = vmatprep.subr.bf16.mxu1 %v3965_v1 }
  0x37   :  { %490 = vmatpush1.bf16.msra.mxu0 %v2971_v42 }
  0x38   :  { %491 = vmatprep.subr.bf16.mxu0 %v2983_v44 }
  0x39   :  { %2111 = vmatpush3.bf16.msra.mxu1 %v3015_v49 }
  0x3a   :  { %2112 = vmatprep.subr.bf16.mxu1 %v3965_v1 }
  0x3b   :  { %492 = vmatpush1.bf16.msra.mxu0 %v2990_v45 }
  0x3c   :  { %493 = vmatprep.subr.bf16.mxu0 %v3002_v47 }
  0x3d   :  { %2113 = vmatpush3.bf16.msra.mxu1 %v3024_v50 }
  0x3e   :  { %2114 = vmatprep.subr.bf16.mxu1 %v3965_v1 }
  0x3f   :  { %494 = vmatpush1.bf16.msra.mxu0 %v3009_v48 }
  0x40   :  { %2120 = vmatprep.subr.bf16.mxu0 %v3965_v1 }
  0x41   :  { %2115 = vmatpush3.bf16.msra.mxu1 %v3033_v51 }
  0x42   :  { %512 = vmatmul.mubr.bf16.vlgmr.msra.gmra.mrb[0].mxu0 %v3949_v2  ;;  %675 = vmatprep.subr.bf16.mxu1 %v2725_v0 }
  0x43   :  { %2136 = vmatprep.mubr.msk.bf16.mxu0 %vm2681_vm0, %v3965_v1  ;;  %2121 = vmatpush3.bf16.msra.mxu0 %v3061_v52 }
  0x44   :  { %2117 = vmatmul.mubr.bf16.vlgmr.msra.gmra.mrb[4].mxu1 %v3949_v2  ;;  %2122 = vmatprep.subr.bf16.mxu0 %v3965_v1 }
  0x45   :  { %676 = vmatpush1.bf16.msra.mxu1 %v2732_v3  ;;  %707 = vmatprep.mubr.bf16.mxu1 %v3949_v2 }
  0x46   :  { %677 = vmatprep.subr.bf16.mxu1 %v2740_v4 }
  0x47   :  { %2123 = vmatpush3.bf16.msra.mxu0 %v3074_v55 }
  0x48   :  { %2124 = vmatprep.subr.bf16.mxu0 %v3965_v1 }
  0x49   :  { %678 = vmatpush1.bf16.msra.mxu1 %v2746_v5 }
  0x4a   :  { %679 = vmatprep.subr.bf16.mxu1 %v2752_v6 }
  0x4b   :  { %2125 = vmatpush3.bf16.msra.mxu0 %v3084_v56 }
  0x4c   :  { %2126 = vmatprep.subr.bf16.mxu0 %v3965_v1 }
  0x4d   :  { %680 = vmatpush1.bf16.msra.mxu1 %v2758_v7 }
  0x4e   :  { %681 = vmatprep.subr.bf16.mxu1 %v2764_v8 }
  0x4f   :  { %2127 = vmatpush3.bf16.msra.mxu0 %v3093_v57 }
  0x50   :  { %2128 = vmatprep.subr.bf16.mxu0 %v3965_v1 }
  0x51   :  { %682 = vmatpush1.bf16.msra.mxu1 %v2775_v10 }
  0x52   :  { %683 = vmatprep.subr.bf16.mxu1 %v2782_v11 }
  0x53   :  { %2129 = vmatpush3.bf16.msra.mxu0 %v3102_v58 }
  0x54   :  { %2130 = vmatprep.subr.bf16.mxu0 %v3965_v1 }
  0x55   :  { %684 = vmatpush1.bf16.msra.mxu1 %v2793_v13 }
  0x56   :  { %685 = vmatprep.subr.bf16.mxu1 %v2806_v15 }
  0x57   :  { %2131 = vmatpush3.bf16.msra.mxu0 %v3110_v59 }
  0x58   :  { %2132 = vmatprep.subr.bf16.mxu0 %v3965_v1 }
  0x59   :  { %686 = vmatpush1.bf16.msra.mxu1 %v2813_v16 }
  0x5a   :  { %687 = vmatprep.subr.bf16.mxu1 %v2825_v18 }
  0x5b   :  { %2133 = vmatpush3.bf16.msra.mxu0 %v3119_v60 }
  0x5c   :  { %2134 = vmatprep.subr.bf16.mxu0 %v3965_v1 }
  0x5d   :  { %688 = vmatpush1.bf16.msra.mxu1 %v2831_v19 }
  0x5e   :  { %689 = vmatprep.subr.bf16.mxu1 %v2844_v21 }
  0x5f   :  { %2135 = vmatpush3.bf16.msra.mxu0 %v3128_v61 }
  0x60   :  { %2140 = vmatprep.subr.bf16.mxu0 %v3965_v1 }
  0x61   :  { %690 = vmatpush1.bf16.msra.mxu1 %v2850_v22 }
  0x62   :  { %756 = vmatprep.subr.bf16.mxu1 %v2866_v25 }
  0x64   :  { %708 = vmatmul.mubr.bf16.vlgmr.msra.gmra.mrb[8].mxu1 %v3067_v54 }
  0x65   :  { %757 = vmatpush1.bf16.msra.mxu1 %v2873_v27  ;;  %788 = vmatprep.mubr.bf16.mxu1 %v3949_v2  ;;  %v112_v2 = vshrl.u32 %v111_v53, 7 }
  0x66   :  { %758 = vmatprep.subr.bf16.mxu1 %v2885_v29 }
  0x69   :  { %759 = vmatpush1.bf16.msra.mxu1 %v2891_v30 }
  0x6a   :  { %760 = vmatprep.subr.bf16.mxu1 %v2904_v32 }
  0x6d   :  { %761 = vmatpush1.bf16.msra.mxu1 %v2912_v33 }
  0x6e   :  { %762 = vmatprep.subr.bf16.mxu1 %v2924_v35 }
  0x71   :  { %763 = vmatpush1.bf16.msra.mxu1 %v2931_v36 }
  0x72   :  { %764 = vmatprep.subr.bf16.mxu1 %v2943_v38 }
  0x75   :  { %765 = vmatpush1.bf16.msra.mxu1 %v2952_v39 }
  0x76   :  { %766 = vmatprep.subr.bf16.mxu1 %v2964_v41 }
  0x79   :  { %767 = vmatpush1.bf16.msra.mxu1 %v2971_v42  ;;  %v117_v42 = vsub.s32 1, %v112_v2 }
  0x7a   :  { %768 = vmatprep.subr.bf16.mxu1 %v2983_v44  ;;  %v113_v44 = vsub.s32 0, %v112_v2 }
  0x7d   :  { %769 = vmatpush1.bf16.msra.mxu1 %v2990_v45  ;;  %v107_v45 = vld [vmem:[%s3945_s4] sm:$0x7] }
  0x7e   :  { %770 = vmatprep.subr.bf16.mxu1 %v3002_v47  ;;  %v106_v47 = vld [vmem:[%s3946_s3] sm:$0x7] }
  0x7f   :  { %v114_v41 = vrot.slane %v106_v47, %v113_v44  ;;  %v118_v39 = vrot.slane %v106_v47, %v117_v42 }
  0x81   :  { %771 = vmatpush1.bf16.msra.mxu1 %v3009_v48  ;;  %v339_v48 = vrot.slane %v107_v45, %v113_v44 }
  0x82   :  { %2180 = vmatprep.subr.bf16.mxu1 %v3965_v1  ;;  %v343_v1 = vrot.slane %v107_v45, %v117_v42 }
  0x83   :  { %v3143_v38 = vadd.f32 %v339_v48, %v114_v41 }
  0x85   :  { %4010 = vst [vmem:[#allocation18_spill] sm:$0xff] %v3143_v38 }
  0xf7   :  { %v329_v62 = vpop.f32.mrb[0].mxu1 }
  0xf8   :  { %v2098_v63 = vpop.f32.mrb[1].mxu1 }
  0xf9   :  { %v332_v23 = vpop.f32.mrb[2].mxu1 }
  0xfa   :  { %v2099_v26 = vpop.f32.mrb[3].mxu1  ;;  %v3145_v23 = vadd.f32 %v343_v1, %v118_v39  ;;  %v121_v1 = vsub.s32 2, %v112_v2 }
  0xfc   :  { %v3149_v39 = vrot.slane %v107_v45, %v121_v1 }
 0x115   :  { %v513_v63 = vpop.f32.mrb[0].mxu0 }
 0x116   :  { %v2441_v26 = vadd.f32 %v3143_v38, %v513_v63  ;;  %v515_v53 = vpop.f32.mrb[1].mxu0  ;;  %v3151_v63 = vrot.slane %v106_v47, %v121_v1  ;;  %v4011_v47 = vmov 0.0   ;;  %v4015_v1 = vld [vmem:[#allocation4_spill] sm:$0xff] }
 0x117   :  { %v517_v36 = vpop.f32.mrb[2].mxu0  ;;  %v2443_v32 = vadd.f32 %v3145_v23, %v515_v53  ;;  %v554_v29 = vpop.f32.mrb[4].mxu1 }
 0x118   :  { %v1883_v35 = vmul.f32 -1.442695, %v2441_v26  ;;  %v518_v33 = vpop.f32.mrb[3].mxu0  ;;  %v2118_v27 = vpop.f32.mrb[5].mxu1 }
 0x119   :  { %v1884_v30 = vmul.f32 -1.442695, %v2443_v32  ;;  %v557_v44 = vpop.f32.mrb[6].mxu1  ;;  %v555_v33 = vadd.f32 %v554_v29, %v3149_v39  ;;  %v330_v32 = vadd.f32 %v329_v62, %v3151_v63  ;;  %v1898_v62 = vld [vmem:[%s3943_s0 + $0x10] sm:$0xff] }
 0x11a   :  { %2563 = vpow2.f32 %v1883_v35  ;;  %v2119_v25 = vpop.f32.mrb[7].mxu1 }
 0x11b   :  { %2565 = vpow2.f32 %v1884_v30 }
 0x124   :  { %v2564_v41 = vpop.eup %2563 }
 0x125   :  { %v564_v42 = vadd.f32 1.0, %v2564_v41  ;;  %v2566_v48 = vpop.eup %2565  ;;  %v3238_v41 = vpack.c.bf16 %v1898_v62, %v1898_v62 }
 0x126   :  { %v571_v36 = vadd.f32 1.0, %v2566_v48  ;;  %v4016_v48 = vld [vmem:[#allocation5_spill] sm:$0xff] }
 0x127   :  { %2567 = vrcp.f32 %v564_v42  ;;  %v4014_v42 = vld [vmem:[#allocation3_spill] sm:$0xff] }
 0x128   :  { %2569 = vrcp.f32 %v571_v36  ;;  %v4017_v36 = vld [vmem:[#allocation6_spill] sm:$0xff] }
 0x131   :  { %v2568_v26 = vpop.eup %2567 }
 0x132   :  { %v574_v27 = vmul.f32 %v2568_v26, %v555_v33  ;;  %v2570_v25 = vpop.eup %2569  ;;  %v4018_v33 = vld [vmem:[#allocation7_spill] sm:$0xff]  ;;  %v4019_v26 = vld [vmem:[#allocation8_spill] sm:$0xff] }
 0x133   :  { %v577_v30 = vsub.f32 1.0, %v2570_v25  ;;  %v579_v2 = vmul.f32 0.0, %v2570_v25  ;;  %v4023_v25 = vld [vmem:[#allocation12_spill] sm:$0xff] }
 0x134   :  { %v575_v35 = vadd.f32 %v574_v27, %v330_v32  ;;  %v4020_v32 = vld [vmem:[#allocation9_spill] sm:$0xff]  ;;  %v4021_v27 = vld [vmem:[#allocation10_spill] sm:$0xff] }
 0x136   :  { %2571 = vtanh.f32 %v575_v35  ;;  %v4022_v35 = vld [vmem:[#allocation11_spill] sm:$0xff] }
 0x140   :  { %v2572_v53 = vpop.eup %2571 }
 0x141   :  { %v578_v44 = vmul.f32 %v2572_v53, %v577_v30  ;;  %v4024_v30 = vld [vmem:[#allocation13_spill] sm:$0xff]  ;;  %v4025_v53 = vld [vmem:[#allocation14_spill] sm:$0xff] }
 0x143   :  { %v3155_v45 = vadd.f32 %v579_v2, %v578_v44  ;;  %v4026_v44 = vld [vmem:[#allocation15_spill] sm:$0xff]  ;;  %v4027_v2 = vld [vmem:[#allocation16_spill] sm:$0xff] }
 0x145   :  { %581 = vst [vmem:[%s3947_s6] sm:$0xff] %v3155_v45  ;;  %v582_v29 = vpack.c.bf16 %v3155_v45, %v3155_v45 }
 0x147   :  { %2137 = vmatmul.mubr.bf16.vlgmr.msra.gmra.mrb[4].mxu0 %v582_v29  ;;  %789 = vmatmul.mubr.bf16.vlgmr.msra.gmra.mrb[8].mxu1 %v582_v29 }
 0x148   :  { %2141 = vmatpush3.bf16.msra.mxu0 %v2769_v9  ;;  %2156 = vmatprep.mubr.msk.bf16.mxu0 %vm2681_vm0, %v4011_v47 }
 0x149   :  { %2142 = vmatprep.subr.bf16.mxu0 %v4011_v47  ;;  %2181 = vmatpush3.bf16.msra.mxu1 %v3061_v52 }
 0x14a   :  { %2182 = vmatprep.subr.bf16.mxu1 %v4011_v47  ;;  %2196 = vmatprep.mubr.msk.bf16.mxu1 %vm2681_vm0, %v4011_v47 }
 0x14c   :  { %2143 = vmatpush3.bf16.msra.mxu0 %v2788_v12 }
 0x14d   :  { %2144 = vmatprep.subr.bf16.mxu0 %v4011_v47  ;;  %2183 = vmatpush3.bf16.msra.mxu1 %v3074_v55 }
 0x14e   :  { %2184 = vmatprep.subr.bf16.mxu1 %v4011_v47 }
 0x150   :  { %2145 = vmatpush3.bf16.msra.mxu0 %v2800_v14 }
 0x151   :  { %2146 = vmatprep.subr.bf16.mxu0 %v4011_v47  ;;  %2185 = vmatpush3.bf16.msra.mxu1 %v3084_v56 }
 0x152   :  { %2186 = vmatprep.subr.bf16.mxu1 %v4011_v47 }
 0x154   :  { %2147 = vmatpush3.bf16.msra.mxu0 %v2819_v17 }
 0x155   :  { %2148 = vmatprep.subr.bf16.mxu0 %v4011_v47  ;;  %2187 = vmatpush3.bf16.msra.mxu1 %v3093_v57 }
 0x156   :  { %2188 = vmatprep.subr.bf16.mxu1 %v4011_v47 }
 0x158   :  { %2149 = vmatpush3.bf16.msra.mxu0 %v2838_v20 }
 0x159   :  { %2150 = vmatprep.subr.bf16.mxu0 %v4011_v47  ;;  %2189 = vmatpush3.bf16.msra.mxu1 %v3102_v58 }
 0x15a   :  { %2190 = vmatprep.subr.bf16.mxu1 %v4011_v47 }
 0x15c   :  { %2151 = vmatpush3.bf16.msra.mxu0 %v2860_v24 }
 0x15d   :  { %2152 = vmatprep.subr.bf16.mxu0 %v4011_v47  ;;  %2191 = vmatpush3.bf16.msra.mxu1 %v3110_v59 }
 0x15e   :  { %2192 = vmatprep.subr.bf16.mxu1 %v4011_v47 }
 0x160   :  { %2153 = vmatpush3.bf16.msra.mxu0 %v2879_v28 }
 0x161   :  { %2154 = vmatprep.subr.bf16.mxu0 %v4011_v47  ;;  %2193 = vmatpush3.bf16.msra.mxu1 %v3119_v60 }
 0x162   :  { %2194 = vmatprep.subr.bf16.mxu1 %v4011_v47 }
 0x164   :  { %2155 = vmatpush3.bf16.msra.mxu0 %v2898_v31 }
 0x165   :  { %2160 = vmatprep.subr.bf16.mxu0 %v4011_v47  ;;  %2195 = vmatpush3.bf16.msra.mxu1 %v3128_v61 }
 0x166   :  { %2200 = vmatprep.subr.bf16.mxu1 %v4011_v47 }
 0x167   :  { %2157 = vmatmul.mubr.bf16.vlgmr.msra.gmra.mrb[8].mxu0 %v3067_v54  ;;  %v4012_v54 = vmov 0  }
 0x168   :  { %2161 = vmatpush3.bf16.msra.mxu0 %v2918_v34  ;;  %2176 = vmatprep.mubr.msk.bf16.mxu0 %vm2681_vm0, %v4011_v47 }
 0x169   :  { %2162 = vmatprep.subr.bf16.mxu0 %v4011_v47 }
 0x16c   :  { %2163 = vmatpush3.bf16.msra.mxu0 %v2937_v37 }
 0x16d   :  { %2164 = vmatprep.subr.bf16.mxu0 %v4011_v47 }
 0x170   :  { %2165 = vmatpush3.bf16.msra.mxu0 %v2958_v40 }
 0x171   :  { %2166 = vmatprep.subr.bf16.mxu0 %v4011_v47 }
 0x174   :  { %2167 = vmatpush3.bf16.msra.mxu0 %v2977_v43 }
 0x175   :  { %2168 = vmatprep.subr.bf16.mxu0 %v4011_v47 }
 0x178   :  { %2169 = vmatpush3.bf16.msra.mxu0 %v2996_v46 }
 0x179   :  { %2170 = vmatprep.subr.bf16.mxu0 %v4011_v47 }
 0x17c   :  { %2171 = vmatpush3.bf16.msra.mxu0 %v3015_v49 }
 0x17d   :  { %2172 = vmatprep.subr.bf16.mxu0 %v4011_v47 }
 0x180   :  { %2173 = vmatpush3.bf16.msra.mxu0 %v3024_v50 }
 0x181   :  { %2174 = vmatprep.subr.bf16.mxu0 %v4011_v47 }
 0x184   :  { %2175 = vmatpush3.bf16.msra.mxu0 %v3033_v51 }
 0x185   :  { %906 = vmatprep.subr.bf16.mxu0 %v2725_v0  ;;  %v4013_v0 = vld [vmem:[#allocation2_spill] sm:$0xff] }
 0x187   :  { %2177 = vmatmul.mubr.bf16.vlgmr.msra.gmra.mrb[12].mxu0 %v582_v29  ;;  %v4028_v29 = vld [vmem:[#allocation17_spill] sm:$0xff] }
 0x188   :  { %907 = vmatpush1.bf16.msra.mxu0 %v2732_v3  ;;  %938 = vmatprep.mubr.bf16.mxu0 %v4012_v54 }
 0x189   :  { %908 = vmatprep.subr.bf16.mxu0 %v2740_v4 }
 0x18c   :  { %909 = vmatpush1.bf16.msra.mxu0 %v2746_v5 }
 0x18d   :  { %910 = vmatprep.subr.bf16.mxu0 %v2752_v6 }
 0x190   :  { %911 = vmatpush1.bf16.msra.mxu0 %v2758_v7 }
 0x191   :  { %912 = vmatprep.subr.bf16.mxu0 %v2764_v8 }
 0x194   :  { %913 = vmatpush1.bf16.msra.mxu0 %v2775_v10 }
 0x195   :  { %914 = vmatprep.subr.bf16.mxu0 %v2782_v11 }
 0x198   :  { %915 = vmatpush1.bf16.msra.mxu0 %v2793_v13 }
 0x199   :  { %916 = vmatprep.subr.bf16.mxu0 %v2806_v15 }
 0x19c   :  { %917 = vmatpush1.bf16.msra.mxu0 %v2813_v16 }
 0x19d   :  { %918 = vmatprep.subr.bf16.mxu0 %v2825_v18 }
 0x1a0   :  { %919 = vmatpush1.bf16.msra.mxu0 %v2831_v19 }
 0x1a1   :  { %920 = vmatprep.subr.bf16.mxu0 %v2844_v21 }
 0x1a4   :  { %921 = vmatpush1.bf16.msra.mxu0 %v2850_v22 }
 0x1a5   :  { %987 = vmatprep.subr.bf16.mxu0 %v4013_v0 }
 0x1a7   :  { %939 = vmatmul.mubr.bf16.vlgmr.msra.gmra.mrb[16].mxu0 %v3238_v41 }
 0x1a8   :  { %988 = vmatpush1.bf16.msra.mxu0 %v4014_v42  ;;  %1019 = vmatprep.mubr.bf16.mxu0 %v4012_v54 }
 0x1a9   :  { %989 = vmatprep.subr.bf16.mxu0 %v4015_v1 }
 0x1ac   :  { %990 = vmatpush1.bf16.msra.mxu0 %v4016_v48 }
 0x1ad   :  { %991 = vmatprep.subr.bf16.mxu0 %v4017_v36 }
 0x1b0   :  { %992 = vmatpush1.bf16.msra.mxu0 %v4018_v33 }
 0x1b1   :  { %993 = vmatprep.subr.bf16.mxu0 %v4019_v26 }
 0x1b4   :  { %994 = vmatpush1.bf16.msra.mxu0 %v4020_v32 }
 0x1b5   :  { %995 = vmatprep.subr.bf16.mxu0 %v4021_v27 }
 0x1b8   :  { %996 = vmatpush1.bf16.msra.mxu0 %v4022_v35 }
 0x1b9   :  { %997 = vmatprep.subr.bf16.mxu0 %v4023_v25 }
 0x1bc   :  { %998 = vmatpush1.bf16.msra.mxu0 %v4024_v30 }
 0x1bd   :  { %999 = vmatprep.subr.bf16.mxu0 %v4025_v53 }
 0x1c0   :  { %1000 = vmatpush1.bf16.msra.mxu0 %v4026_v44 }
 0x1c1   :  { %1001 = vmatprep.subr.bf16.mxu0 %v4027_v2 }
 0x1c4   :  { %1002 = vmatpush1.bf16.msra.mxu0 %v4028_v29 }
 0x1c5   :  { %2240 = vmatprep.subr.bf16.mxu0 %v4011_v47 }
 0x21a   :  { %v665_v62 = vpop.f32.mrb[4].mxu0  ;;  %v790_v32 = vpop.f32.mrb[8].mxu1 }
 0x21b   :  { %671 = vst [vmem:[%s3948_s7] sm:$0xff] %v665_v62  ;;  %v2138_v35 = vpop.f32.mrb[5].mxu0  ;;  %v792_v25 = vpop.f32.mrb[9].mxu1  ;;  %v2445_v44 = vadd.f32 %v3143_v38, %v790_v32 }
 0x21c   :  { %v668_v27 = vpop.f32.mrb[6].mxu0  ;;  %v794_v30 = vpop.f32.mrb[10].mxu1  ;;  %v2447_v1 = vadd.f32 %v3145_v23, %v792_v25 }
 0x21d   :  { %v2139_v26 = vpop.f32.mrb[7].mxu0  ;;  %v795_v53 = vpop.f32.mrb[11].mxu1  ;;  %v1894_v29 = vmul.f32 -1.442695, %v2445_v44 }
 0x21e   :  { %v1895_v42 = vmul.f32 -1.442695, %v2447_v1 }
 0x21f   :  { %2573 = vpow2.f32 %v1894_v29 }
 0x220   :  { %2575 = vpow2.f32 %v1895_v42 }
 0x229   :  { %v2574_v0 = vpop.eup %2573 }
 0x22a   :  { %v841_v62 = vadd.f32 1.0, %v2574_v0  ;;  %v2576_v35 = vpop.eup %2575 }
 0x22b   :  { %v848_v27 = vadd.f32 1.0, %v2576_v35 }
 0x22c   :  { %2577 = vrcp.f32 %v841_v62 }
 0x22d   :  { %2579 = vrcp.f32 %v848_v27 }
 0x236   :  { %v2578_v32 = vpop.eup %2577 }
 0x237   :  { %v2580_v1 = vpop.eup %2579 }
 0x238   :  { %v854_v25 = vsub.f32 1.0, %v2580_v1  ;;  %v856_v29 = vmul.f32 %v2580_v1, %v3155_v45 }
 0x23a   :  { %v750_v33 = vpop.f32.mrb[8].mxu0 }
 0x23b   :  { %v2158_v2 = vpop.f32.mrb[9].mxu0 }
 0x23c   :  { %v753_v36 = vpop.f32.mrb[10].mxu0 }
 0x23d   :  { %v2159_v48 = vpop.f32.mrb[11].mxu0  ;;  %v751_v36 = vadd.f32 %v750_v33, %v3151_v63 }
 0x25a   :  { %v831_v30 = vpop.f32.mrb[12].mxu0 }
 0x25b   :  { %v832_v26 = vadd.f32 %v831_v30, %v3149_v39  ;;  %v2178_v53 = vpop.f32.mrb[13].mxu0  ;;  %v4045_v30 = vld [vmem:[#allocation18_spill] sm:$0xff] }
 0x25c   :  { %v834_v38 = vpop.f32.mrb[14].mxu0 }
 0x25d   :  { %v851_v48 = vmul.f32 %v2578_v32, %v832_v26  ;;  %v2179_v44 = vpop.f32.mrb[15].mxu0 }
 0x25f   :  { %v852_v2 = vadd.f32 %v851_v48, %v751_v36 }
 0x261   :  { %2581 = vtanh.f32 %v852_v2 }
 0x26b   :  { %v2582_v42 = vpop.eup %2581 }
 0x26c   :  { %v855_v0 = vmul.f32 %v2582_v42, %v854_v25 }
 0x26e   :  { %v3266_v62 = vadd.f32 %v856_v29, %v855_v0 }
 0x270   :  { %1896 = vst [vmem:[%s3947_s6 + $0x8] sm:$0xff] %v3266_v62  ;;  %v860_v38 = vpack.c.bf16 %v3266_v62, %v3266_v62 }
 0x272   :  { %2197 = vmatmul.mubr.bf16.vlgmr.msra.gmra.mrb[12].mxu1 %v860_v38  ;;  %1020 = vmatmul.mubr.bf16.vlgmr.msra.gmra.mrb[16].mxu0 %v860_v38 }
 0x273   :  { %2201 = vmatpush3.bf16.msra.mxu1 %v2769_v9  ;;  %2216 = vmatprep.mubr.msk.bf16.mxu1 %vm2681_vm0, %v4011_v47  ;;  %v3331_v9 = vld [vmem:[%s3941_s1 + $0x4] ss:$12 sps:$4 sm:$0xff]  }
 0x274   :  { %2202 = vmatprep.subr.bf16.mxu1 %v4011_v47  ;;  %2241 = vmatpush3.bf16.msra.mxu0 %v3061_v52 }
 0x275   :  { %2242 = vmatprep.subr.bf16.mxu0 %v4011_v47  ;;  %2256 = vmatprep.mubr.msk.bf16.mxu0 %vm2681_vm0, %v4011_v47 }
 0x277   :  { %2203 = vmatpush3.bf16.msra.mxu1 %v2788_v12  ;;  %v4035_v12 = vld [vmem:[#allocation8_spill] sm:$0xff] }
 0x278   :  { %2204 = vmatprep.subr.bf16.mxu1 %v4011_v47  ;;  %2243 = vmatpush3.bf16.msra.mxu0 %v3074_v55 }
 0x279   :  { %2244 = vmatprep.subr.bf16.mxu0 %v4011_v47 }
 0x27b   :  { %2205 = vmatpush3.bf16.msra.mxu1 %v2800_v14  ;;  %v4037_v14 = vld [vmem:[#allocation10_spill] sm:$0xff] }
 0x27c   :  { %2206 = vmatprep.subr.bf16.mxu1 %v4011_v47  ;;  %2245 = vmatpush3.bf16.msra.mxu0 %v3084_v56 }
 0x27d   :  { %2246 = vmatprep.subr.bf16.mxu0 %v4011_v47 }
 0x27f   :  { %2207 = vmatpush3.bf16.msra.mxu1 %v2819_v17  ;;  %v4040_v17 = vld [vmem:[#allocation13_spill] sm:$0xff] }
 0x280   :  { %2208 = vmatprep.subr.bf16.mxu1 %v4011_v47  ;;  %2247 = vmatpush3.bf16.msra.mxu0 %v3093_v57 }
 0x281   :  { %2248 = vmatprep.subr.bf16.mxu0 %v4011_v47 }
 0x283   :  { %2209 = vmatpush3.bf16.msra.mxu1 %v2838_v20  ;;  %v4043_v20 = vld [vmem:[#allocation16_spill] sm:$0xff] }
 0x284   :  { %2210 = vmatprep.subr.bf16.mxu1 %v4011_v47  ;;  %2249 = vmatpush3.bf16.msra.mxu0 %v3102_v58 }
 0x285   :  { %2250 = vmatprep.subr.bf16.mxu0 %v4011_v47 }
 0x287   :  { %2211 = vmatpush3.bf16.msra.mxu1 %v2860_v24 }
 0x288   :  { %2212 = vmatprep.subr.bf16.mxu1 %v4011_v47  ;;  %2251 = vmatpush3.bf16.msra.mxu0 %v3110_v59 }
 0x289   :  { %2252 = vmatprep.subr.bf16.mxu0 %v4011_v47 }
 0x28b   :  { %2213 = vmatpush3.bf16.msra.mxu1 %v2879_v28 }
 0x28c   :  { %2214 = vmatprep.subr.bf16.mxu1 %v4011_v47  ;;  %2253 = vmatpush3.bf16.msra.mxu0 %v3119_v60 }
 0x28d   :  { %2254 = vmatprep.subr.bf16.mxu0 %v4011_v47 }
 0x28f   :  { %2215 = vmatpush3.bf16.msra.mxu1 %v2898_v31 }
 0x290   :  { %2220 = vmatprep.subr.bf16.mxu1 %v4011_v47  ;;  %2255 = vmatpush3.bf16.msra.mxu0 %v3128_v61 }
 0x291   :  { %2260 = vmatprep.subr.bf16.mxu0 %v4011_v47 }
 0x292   :  { %2217 = vmatmul.mubr.bf16.vlgmr.msra.gmra.mrb[16].mxu1 %v3238_v41 }
 0x293   :  { %2221 = vmatpush3.bf16.msra.mxu1 %v2918_v34  ;;  %2236 = vmatprep.mubr.msk.bf16.mxu1 %vm2681_vm0, %v4011_v47 }
 0x294   :  { %2222 = vmatprep.subr.bf16.mxu1 %v4011_v47 }
 0x297   :  { %2223 = vmatpush3.bf16.msra.mxu1 %v2937_v37 }
 0x298   :  { %2224 = vmatprep.subr.bf16.mxu1 %v4011_v47 }
 0x29b   :  { %2225 = vmatpush3.bf16.msra.mxu1 %v2958_v40 }
 0x29c   :  { %2226 = vmatprep.subr.bf16.mxu1 %v4011_v47 }
 0x29f   :  { %2227 = vmatpush3.bf16.msra.mxu1 %v2977_v43 }
 0x2a0   :  { %2228 = vmatprep.subr.bf16.mxu1 %v4011_v47 }
 0x2a3   :  { %2229 = vmatpush3.bf16.msra.mxu1 %v2996_v46 }
 0x2a4   :  { %2230 = vmatprep.subr.bf16.mxu1 %v4011_v47 }
 0x2a7   :  { %2231 = vmatpush3.bf16.msra.mxu1 %v3015_v49 }
 0x2a8   :  { %2232 = vmatprep.subr.bf16.mxu1 %v4011_v47 }
 0x2ab   :  { %2233 = vmatpush3.bf16.msra.mxu1 %v3024_v50 }
 0x2ac   :  { %2234 = vmatprep.subr.bf16.mxu1 %v4011_v47 }
 0x2af   :  { %2235 = vmatpush3.bf16.msra.mxu1 %v3033_v51 }
 0x2b0   :  { %1137 = vmatprep.subr.bf16.mxu1 %v3331_v9 }
 0x2b2   :  { %2237 = vmatmul.mubr.bf16.vlgmr.msra.gmra.mrb[20].mxu1 %v860_v38 }
 0x2b3   :  { %1138 = vmatpush1.bf16.msra.mxu1 %v2732_v3  ;;  %1169 = vmatprep.mubr.bf16.mxu1 %v4012_v54  ;;  %v4029_v3 = vld [vmem:[#allocation2_spill] sm:$0xff] }
 0x2b4   :  { %1139 = vmatprep.subr.bf16.mxu1 %v2740_v4  ;;  %v1903_v4 = vld [vmem:[%s3943_s0 + $0x18] sm:$0xff] }
 0x2b7   :  { %1140 = vmatpush1.bf16.msra.mxu1 %v2746_v5  ;;  %v3354_v5 = vpack.c.bf16 %v1903_v4, %v1903_v4 }
 0x2b8   :  { %1141 = vmatprep.subr.bf16.mxu1 %v2752_v6  ;;  %v4030_v6 = vld [vmem:[#allocation3_spill] sm:$0xff] }
 0x2bb   :  { %1142 = vmatpush1.bf16.msra.mxu1 %v2758_v7  ;;  %v4031_v7 = vld [vmem:[#allocation4_spill] sm:$0xff] }
 0x2bc   :  { %1143 = vmatprep.subr.bf16.mxu1 %v2764_v8  ;;  %v4032_v8 = vld [vmem:[#allocation5_spill] sm:$0xff] }
 0x2bf   :  { %1144 = vmatpush1.bf16.msra.mxu1 %v2775_v10  ;;  %v4033_v10 = vld [vmem:[#allocation6_spill] sm:$0xff] }
 0x2c0   :  { %1145 = vmatprep.subr.bf16.mxu1 %v2782_v11  ;;  %v4034_v11 = vld [vmem:[#allocation7_spill] sm:$0xff] }
 0x2c3   :  { %1146 = vmatpush1.bf16.msra.mxu1 %v2793_v13  ;;  %v4036_v13 = vld [vmem:[#allocation9_spill] sm:$0xff] }
 0x2c4   :  { %1147 = vmatprep.subr.bf16.mxu1 %v2806_v15  ;;  %v4038_v15 = vld [vmem:[#allocation11_spill] sm:$0xff] }
 0x2c7   :  { %1148 = vmatpush1.bf16.msra.mxu1 %v2813_v16  ;;  %v4039_v16 = vld [vmem:[#allocation12_spill] sm:$0xff] }
 0x2c8   :  { %1149 = vmatprep.subr.bf16.mxu1 %v2825_v18  ;;  %v4041_v18 = vld [vmem:[#allocation14_spill] sm:$0xff] }
 0x2cb   :  { %1150 = vmatpush1.bf16.msra.mxu1 %v2831_v19  ;;  %v4042_v19 = vld [vmem:[#allocation15_spill] sm:$0xff] }
 0x2cc   :  { %1151 = vmatprep.subr.bf16.mxu1 %v2844_v21  ;;  %v4044_v21 = vld [vmem:[#allocation17_spill] sm:$0xff] }
 0x2cf   :  { %1152 = vmatpush1.bf16.msra.mxu1 %v2850_v22 }
 0x2d0   :  { %1218 = vmatprep.subr.bf16.mxu1 %v4029_v3 }
 0x2d2   :  { %1170 = vmatmul.mubr.bf16.vlgmr.msra.gmra.mrb[24].mxu1 %v3354_v5 }
 0x2d3   :  { %1219 = vmatpush1.bf16.msra.mxu1 %v4030_v6  ;;  %1250 = vmatprep.mubr.bf16.mxu1 %v4012_v54 }
 0x2d4   :  { %1220 = vmatprep.subr.bf16.mxu1 %v4031_v7 }
 0x2d7   :  { %1221 = vmatpush1.bf16.msra.mxu1 %v4032_v8 }
 0x2d8   :  { %1222 = vmatprep.subr.bf16.mxu1 %v4033_v10 }
 0x2db   :  { %1223 = vmatpush1.bf16.msra.mxu1 %v4034_v11 }
 0x2dc   :  { %1224 = vmatprep.subr.bf16.mxu1 %v4035_v12 }
 0x2df   :  { %1225 = vmatpush1.bf16.msra.mxu1 %v4036_v13 }
 0x2e0   :  { %1226 = vmatprep.subr.bf16.mxu1 %v4037_v14 }
 0x2e3   :  { %1227 = vmatpush1.bf16.msra.mxu1 %v4038_v15 }
 0x2e4   :  { %1228 = vmatprep.subr.bf16.mxu1 %v4039_v16 }
 0x2e7   :  { %1229 = vmatpush1.bf16.msra.mxu1 %v4040_v17 }
 0x2e8   :  { %1230 = vmatprep.subr.bf16.mxu1 %v4041_v18 }
 0x2eb   :  { %1231 = vmatpush1.bf16.msra.mxu1 %v4042_v19 }
 0x2ec   :  { %1232 = vmatprep.subr.bf16.mxu1 %v4043_v20  ;;  %v3393_v20 = vld [vmem:[%s3941_s1 + $0x8] ss:$12 sps:$4 sm:$0xff]  }
 0x2ef   :  { %1233 = vmatpush1.bf16.msra.mxu1 %v4044_v21  ;;  %v3424_v21 = vld [vmem:[%s3941_s1 + $0x50] ss:$12 sps:$4 sm:$0xff]  }
 0x2f0   :  { %2300 = vmatprep.subr.bf16.mxu1 %v4011_v47 }
 0x345   :  { %v895_v22 = vpop.f32.mrb[12].mxu1  ;;  %v1021_v24 = vpop.f32.mrb[16].mxu0 }
 0x346   :  { %1897 = vst [vmem:[%s3948_s7 + $0x8] sm:$0xff] %v895_v22  ;;  %v2198_v28 = vpop.f32.mrb[13].mxu1  ;;  %v1023_v45 = vpop.f32.mrb[17].mxu0  ;;  %v2449_v26 = vadd.f32 %v4045_v30, %v1021_v24  ;;  %v3442_v22 = vld [vmem:[%s3941_s1 + $0x80] ss:$12 sps:$4 sm:$0xff]  }
 0x347   :  { %v898_v41 = vpop.f32.mrb[14].mxu1  ;;  %v1025_v33 = vpop.f32.mrb[18].mxu0  ;;  %v2451_v2 = vadd.f32 %v3145_v23, %v1023_v45  ;;  %v3451_v24 = vld [vmem:[%s3941_s1 + $0x98] ss:$12 sps:$4 sm:$0xff]   ;;  %v3550_v45 = vld [vmem:[%s3941_s1 + $0x94] ss:$12 sps:$4 sm:$0xff]  }
 0x348   :  { %v2199_v35 = vpop.f32.mrb[15].mxu1  ;;  %v1026_v27 = vpop.f32.mrb[19].mxu0  ;;  %v1899_v48 = vmul.f32 -1.442695, %v2449_v26  ;;  %v3544_v28 = vld [vmem:[%s3941_s1 + $0x78] ss:$12 sps:$4 sm:$0xff]  }
 0x349   :  { %v1900_v1 = vmul.f32 -1.442695, %v2451_v2  ;;  %v3556_v41 = vld [vmem:[%s3941_s1 + $0x90] ss:$12 sps:$4 sm:$0xff]   ;;  %v3562_v33 = vld [vmem:[%s3941_s1 + $0xac] ss:$12 sps:$4 sm:$0xff]  }
 0x34a   :  { %2583 = vpow2.f32 %v1899_v48  ;;  %v3568_v35 = vld [vmem:[%s3941_s1 + $0xa8] ss:$12 sps:$4 sm:$0xff]   ;;  %v3574_v27 = vld [vmem:[%s3942_s2 + $0x4] ss:$12 sps:$4 sm:$0xff]  }
 0x34b   :  { %2585 = vpow2.f32 %v1900_v1  ;;  %v1908_v26 = vld [vmem:[%s3943_s0 + $0x20] sm:$0xff]  ;;  %v3611_v2 = vld [vmem:[%s3942_s2 + $0x30] ss:$12 sps:$4 sm:$0xff]   ;;  %v3617_v1 = vld [vmem:[%s3942_s2 + $0x4c] ss:$12 sps:$4 sm:$0xff]  }
 0x34c   :  { %v3599_v48 = vld [vmem:[%s3942_s2 + $0x18] ss:$12 sps:$4 sm:$0xff]  }
 0x354   :  { %v2584_v25 = vpop.eup %2583 }
 0x355   :  { %v1072_v42 = vadd.f32 1.0, %v2584_v25  ;;  %v2586_v0 = vpop.eup %2585  ;;  %v3623_v25 = vld [vmem:[%s3942_s2 + $0x48] ss:$12 sps:$4 sm:$0xff]  }
 0x356   :  { %v1079_v29 = vadd.f32 1.0, %v2586_v0  ;;  %v3635_v0 = vld [vmem:[%s3942_s2 + $0x60] ss:$12 sps:$4 sm:$0xff]  }
 0x357   :  { %2587 = vrcp.f32 %v1072_v42  ;;  %v3629_v42 = vld [vmem:[%s3942_s2 + $0x64] ss:$12 sps:$4 sm:$0xff]  }
 0x358   :  { %2589 = vrcp.f32 %v1079_v29  ;;  %v3641_v29 = vld [vmem:[%s3942_s2 + $0x7c] ss:$12 sps:$4 sm:$0xff]  }
 0x359   :  { %4046 = vst [vmem:[#allocation2_spill] sm:$0xff] %v3641_v29 }
 0x361   :  { %v2588_v6 = vpop.eup %2587 }
 0x362   :  { %v2590_v13 = vpop.eup %2589 }
 0x363   :  { %v1085_v14 = vsub.f32 1.0, %v2590_v13  ;;  %v1087_v17 = vmul.f32 %v2590_v13, %v3266_v62  ;;  %v3406_v62 = vld [vmem:[%s3941_s1 + $0x20] ss:$12 sps:$4 sm:$0xff]  }
 0x365   :  { %v981_v53 = vpop.f32.mrb[16].mxu1 }
 0x366   :  { %v2218_v32 = vpop.f32.mrb[17].mxu1  ;;  %v982_v8 = vadd.f32 %v981_v53, %v3151_v63  ;;  %v3580_v53 = vpack.c.bf16 %v1908_v26, %v1908_v26 }
 0x367   :  { %v984_v36 = vpop.f32.mrb[18].mxu1  ;;  %v3586_v32 = vld [vmem:[%s3942_s2] ss:$12 sps:$4 sm:$0xff]  }
 0x368   :  { %v2219_v44 = vpop.f32.mrb[19].mxu1  ;;  %v3593_v36 = vld [vmem:[%s3942_s2 + $0x1c] ss:$12 sps:$4 sm:$0xff]  }
 0x369   :  { %v3605_v44 = vld [vmem:[%s3942_s2 + $0x34] ss:$12 sps:$4 sm:$0xff]  }
 0x385   :  { %v1062_v38 = vpop.f32.mrb[20].mxu1 }
 0x386   :  { %v1063_v3 = vadd.f32 %v1062_v38, %v3149_v39  ;;  %v2238_v4 = vpop.f32.mrb[21].mxu1  ;;  %v3647_v38 = vld [vmem:[%s3942_s2 + $0x78] ss:$12 sps:$4 sm:$0xff]  }
 0x387   :  { %v1065_v7 = vpop.f32.mrb[22].mxu1  ;;  %4047 = vst [vmem:[#allocation3_spill] sm:$0xff] %v3647_v38  ;;  %v3659_v4 = vld [vmem:[%s3942_s2 + $0x90] ss:$12 sps:$4 sm:$0xff]  }
 0x388   :  { %v1082_v10 = vmul.f32 %v2588_v6, %v1063_v3  ;;  %v2239_v11 = vpop.f32.mrb[23].mxu1  ;;  %v3653_v3 = vld [vmem:[%s3942_s2 + $0x94] ss:$12 sps:$4 sm:$0xff]   ;;  %4049 = vst [vmem:[#allocation5_spill] sm:$0xff] %v3659_v4  ;;  %v3665_v6 = vld [vmem:[%s3942_s2 + $0xac] ss:$12 sps:$4 sm:$0xff]  }
 0x389   :  { %4048 = vst [vmem:[#allocation4_spill] sm:$0xff] %v3653_v3  ;;  %4050 = vst [vmem:[#allocation6_spill] sm:$0xff] %v3665_v6  ;;  %v3671_v7 = vld [vmem:[%s3942_s2 + $0xa8] ss:$12 sps:$4 sm:$0xff]  }
 0x38a   :  { %v1083_v12 = vadd.f32 %v1082_v10, %v982_v8  ;;  %4051 = vst [vmem:[#allocation7_spill] sm:$0xff] %v3671_v7 }
 0x38c   :  { %2591 = vtanh.f32 %v1083_v12 }
 0x396   :  { %v2592_v15 = vpop.eup %2591 }
 0x397   :  { %v1086_v16 = vmul.f32 %v2592_v15, %v1085_v14 }
 0x399   :  { %v3382_v18 = vadd.f32 %v1087_v17, %v1086_v16 }
 0x39b   :  { %1901 = vst [vmem:[%s3947_s6 + $0x10] sm:$0xff] %v3382_v18  ;;  %v1091_v19 = vpack.c.bf16 %v3382_v18, %v3382_v18 }
 0x39d   :  { %2257 = vmatmul.mubr.bf16.vlgmr.msra.gmra.mrb[20].mxu0 %v1091_v19  ;;  %1251 = vmatmul.mubr.bf16.vlgmr.msra.gmra.mrb[24].mxu1 %v1091_v19 }
 0x39e   :  { %2261 = vmatpush3.bf16.msra.mxu0 %v3393_v20  ;;  %2276 = vmatprep.mubr.msk.bf16.mxu0 %vm2681_vm0, %v4011_v47 }
 0x39f   :  { %2262 = vmatprep.subr.bf16.mxu0 %v4011_v47  ;;  %2301 = vmatpush3.bf16.msra.mxu1 %v3061_v52  ;;  %v3415_v52 = vld [vmem:[%s3941_s1 + $0x38] ss:$12 sps:$4 sm:$0xff]  }
 0x3a0   :  { %2302 = vmatprep.subr.bf16.mxu1 %v4011_v47  ;;  %2316 = vmatprep.mubr.msk.bf16.mxu1 %vm2681_vm0, %v4011_v47 }
 0x3a2   :  { %2263 = vmatpush3.bf16.msra.mxu0 %v3406_v62 }
 0x3a3   :  { %2264 = vmatprep.subr.bf16.mxu0 %v4011_v47  ;;  %2303 = vmatpush3.bf16.msra.mxu1 %v3074_v55  ;;  %v3433_v55 = vld [vmem:[%s3941_s1 + $0x68] ss:$12 sps:$4 sm:$0xff]  }
 0x3a4   :  { %2304 = vmatprep.subr.bf16.mxu1 %v4011_v47 }
 0x3a6   :  { %2265 = vmatpush3.bf16.msra.mxu0 %v3415_v52 }
 0x3a7   :  { %2266 = vmatprep.subr.bf16.mxu0 %v4011_v47  ;;  %2305 = vmatpush3.bf16.msra.mxu1 %v3084_v56 }
 0x3a8   :  { %2306 = vmatprep.subr.bf16.mxu1 %v4011_v47 }
 0x3aa   :  { %2267 = vmatpush3.bf16.msra.mxu0 %v3424_v21 }
 0x3ab   :  { %2268 = vmatprep.subr.bf16.mxu0 %v4011_v47  ;;  %2307 = vmatpush3.bf16.msra.mxu1 %v3093_v57 }
 0x3ac   :  { %2308 = vmatprep.subr.bf16.mxu1 %v4011_v47 }
 0x3ae   :  { %2269 = vmatpush3.bf16.msra.mxu0 %v3433_v55 }
 0x3af   :  { %2270 = vmatprep.subr.bf16.mxu0 %v4011_v47  ;;  %2309 = vmatpush3.bf16.msra.mxu1 %v3102_v58 }
 0x3b0   :  { %2310 = vmatprep.subr.bf16.mxu1 %v4011_v47 }
 0x3b2   :  { %2271 = vmatpush3.bf16.msra.mxu0 %v3442_v22 }
 0x3b3   :  { %2272 = vmatprep.subr.bf16.mxu0 %v4011_v47  ;;  %2311 = vmatpush3.bf16.msra.mxu1 %v3110_v59 }
 0x3b4   :  { %2312 = vmatprep.subr.bf16.mxu1 %v4011_v47 }
 0x3b6   :  { %2273 = vmatpush3.bf16.msra.mxu0 %v3451_v24 }
 0x3b7   :  { %2274 = vmatprep.subr.bf16.mxu0 %v4011_v47  ;;  %2313 = vmatpush3.bf16.msra.mxu1 %v3119_v60 }
 0x3b8   :  { %2314 = vmatprep.subr.bf16.mxu1 %v4011_v47 }
 0x3ba   :  { %2275 = vmatpush3.bf16.msra.mxu0 %v2898_v31  ;;  %v3483_v31 = vld [vmem:[%s3941_s1] ss:$12 sps:$4 sm:$0xff]  }
 0x3bb   :  { %2280 = vmatprep.subr.bf16.mxu0 %v4011_v47  ;;  %2315 = vmatpush3.bf16.msra.mxu1 %v3128_v61 }
 0x3bc   :  { %2320 = vmatprep.subr.bf16.mxu1 %v4011_v47 }
 0x3bd   :  { %2277 = vmatmul.mubr.bf16.vlgmr.msra.gmra.mrb[24].mxu0 %v3354_v5  ;;  %v3538_v5 = vld [vmem:[%s3941_s1 + $0x7c] ss:$12 sps:$4 sm:$0xff]  }
 0x3be   :  { %2281 = vmatpush3.bf16.msra.mxu0 %v2918_v34  ;;  %2296 = vmatprep.mubr.msk.bf16.mxu0 %vm2681_vm0, %v4011_v47  ;;  %v3490_v34 = vld [vmem:[%s3941_s1 + $0x1c] ss:$12 sps:$4 sm:$0xff]  }
 0x3bf   :  { %2282 = vmatprep.subr.bf16.mxu0 %v4011_v47 }
 0x3c2   :  { %2283 = vmatpush3.bf16.msra.mxu0 %v2937_v37  ;;  %v3496_v37 = vld [vmem:[%s3941_s1 + $0x18] ss:$12 sps:$4 sm:$0xff]  }
 0x3c3   :  { %2284 = vmatprep.subr.bf16.mxu0 %v4011_v47 }
 0x3c6   :  { %2285 = vmatpush3.bf16.msra.mxu0 %v2958_v40  ;;  %v3502_v40 = vld [vmem:[%s3941_s1 + $0x34] ss:$12 sps:$4 sm:$0xff]  }
 0x3c7   :  { %2286 = vmatprep.subr.bf16.mxu0 %v4011_v47 }
 0x3ca   :  { %2287 = vmatpush3.bf16.msra.mxu0 %v2977_v43  ;;  %v3508_v43 = vld [vmem:[%s3941_s1 + $0x30] ss:$12 sps:$4 sm:$0xff]  }
 0x3cb   :  { %2288 = vmatprep.subr.bf16.mxu0 %v4011_v47 }
 0x3ce   :  { %2289 = vmatpush3.bf16.msra.mxu0 %v2996_v46  ;;  %v3514_v46 = vld [vmem:[%s3941_s1 + $0x4c] ss:$12 sps:$4 sm:$0xff]  }
 0x3cf   :  { %2290 = vmatprep.subr.bf16.mxu0 %v4011_v47 }
 0x3d2   :  { %2291 = vmatpush3.bf16.msra.mxu0 %v3015_v49  ;;  %v3520_v49 = vld [vmem:[%s3941_s1 + $0x48] ss:$12 sps:$4 sm:$0xff]  }
 0x3d3   :  { %2292 = vmatprep.subr.bf16.mxu0 %v4011_v47 }
 0x3d6   :  { %2293 = vmatpush3.bf16.msra.mxu0 %v3024_v50  ;;  %v3526_v50 = vld [vmem:[%s3941_s1 + $0x64] ss:$12 sps:$4 sm:$0xff]  }
 0x3d7   :  { %2294 = vmatprep.subr.bf16.mxu0 %v4011_v47 }
 0x3da   :  { %2295 = vmatpush3.bf16.msra.mxu0 %v3033_v51  ;;  %v3532_v51 = vld [vmem:[%s3941_s1 + $0x60] ss:$12 sps:$4 sm:$0xff]  }
 0x3db   :  { %1368 = vmatprep.subr.bf16.mxu0 %v3331_v9 }
 0x3dd   :  { %2297 = vmatmul.mubr.bf16.vlgmr.msra.gmra.mrb[28].mxu0 %v1091_v19 }
 0x3de   :  { %1369 = vmatpush1.bf16.msra.mxu0 %v3483_v31  ;;  %1400 = vmatprep.mubr.bf16.mxu0 %v4012_v54 }
 0x3df   :  { %1370 = vmatprep.subr.bf16.mxu0 %v3490_v34 }
 0x3e2   :  { %1371 = vmatpush1.bf16.msra.mxu0 %v3496_v37 }
 0x3e3   :  { %1372 = vmatprep.subr.bf16.mxu0 %v3502_v40 }
 0x3e6   :  { %1373 = vmatpush1.bf16.msra.mxu0 %v3508_v43 }
 0x3e7   :  { %1374 = vmatprep.subr.bf16.mxu0 %v3514_v46 }
 0x3ea   :  { %1375 = vmatpush1.bf16.msra.mxu0 %v3520_v49 }
 0x3eb   :  { %1376 = vmatprep.subr.bf16.mxu0 %v3526_v50 }
 0x3ee   :  { %1377 = vmatpush1.bf16.msra.mxu0 %v3532_v51 }
 0x3ef   :  { %1378 = vmatprep.subr.bf16.mxu0 %v3538_v5 }
 0x3f2   :  { %1379 = vmatpush1.bf16.msra.mxu0 %v3544_v28 }
 0x3f3   :  { %1380 = vmatprep.subr.bf16.mxu0 %v3550_v45 }
 0x3f6   :  { %1381 = vmatpush1.bf16.msra.mxu0 %v3556_v41 }
 0x3f7   :  { %1382 = vmatprep.subr.bf16.mxu0 %v3562_v33 }
 0x3fa   :  { %1383 = vmatpush1.bf16.msra.mxu0 %v3568_v35 }
 0x3fb   :  { %1449 = vmatprep.subr.bf16.mxu0 %v3574_v27 }
 0x3fd   :  { %1401 = vmatmul.mubr.bf16.vlgmr.msra.gmra.mrb[32].mxu0 %v3580_v53 }
 0x3fe   :  { %1450 = vmatpush1.bf16.msra.mxu0 %v3586_v32  ;;  %1481 = vmatprep.mubr.bf16.mxu0 %v4012_v54 }
 0x3ff   :  { %1451 = vmatprep.subr.bf16.mxu0 %v3593_v36 }
 0x402   :  { %1452 = vmatpush1.bf16.msra.mxu0 %v3599_v48 }
 0x403   :  { %1453 = vmatprep.subr.bf16.mxu0 %v3605_v44 }
 0x406   :  { %1454 = vmatpush1.bf16.msra.mxu0 %v3611_v2 }
 0x407   :  { %1455 = vmatprep.subr.bf16.mxu0 %v3617_v1 }
 0x40a   :  { %1456 = vmatpush1.bf16.msra.mxu0 %v3623_v25 }
 0x40b   :  { %1457 = vmatprep.subr.bf16.mxu0 %v3629_v42 }
 0x40e   :  { %1458 = vmatpush1.bf16.msra.mxu0 %v3635_v0 }
 0x40f   :  { %1459 = vmatprep.subr.bf16.mxu0 %v3641_v29 }
 0x412   :  { %1460 = vmatpush1.bf16.msra.mxu0 %v3647_v38 }
 0x413   :  { %1461 = vmatprep.subr.bf16.mxu0 %v3653_v3 }
 0x416   :  { %1462 = vmatpush1.bf16.msra.mxu0 %v3659_v4 }
 0x417   :  { %1463 = vmatprep.subr.bf16.mxu0 %v3665_v6 }
 0x41a   :  { %1464 = vmatpush1.bf16.msra.mxu0 %v3671_v7 }
 0x41b   :  { %2360 = vmatprep.subr.bf16.mxu0 %v4011_v47 }
 0x470   :  { %v1126_v8 = vpop.f32.mrb[20].mxu0  ;;  %v1252_v10 = vpop.f32.mrb[24].mxu1 }
 0x471   :  { %1902 = vst [vmem:[%s3948_s7 + $0x10] sm:$0xff] %v1126_v8  ;;  %v2258_v11 = vpop.f32.mrb[21].mxu0  ;;  %v1254_v12 = vpop.f32.mrb[25].mxu1  ;;  %v2453_v17 = vadd.f32 %v4045_v30, %v1252_v10 }
 0x472   :  { %v1129_v13 = vpop.f32.mrb[22].mxu0  ;;  %v1256_v14 = vpop.f32.mrb[26].mxu1  ;;  %v2455_v3 = vadd.f32 %v3145_v23, %v1254_v12 }
 0x473   :  { %v2259_v15 = vpop.f32.mrb[23].mxu0  ;;  %v1257_v16 = vpop.f32.mrb[27].mxu1  ;;  %v1904_v7 = vmul.f32 -1.442695, %v2453_v17 }
 0x474   :  { %v1905_v38 = vmul.f32 -1.442695, %v2455_v3 }
 0x475   :  { %2593 = vpow2.f32 %v1904_v7 }
 0x476   :  { %2595 = vpow2.f32 %v1905_v38 }
 0x47f   :  { %v2594_v29 = vpop.eup %2593 }
 0x480   :  { %v1303_v8 = vadd.f32 1.0, %v2594_v29  ;;  %v2596_v11 = vpop.eup %2595 }
 0x481   :  { %v1310_v13 = vadd.f32 1.0, %v2596_v11  ;;  %v3794_v11 = vld [vmem:[%s3942_s2 + $0x98] ss:$12 sps:$4 sm:$0xff]  }
 0x482   :  { %2597 = vrcp.f32 %v1303_v8 }
 0x483   :  { %2599 = vrcp.f32 %v1310_v13  ;;  %v3801_v13 = vld [vmem:[%s3942_s2 + $0xb0] ss:$12 sps:$4 sm:$0xff]  }
 0x48c   :  { %v2598_v10 = vpop.eup %2597 }
 0x48d   :  { %v2600_v3 = vpop.eup %2599 }
 0x48e   :  { %v1316_v12 = vsub.f32 1.0, %v2600_v3 }
 0x490   :  { %v1212_v19 = vpop.f32.mrb[24].mxu0 }
 0x491   :  { %v2278_v26 = vpop.f32.mrb[25].mxu0 }
 0x492   :  { %v1215_v6 = vpop.f32.mrb[26].mxu0  ;;  %v1318_v26 = vmul.f32 %v2600_v3, %v3382_v18  ;;  %v3702_v18 = vld [vmem:[%s3944_s5] sm:$0xff]  }
 0x493   :  { %v2279_v4 = vpop.f32.mrb[27].mxu0  ;;  %v1213_v6 = vadd.f32 %v1212_v19, %v3151_v63  ;;  %v3713_v19 = vld [vmem:[%s3944_s5 + $0x8] sm:$0xff]  }
 0x4b0   :  { %v1293_v14 = vpop.f32.mrb[28].mxu0 }
 0x4b1   :  { %v1294_v15 = vadd.f32 %v1293_v14, %v3149_v39  ;;  %v2298_v16 = vpop.f32.mrb[29].mxu0 }
 0x4b2   :  { %v1296_v30 = vpop.f32.mrb[30].mxu0 }
 0x4b3   :  { %v1313_v4 = vmul.f32 %v2598_v10, %v1294_v15  ;;  %v2299_v7 = vpop.f32.mrb[31].mxu0 }
 0x4b5   :  { %v1314_v17 = vadd.f32 %v1313_v4, %v1213_v6 }
 0x4b7   :  { %2601 = vtanh.f32 %v1314_v17 }
 0x4c1   :  { %v2602_v38 = vpop.eup %2601 }
 0x4c2   :  { %v1317_v29 = vmul.f32 %v2602_v38, %v1316_v12 }
 0x4c4   :  { %v3683_v8 = vadd.f32 %v1318_v26, %v1317_v29 }
 0x4c6   :  { %1906 = vst [vmem:[%s3947_s6 + $0x18] sm:$0xff] %v3683_v8  ;;  %v3691_v30 = vpack.c.bf16 %v3683_v8, %v3683_v8 }
 0x4c8   :  { %2317 = vmatmul.mubr.bf16.vlgmr.msra.gmra.mrb[28].mxu1 %v3691_v30  ;;  %1482 = vmatmul.mubr.bf16.vlgmr.msra.gmra.mrb[32].mxu0 %v3691_v30 }
 0x4c9   :  { %2321 = vmatpush3.bf16.msra.mxu1 %v3393_v20  ;;  %2336 = vmatprep.mubr.msk.bf16.mxu1 %vm2681_vm0, %v4011_v47 }
 0x4ca   :  { %2322 = vmatprep.subr.bf16.mxu1 %v4011_v47  ;;  %2361 = vmatpush3.bf16.msra.mxu0 %v3702_v18 }
 0x4cb   :  { %2362 = vmatprep.subr.bf16.mxu0 %v4011_v47  ;;  %2376 = vmatprep.mubr.msk.bf16.mxu0 %vm2681_vm0, %v4011_v47 }
 0x4cd   :  { %2323 = vmatpush3.bf16.msra.mxu1 %v3406_v62 }
 0x4ce   :  { %2324 = vmatprep.subr.bf16.mxu1 %v4011_v47  ;;  %2363 = vmatpush3.bf16.msra.mxu0 %v3713_v19 }
 0x4cf   :  { %2364 = vmatprep.subr.bf16.mxu0 %v4011_v47 }
 0x4d1   :  { %2325 = vmatpush3.bf16.msra.mxu1 %v3415_v52 }
 0x4d2   :  { %2326 = vmatprep.subr.bf16.mxu1 %v4011_v47  ;;  %2365 = vmatpush3.bf16.msra.mxu0 %v3084_v56  ;;  %v3740_v56 = vld [vmem:[%s3941_s1 + $0xb0] ss:$12 sps:$4 sm:$0xff]  }
 0x4d3   :  { %2366 = vmatprep.subr.bf16.mxu0 %v4011_v47 }
 0x4d5   :  { %2327 = vmatpush3.bf16.msra.mxu1 %v3424_v21 }
 0x4d6   :  { %2328 = vmatprep.subr.bf16.mxu1 %v4011_v47  ;;  %2367 = vmatpush3.bf16.msra.mxu0 %v3093_v57  ;;  %v3750_v57 = vld [vmem:[%s3942_s2 + $0x8] ss:$12 sps:$4 sm:$0xff]  }
 0x4d7   :  { %2368 = vmatprep.subr.bf16.mxu0 %v4011_v47 }
 0x4d9   :  { %2329 = vmatpush3.bf16.msra.mxu1 %v3433_v55 }
 0x4da   :  { %2330 = vmatprep.subr.bf16.mxu1 %v4011_v47  ;;  %2369 = vmatpush3.bf16.msra.mxu0 %v3102_v58  ;;  %v3759_v58 = vld [vmem:[%s3942_s2 + $0x20] ss:$12 sps:$4 sm:$0xff]  }
 0x4db   :  { %2370 = vmatprep.subr.bf16.mxu0 %v4011_v47 }
 0x4dd   :  { %2331 = vmatpush3.bf16.msra.mxu1 %v3442_v22 }
 0x4de   :  { %2332 = vmatprep.subr.bf16.mxu1 %v4011_v47  ;;  %2371 = vmatpush3.bf16.msra.mxu0 %v3110_v59  ;;  %v3766_v59 = vld [vmem:[%s3942_s2 + $0x38] ss:$12 sps:$4 sm:$0xff]  }
 0x4df   :  { %2372 = vmatprep.subr.bf16.mxu0 %v4011_v47 }
 0x4e1   :  { %2333 = vmatpush3.bf16.msra.mxu1 %v3451_v24 }
 0x4e2   :  { %2334 = vmatprep.subr.bf16.mxu1 %v4011_v47  ;;  %2373 = vmatpush3.bf16.msra.mxu0 %v3119_v60  ;;  %v3773_v60 = vld [vmem:[%s3942_s2 + $0x50] ss:$12 sps:$4 sm:$0xff]  }
 0x4e3   :  { %2374 = vmatprep.subr.bf16.mxu0 %v4011_v47 }
 0x4e5   :  { %2335 = vmatpush3.bf16.msra.mxu1 %v3740_v56 }
 0x4e6   :  { %2340 = vmatprep.subr.bf16.mxu1 %v4011_v47  ;;  %2375 = vmatpush3.bf16.msra.mxu0 %v3128_v61  ;;  %v3780_v61 = vld [vmem:[%s3942_s2 + $0x68] ss:$12 sps:$4 sm:$0xff]  }
 0x4e7   :  { %2380 = vmatprep.subr.bf16.mxu0 %v4011_v47 }
 0x4e8   :  { %2337 = vmatmul.mubr.bf16.vlgmr.msra.gmra.mrb[32].mxu1 %v3580_v53  ;;  %v3787_v53 = vld [vmem:[%s3942_s2 + $0x80] ss:$12 sps:$4 sm:$0xff]  }
 0x4e9   :  { %2341 = vmatpush3.bf16.msra.mxu1 %v3750_v57  ;;  %2356 = vmatprep.mubr.msk.bf16.mxu1 %vm2681_vm0, %v4011_v47 }
 0x4ea   :  { %2342 = vmatprep.subr.bf16.mxu1 %v4011_v47 }
 0x4ed   :  { %2343 = vmatpush3.bf16.msra.mxu1 %v3759_v58 }
 0x4ee   :  { %2344 = vmatprep.subr.bf16.mxu1 %v4011_v47 }
 0x4f1   :  { %2345 = vmatpush3.bf16.msra.mxu1 %v3766_v59 }
 0x4f2   :  { %2346 = vmatprep.subr.bf16.mxu1 %v4011_v47 }
 0x4f5   :  { %2347 = vmatpush3.bf16.msra.mxu1 %v3773_v60 }
 0x4f6   :  { %2348 = vmatprep.subr.bf16.mxu1 %v4011_v47 }
 0x4f9   :  { %2349 = vmatpush3.bf16.msra.mxu1 %v3780_v61 }
 0x4fa   :  { %2350 = vmatprep.subr.bf16.mxu1 %v4011_v47 }
 0x4fd   :  { %2351 = vmatpush3.bf16.msra.mxu1 %v3787_v53 }
 0x4fe   :  { %2352 = vmatprep.subr.bf16.mxu1 %v4011_v47 }
 0x501   :  { %2353 = vmatpush3.bf16.msra.mxu1 %v3794_v11 }
 0x502   :  { %2354 = vmatprep.subr.bf16.mxu1 %v4011_v47 }
 0x505   :  { %2355 = vmatpush3.bf16.msra.mxu1 %v3801_v13 }
 0x506   :  { %1599 = vmatprep.subr.bf16.mxu1 %v3331_v9  ;;  %v1913_v9 = vld [vmem:[%s3943_s0 + $0x28] sm:$0xff] }
 0x508   :  { %2357 = vmatmul.mubr.bf16.vlgmr.msra.gmra.mrb[36].mxu1 %v3691_v30 }
 0x509   :  { %1600 = vmatpush1.bf16.msra.mxu1 %v3483_v31  ;;  %1631 = vmatprep.mubr.bf16.mxu1 %v4012_v54  ;;  %v3826_v31 = vpack.c.bf16 %v1913_v9, %v1913_v9 }
 0x50a   :  { %1601 = vmatprep.subr.bf16.mxu1 %v3490_v34  ;;  %v4052_v34 = vld [vmem:[#allocation2_spill] sm:$0xff] }
 0x50d   :  { %1602 = vmatpush1.bf16.msra.mxu1 %v3496_v37  ;;  %v4053_v37 = vld [vmem:[#allocation3_spill] sm:$0xff] }
 0x50e   :  { %1603 = vmatprep.subr.bf16.mxu1 %v3502_v40  ;;  %v4055_v40 = vld [vmem:[#allocation5_spill] sm:$0xff] }
 0x511   :  { %1604 = vmatpush1.bf16.msra.mxu1 %v3508_v43  ;;  %v4056_v43 = vld [vmem:[#allocation6_spill] sm:$0xff] }
 0x512   :  { %1605 = vmatprep.subr.bf16.mxu1 %v3514_v46  ;;  %v4057_v46 = vld [vmem:[#allocation7_spill] sm:$0xff] }
 0x515   :  { %1606 = vmatpush1.bf16.msra.mxu1 %v3520_v49 }
 0x516   :  { %1607 = vmatprep.subr.bf16.mxu1 %v3526_v50 }
 0x519   :  { %1608 = vmatpush1.bf16.msra.mxu1 %v3532_v51 }
 0x51a   :  { %1609 = vmatprep.subr.bf16.mxu1 %v3538_v5 }
 0x51d   :  { %1610 = vmatpush1.bf16.msra.mxu1 %v3544_v28 }
 0x51e   :  { %1611 = vmatprep.subr.bf16.mxu1 %v3550_v45 }
 0x521   :  { %1612 = vmatpush1.bf16.msra.mxu1 %v3556_v41 }
 0x522   :  { %1613 = vmatprep.subr.bf16.mxu1 %v3562_v33 }
 0x525   :  { %1614 = vmatpush1.bf16.msra.mxu1 %v3568_v35  ;;  %v4058_v35 = vld [vmem:[#allocation18_spill] sm:$0xff] }
 0x526   :  { %1680 = vmatprep.subr.bf16.mxu1 %v3574_v27 }
 0x528   :  { %1632 = vmatmul.mubr.bf16.vlgmr.msra.gmra.mrb[40].mxu1 %v3826_v31 }
 0x529   :  { %1681 = vmatpush1.bf16.msra.mxu1 %v3586_v32  ;;  %1712 = vmatprep.mubr.bf16.mxu1 %v4012_v54  ;;  %v4054_v54 = vld [vmem:[#allocation4_spill] sm:$0xff] }
 0x52a   :  { %1682 = vmatprep.subr.bf16.mxu1 %v3593_v36 }
 0x52d   :  { %1683 = vmatpush1.bf16.msra.mxu1 %v3599_v48 }
 0x52e   :  { %1684 = vmatprep.subr.bf16.mxu1 %v3605_v44 }
 0x531   :  { %1685 = vmatpush1.bf16.msra.mxu1 %v3611_v2 }
 0x532   :  { %1686 = vmatprep.subr.bf16.mxu1 %v3617_v1 }
 0x535   :  { %1687 = vmatpush1.bf16.msra.mxu1 %v3623_v25 }
 0x536   :  { %1688 = vmatprep.subr.bf16.mxu1 %v3629_v42 }
 0x539   :  { %1689 = vmatpush1.bf16.msra.mxu1 %v3635_v0 }
 0x53a   :  { %1690 = vmatprep.subr.bf16.mxu1 %v4052_v34 }
 0x53d   :  { %1691 = vmatpush1.bf16.msra.mxu1 %v4053_v37 }
 0x53e   :  { %1692 = vmatprep.subr.bf16.mxu1 %v4054_v54 }
 0x541   :  { %1693 = vmatpush1.bf16.msra.mxu1 %v4055_v40 }
 0x542   :  { %1694 = vmatprep.subr.bf16.mxu1 %v4056_v43 }
 0x545   :  { %1695 = vmatpush1.bf16.msra.mxu1 %v4057_v46 }
 0x546   :  { %2420 = vmatprep.subr.bf16.mxu1 %v4011_v47 }
 0x59b   :  { %v1357_v49 = vpop.f32.mrb[28].mxu1  ;;  %v1483_v50 = vpop.f32.mrb[32].mxu0 }
 0x59c   :  { %1907 = vst [vmem:[%s3948_s7 + $0x18] sm:$0xff] %v1357_v49  ;;  %v2318_v51 = vpop.f32.mrb[29].mxu1  ;;  %v1485_v5 = vpop.f32.mrb[33].mxu0  ;;  %v2457_v27 = vadd.f32 %v4058_v35, %v1483_v50 }
 0x59d   :  { %v1360_v28 = vpop.f32.mrb[30].mxu1  ;;  %v1487_v45 = vpop.f32.mrb[34].mxu0  ;;  %v2459_v1 = vadd.f32 %v3145_v23, %v1485_v5 }
 0x59e   :  { %v2319_v41 = vpop.f32.mrb[31].mxu1  ;;  %v1488_v33 = vpop.f32.mrb[35].mxu0  ;;  %v1909_v44 = vmul.f32 -1.442695, %v2457_v27 }
 0x59f   :  { %v1910_v25 = vmul.f32 -1.442695, %v2459_v1 }
 0x5a0   :  { %2603 = vpow2.f32 %v1909_v44 }
 0x5a1   :  { %2605 = vpow2.f32 %v1910_v25 }
 0x5aa   :  { %v2604_v42 = vpop.eup %2603 }
 0x5ab   :  { %v1534_v0 = vadd.f32 1.0, %v2604_v42  ;;  %v2606_v14 = vpop.eup %2605 }
 0x5ac   :  { %v1541_v15 = vadd.f32 1.0, %v2606_v14 }
 0x5ad   :  { %2607 = vrcp.f32 %v1534_v0 }
 0x5ae   :  { %2609 = vrcp.f32 %v1541_v15 }
 0x5b7   :  { %v2608_v4 = vpop.eup %2607 }
 0x5b8   :  { %v2610_v29 = vpop.eup %2609 }
 0x5b9   :  { %v1547_v26 = vsub.f32 1.0, %v2610_v29  ;;  %v1549_v34 = vmul.f32 %v2610_v29, %v3683_v8 }
 0x5bb   :  { %v1443_v32 = vpop.f32.mrb[32].mxu1 }
 0x5bc   :  { %v2338_v36 = vpop.f32.mrb[33].mxu1  ;;  %v1444_v17 = vadd.f32 %v1443_v32, %v3151_v63 }
 0x5bd   :  { %v1446_v48 = vpop.f32.mrb[34].mxu1 }
 0x5be   :  { %v2339_v2 = vpop.f32.mrb[35].mxu1 }
 0x5db   :  { %v1524_v16 = vpop.f32.mrb[36].mxu1 }
 0x5dc   :  { %v1525_v10 = vadd.f32 %v1524_v16, %v3149_v39  ;;  %v2358_v6 = vpop.f32.mrb[37].mxu1 }
 0x5dd   :  { %v1527_v7 = vpop.f32.mrb[38].mxu1 }
 0x5de   :  { %v1544_v3 = vmul.f32 %v2608_v4, %v1525_v10  ;;  %v2359_v12 = vpop.f32.mrb[39].mxu1 }
 0x5e0   :  { %v1545_v38 = vadd.f32 %v1544_v3, %v1444_v17 }
 0x5e2   :  { %2611 = vtanh.f32 %v1545_v38 }
 0x5ec   :  { %v2612_v30 = vpop.eup %2611 }
 0x5ed   :  { %v1548_v9 = vmul.f32 %v2612_v30, %v1547_v26 }
 0x5ef   :  { %v3854_v37 = vadd.f32 %v1549_v34, %v1548_v9 }
 0x5f1   :  { %1911 = vst [vmem:[%s3947_s6 + $0x20] sm:$0xff] %v3854_v37  ;;  %v1553_v54 = vpack.c.bf16 %v3854_v37, %v3854_v37 }
 0x5f3   :  { %2377 = vmatmul.mubr.bf16.vlgmr.msra.gmra.mrb[36].mxu0 %v1553_v54  ;;  %1713 = vmatmul.mubr.bf16.vlgmr.msra.gmra.mrb[40].mxu1 %v1553_v54 }
 0x5f4   :  { %2381 = vmatpush3.bf16.msra.mxu0 %v3393_v20  ;;  %2396 = vmatprep.mubr.msk.bf16.mxu0 %vm2681_vm0, %v4011_v47  ;;  %v2673_v20 = vld [vmem:[%s3944_s5 + $0x10] sm:$0xff]  }
 0x5f5   :  { %2382 = vmatprep.subr.bf16.mxu0 %v4011_v47  ;;  %2421 = vmatpush3.bf16.msra.mxu1 %v3702_v18 }
 0x5f6   :  { %2422 = vmatprep.subr.bf16.mxu1 %v4011_v47  ;;  %2436 = vmatprep.mubr.msk.bf16.mxu1 %vm2681_vm0, %v4011_v47 }
 0x5f8   :  { %2383 = vmatpush3.bf16.msra.mxu0 %v3406_v62  ;;  %v2674_v62 = vld [vmem:[%s3944_s5 + $0x18] sm:$0xff]  }
 0x5f9   :  { %2384 = vmatprep.subr.bf16.mxu0 %v4011_v47  ;;  %2423 = vmatpush3.bf16.msra.mxu1 %v3713_v19 }
 0x5fa   :  { %2424 = vmatprep.subr.bf16.mxu1 %v4011_v47 }
 0x5fc   :  { %2385 = vmatpush3.bf16.msra.mxu0 %v3415_v52  ;;  %v2675_v52 = vld [vmem:[%s3944_s5 + $0x20] sm:$0xff]  }
 0x5fd   :  { %2386 = vmatprep.subr.bf16.mxu0 %v4011_v47  ;;  %2425 = vmatpush3.bf16.msra.mxu1 %v2673_v20 }
 0x5fe   :  { %2426 = vmatprep.subr.bf16.mxu1 %v4011_v47 }
 0x600   :  { %2387 = vmatpush3.bf16.msra.mxu0 %v3424_v21  ;;  %v2676_v21 = vld [vmem:[%s3944_s5 + $0x28] sm:$0xff]  }
 0x601   :  { %2388 = vmatprep.subr.bf16.mxu0 %v4011_v47  ;;  %2427 = vmatpush3.bf16.msra.mxu1 %v2674_v62 }
 0x602   :  { %2428 = vmatprep.subr.bf16.mxu1 %v4011_v47 }
 0x604   :  { %2389 = vmatpush3.bf16.msra.mxu0 %v3433_v55  ;;  %v2677_v55 = vld [vmem:[%s3944_s5 + $0x30] sm:$0xff]  }
 0x605   :  { %2390 = vmatprep.subr.bf16.mxu0 %v4011_v47  ;;  %2429 = vmatpush3.bf16.msra.mxu1 %v2675_v52 }
 0x606   :  { %2430 = vmatprep.subr.bf16.mxu1 %v4011_v47 }
 0x608   :  { %2391 = vmatpush3.bf16.msra.mxu0 %v3442_v22  ;;  %v2678_v22 = vld [vmem:[%s3944_s5 + $0x38] sm:$0xff]  }
 0x609   :  { %2392 = vmatprep.subr.bf16.mxu0 %v4011_v47  ;;  %2431 = vmatpush3.bf16.msra.mxu1 %v2676_v21 }
 0x60a   :  { %2432 = vmatprep.subr.bf16.mxu1 %v4011_v47 }
 0x60c   :  { %2393 = vmatpush3.bf16.msra.mxu0 %v3451_v24 }
 0x60d   :  { %2394 = vmatprep.subr.bf16.mxu0 %v4011_v47  ;;  %2433 = vmatpush3.bf16.msra.mxu1 %v2677_v55 }
 0x60e   :  { %2434 = vmatprep.subr.bf16.mxu1 %v4011_v47 }
 0x610   :  { %2395 = vmatpush3.bf16.msra.mxu0 %v3740_v56 }
 0x611   :  { %2400 = vmatprep.subr.bf16.mxu0 %v4011_v47  ;;  %2435 = vmatpush3.bf16.msra.mxu1 %v2678_v22 }
 0x613   :  { %2397 = vmatmul.mubr.bf16.vlgmr.msra.gmra.mrb[40].mxu0 %v3826_v31 }
 0x614   :  { %2401 = vmatpush3.bf16.msra.mxu0 %v3750_v57  ;;  %2416 = vmatprep.mubr.msk.bf16.mxu0 %vm2681_vm0, %v4011_v47 }
 0x615   :  { %2402 = vmatprep.subr.bf16.mxu0 %v4011_v47 }
 0x618   :  { %2403 = vmatpush3.bf16.msra.mxu0 %v3759_v58 }
 0x619   :  { %2404 = vmatprep.subr.bf16.mxu0 %v4011_v47 }
 0x61c   :  { %2405 = vmatpush3.bf16.msra.mxu0 %v3766_v59 }
 0x61d   :  { %2406 = vmatprep.subr.bf16.mxu0 %v4011_v47 }
 0x620   :  { %2407 = vmatpush3.bf16.msra.mxu0 %v3773_v60 }
 0x621   :  { %2408 = vmatprep.subr.bf16.mxu0 %v4011_v47 }
 0x624   :  { %2409 = vmatpush3.bf16.msra.mxu0 %v3780_v61 }
 0x625   :  { %2410 = vmatprep.subr.bf16.mxu0 %v4011_v47 }
 0x628   :  { %2411 = vmatpush3.bf16.msra.mxu0 %v3787_v53 }
 0x629   :  { %2412 = vmatprep.subr.bf16.mxu0 %v4011_v47 }
 0x62c   :  { %2413 = vmatpush3.bf16.msra.mxu0 %v3794_v11 }
 0x62d   :  { %2414 = vmatprep.subr.bf16.mxu0 %v4011_v47 }
 0x630   :  { %2415 = vmatpush3.bf16.msra.mxu0 %v3801_v13 }
 0x633   :  { %2417 = vmatmul.mubr.bf16.vlgmr.msra.gmra.mrb[44].mxu0 %v1553_v54 }
 0x6c6   :  { %v1588_v24 = vpop.f32.mrb[36].mxu0  ;;  %v1714_v8 = vpop.f32.mrb[40].mxu1 }
 0x6c7   :  { %1912 = vst [vmem:[%s3948_s7 + $0x20] sm:$0xff] %v1588_v24  ;;  %v2378_v18 = vpop.f32.mrb[37].mxu0  ;;  %v1716_v19 = vpop.f32.mrb[41].mxu1  ;;  %v2461_v60 = vadd.f32 %v4058_v35, %v1714_v8 }
 0x6c8   :  { %v1591_v56 = vpop.f32.mrb[38].mxu0  ;;  %v1718_v57 = vpop.f32.mrb[42].mxu1  ;;  %v2463_v31 = vadd.f32 %v3145_v23, %v1716_v19 }
 0x6c9   :  { %v2379_v58 = vpop.f32.mrb[39].mxu0  ;;  %v1719_v59 = vpop.f32.mrb[43].mxu1  ;;  %v1914_v11 = vmul.f32 -1.442695, %v2461_v60 }
 0x6ca   :  { %v1915_v40 = vmul.f32 -1.442695, %v2463_v31 }
 0x6cb   :  { %2613 = vpow2.f32 %v1914_v11 }
 0x6cc   :  { %2615 = vpow2.f32 %v1915_v40 }
 0x6d5   :  { %v2614_v43 = vpop.eup %2613 }
 0x6d6   :  { %v1765_v46 = vadd.f32 1.0, %v2614_v43  ;;  %v2616_v49 = vpop.eup %2615 }
 0x6d7   :  { %v1772_v50 = vadd.f32 1.0, %v2616_v49 }
 0x6d8   :  { %2617 = vrcp.f32 %v1765_v46 }
 0x6d9   :  { %2619 = vrcp.f32 %v1772_v50 }
 0x6e2   :  { %v2618_v45 = vpop.eup %2617 }
 0x6e3   :  { %v2620_v23 = vpop.eup %2619 }
 0x6e4   :  { %v1778_v36 = vsub.f32 1.0, %v2620_v23  ;;  %v1780_v2 = vmul.f32 %v2620_v23, %v3854_v37 }
 0x6e6   :  { %v1674_v61 = vpop.f32.mrb[40].mxu0 }
 0x6e7   :  { %v2398_v53 = vpop.f32.mrb[41].mxu0  ;;  %v1675_v33 = vadd.f32 %v1674_v61, %v3151_v63 }
 0x6e8   :  { %v1677_v47 = vpop.f32.mrb[42].mxu0 }
 0x6e9   :  { %v2399_v13 = vpop.f32.mrb[43].mxu0 }
 0x706   :  { %v1755_v51 = vpop.f32.mrb[44].mxu0 }
 0x707   :  { %v1756_v5 = vadd.f32 %v1755_v51, %v3149_v39  ;;  %v2418_v28 = vpop.f32.mrb[45].mxu0 }
 0x708   :  { %v1758_v41 = vpop.f32.mrb[46].mxu0 }
 0x709   :  { %v1775_v35 = vmul.f32 %v2618_v45, %v1756_v5  ;;  %v2419_v27 = vpop.f32.mrb[47].mxu0 }
 0x70b   :  { %v1776_v32 = vadd.f32 %v1775_v35, %v1675_v33 }
 0x70d   :  { %2621 = vtanh.f32 %v1776_v32 }
 0x717   :  { %v2622_v48 = vpop.eup %2621 }
 0x718   :  { %v1779_v44 = vmul.f32 %v2622_v48, %v1778_v36 }
 0x71a   :  { %v1781_v1 = vadd.f32 %v1780_v2, %v1779_v44 }
 0x71c   :  { %1916 = vst [vmem:[%s3947_s6 + $0x28] sm:$0xff] %v1781_v1  ;;  %v1784_v39 = vpack.c.bf16 %v1781_v1, %v1781_v1 }
 0x71e   :  { %2437 = vmatmul.mubr.bf16.vlgmr.msra.gmra.mrb[44].mxu1 %v1784_v39 }
 0x7f1   :  { %v1819_v25 = vpop.f32.mrb[44].mxu1 }
 0x7f2   :  { %1917 = vst [vmem:[%s3948_s7 + $0x28] sm:$0xff] %v1819_v25  ;;  %v2438_v63 = vpop.f32.mrb[45].mxu1 }
 0x7f3   :  { %v1822_v42 = vpop.f32.mrb[46].mxu1 }
 0x7f4   :  { %v2439_v0 = vpop.f32.mrb[47].mxu1 }

// kernel: attention_forward.3
= control target key start
LH: loop header
LB: loop body
LE: loop exit
PB: predicated region body
PF: predicated region fallthrough
CT: control target
= control target key end

     0   :  { %s3317_s0 = inlined_call_operand.vmem [shape: s32[4], index: 0, kind: input, shape index: {}]   ;;  %s3318_s1 = inlined_call_operand.vmem [shape: s32[4,8,1], index: 1, kind: input, shape index: {}]   ;;  %s3319_s2 = inlined_call_operand.vmem [shape: f32[6,8,128], index: 2, kind: input, shape index: {}]   ;;  %s3320_s3 = inlined_call_operand.vmem [shape: f32[6,8,128], index: 3, kind: input, shape index: {}]   ;;  %s3321_s4 = inlined_call_operand.vmem [shape: bf16[128,128], index: 4, kind: input, shape index: {}]   ;;  %s3322_s5 = inlined_call_operand.vmem [shape: bf16[128,128], index: 5, kind: input, shape index: {}]   ;;  %s3323_s6 = inlined_call_operand.vmem [shape: f32[1,128], index: 6, kind: input, shape index: {}]   ;;  %s3324_s7 = inlined_call_operand.hbm [shape: f32[1,128], index: 7, kind: input, shape index: {}]   ;;  %s3325_s8 = inlined_call_operand.vmem [shape: bf16[256,384], index: 8, kind: input, shape index: {}]   ;;  %s3326_s9 = inlined_call_operand.vmem [shape: bf16[128,384], index: 9, kind: input, shape index: {}]   ;;  %s3327_s10 = inlined_call_operand.hbm [shape: f32[1,384], index: 10, kind: input, shape index: {}]   ;;  %s3328_s11 = inlined_call_operand.hbm [shape: f32[1,384], index: 11, kind: input, shape index: {}]   ;;  %s3329_s12 = inlined_call_operand.hbm [shape: bf16[384,128], index: 12, kind: input, shape index: {}]   ;;  %s3330_s13 = inlined_call_operand.hbm [shape: f32[1,128], index: 13, kind: input, shape index: {}]   ;;  %s3331_s14 = inlined_call_operand.vmem [shape: f32[4,8,128], index: 14, kind: output, shape index: {}]  }
   0x1   :  { %3335 = sst [smem:[#allocation19_spill]] %s3327_s10  ;;  %s19_s15 = sshll.u32 %s3317_s0, 4  ;;  %s20_s15 = int_to_ptr.vmem [resolvable:$true] %s19_s15 }
   0x2   :  { %s2502_s16 = scalar_lea.vmem %s20_s15, 16  ;;  %p2507_p1 = scmp.lt.s32.totalorder %s20_s15, %s20_s15 }
   0x3   :  { %p2503_p0 = scmp.ne.s32.totalorder %s20_s15, %s2502_s16  ;;  %p2508_p2 = scmp.lt.s32.totalorder %s2502_s16, %s2502_s16 }
   0x5   :  { %p2509_p3 = por %p2508_p2, %p2507_p1 }
   0x7   :  { %p2510_p4 = pnand %p2509_p3, %p2503_p0 }
   0x9   :  { %2513 = shalt.err (!%p2510_p4)  }
   0xa   :  { %s2676_s17 = smov [#allocation5]  }
   0xb   :  { %22 = dma.vmem_to_smem %s20_s15, 16, %s2676_s17, [#allocation4] }
   0xc   :  { %2658 = dma.done.wait [#allocation4], 16 }
   0xd   :  { %2659 = vsyncadd [#allocation4], 4294967280 }
   0xe   :  { %24 = sfence }
   0xf   :  { %25 = vsyncpa [#allocation7], 0 }
  0x10   :  { %26 = vsyncpa [#allocation9], 0 }
  0x11   :  { %27 = vsyncpa [#allocation12], 0  ;;  %s2767_s18 = smov 0  }
  0x12 LB: > { %3336 = sst [smem:[#allocation18_spill]] %s2674_s18  ;;  %s2677_s0 = smov [#allocation8]   ;;  %s2674_s18 = sphi %s2767_s18, %s33_s18  }
  0x13   : > { %s387_s19 = sshll.u32 %s2677_s0, 4  ;;  %s2773_s20 = sadd.s32 4294967295, %s2674_s18   ;;  %s2779_s19 = int_to_ptr.vmem [resolvable:$true] %s387_s19 }
  0x14   : > { %p1952_p5 = scmp.ge.s32.totalorder %s2674_s18, 1  ;;  %p342_p6 = scmp.lt.s32.totalorder %s2674_s18, 5 }
  0x15   : > { %p3333_p8 = scmp.eq.s32.totalorder %s2773_s20, 0  ;;  %s2678_s22 = smov [#allocation11]  }
  0x16   : > { %p2781_p9 = pnand %p1952_p5, %p342_p6  ;;  %s408_s23 = sshll.u32 %s2678_s22, 4  ;;  %s2787_s23 = int_to_ptr.vmem [resolvable:$true] %s408_s23 }
  0x17   : > { %s2679_s25 = smov [#allocation6]   ;;  %s2680_s27 = smov [#allocation10]  }
  0x18   : > { %s3337_s21 = scalar_select %p2781_p9, 1, 0 }
  0x19   : > { %p2281_p10 = pneg %p2781_p9  ;;  %s370_s26 = sshll.u32 %s2679_s25, 4  ;;  %s2795_s26 = int_to_ptr.vmem [resolvable:$true] %s370_s26 }
  0x1a   : > { %s2797_s28 = sshll.u32 %s2680_s27, 4  ;;  %s3339_s10 = sld [smem:[#allocation19_spill]]  ;;  %s399_s28 = int_to_ptr.vmem [resolvable:$true] %s2797_s28 }
  0x1b   : > { %p2791_p11 = pnand %p3333_p8, %p2281_p10 }
  0x1d   : > { %p2807_p13 = pneg %p2791_p11 }
  0x20   : > { %s2514_s15 = scalar_lea.hbm %s3339_s10, 48 }
  0x21   : > { %p2515_p12 = scmp.ne.s32.totalorder %s3339_s10, %s2514_s15  ;;  %p2521_p2 = scmp.lt.u32.totalorder %s2514_s15, %s3339_s10 }
  0x23   : > { %p2517_p0 = pnand %p2807_p13, %p2515_p12 }
  0x25   : > { %p2518_p1 = pneg %p2517_p0 }
  0x27   : > { %p2523_p3 = pnand %p2521_p2, %p2518_p1 }
  0x29   : > { %2526 = shalt.err (!%p2523_p3)
}
  0x2a   : > { %s2527_s27 = scalar_lea.vmem %s2779_s19, 48  ;;  %s2534_s29 = scalar_lea.vmem %s2779_s19, 64 }
  0x2b   : > { %p2528_p4 = scmp.ne.s32.totalorder %s2779_s19, %s2527_s27  ;;  %p2535_p10 = scmp.lt.s32.totalorder %s2779_s19, %s2779_s19 }
  0x2c   : > { %p2536_p12 = scmp.lt.s32.totalorder %s2534_s29, %s2527_s27 }
  0x2d   : > { %p2530_p5 = pnand %p2528_p4, %p2807_p13 }
  0x2e   : > { %p2537_p0 = por %p2536_p12, %p2535_p10 }
  0x2f   : > { %p2531_p6 = pneg %p2530_p5 }
  0x31   : > { %p2538_p7 = pnand %p2537_p0, %p2531_p6 }
  0x33   : > { %2541 = shalt.err (!%p2538_p7)
}
  0x34   : > { %2287 = dma.hbm_to_vmem [thread:$0]  (!%p2791_p11), %s3339_s10, 48, %s2779_s19, [#allocation9]  }
  0x35   : > { %s2542_s22 = scalar_lea.hbm %s3329_s12, 3072 }
  0x36   : > { %p2543_p1 = scmp.ne.s32.totalorder %s3329_s12, %s2542_s22  ;;  %p2549_p7 = scmp.lt.u32.totalorder %s2542_s22, %s3329_s12 }
  0x38   : > { %p2545_p2 = pnand %p2543_p1, %p2807_p13 }
  0x3a   : > { %p2546_p3 = pneg %p2545_p2 }
  0x3c   : > { %p2551_p4 = pnand %p2549_p7, %p2546_p3 }
  0x3e   : > { %2554 = shalt.err (!%p2551_p4)
}
  0x3f   : > { %s2555_s19 = scalar_lea.vmem %s2787_s23, 3072  ;;  %p2563_p12 = scmp.lt.s32.totalorder %s2787_s23, %s2787_s23 }
  0x40   : > { %p2556_p5 = scmp.ne.s32.totalorder %s2787_s23, %s2555_s19  ;;  %p2564_p0 = scmp.lt.s32.totalorder %s2555_s19, %s2555_s19 }
  0x42   : > { %p2558_p6 = pnand %p2556_p5, %p2807_p13  ;;  %p2565_p1 = por %p2564_p0, %p2563_p12 }
  0x44   : > { %p2559_p10 = pneg %p2558_p6 }
  0x46   : > { %p2566_p2 = pnand %p2565_p1, %p2559_p10 }
  0x48   : > { %2569 = shalt.err (!%p2566_p2)
}
  0x49   : > { %s2681_s18 = smov 64   ;;  %s2682_s30 = smov 4  }
  0x4a   : > { %2293 = dma.hbm_to_vmem [thread:$0]  (!%p2791_p11), %s3329_s12, 3072, %s2787_s23, [#allocation12], %s2681_s18, %s2681_s18, %s2682_s30  }
  0x4b   : > { %s2570_s25 = scalar_lea.hbm %s3324_s7, 16 }
  0x4c   : > { %p2571_p3 = scmp.ne.s32.totalorder %s3324_s7, %s2570_s25  ;;  %p2577_p5 = scmp.lt.u32.totalorder %s2570_s25, %s3324_s7 }
  0x4e   : > { %p2573_p7 = pnand %p2571_p3, %p2807_p13 }
  0x50   : > { %p2574_p4 = pneg %p2573_p7 }
  0x52   : > { %p2579_p6 = pnand %p2577_p5, %p2574_p4 }
  0x54   : > { %2582 = shalt.err (!%p2579_p6)
}
  0x55   : > { %s2583_s23 = scalar_lea.vmem %s2795_s26, 16  ;;  %s2590_s18 = scalar_lea.vmem %s2795_s26, 32 }
  0x56   : > { %p2584_p10 = scmp.ne.s32.totalorder %s2795_s26, %s2583_s23  ;;  %p2591_p1 = scmp.lt.s32.totalorder %s2795_s26, %s2795_s26 }
  0x57   : > { %p2592_p2 = scmp.lt.s32.totalorder %s2590_s18, %s2583_s23 }
  0x58   : > { %p2586_p12 = pnand %p2584_p10, %p2807_p13 }
  0x59   : > { %p2593_p3 = por %p2592_p2, %p2591_p1 }
  0x5a   : > { %p2587_p0 = pneg %p2586_p12 }
  0x5c   : > { %p2594_p7 = pnand %p2593_p3, %p2587_p0 }
  0x5e   : > { %2597 = shalt.err (!%p2594_p7)
}
  0x5f   : > { %2284 = dma.hbm_to_vmem [thread:$0]  (!%p2791_p11), %s3324_s7, 16, %s2795_s26, [#allocation7]  }
  0x60   : > { %s2598_s17 = scalar_lea.hbm %s3328_s11, 48 }
  0x61   : > { %p2599_p4 = scmp.ne.s32.totalorder %s3328_s11, %s2598_s17  ;;  %p2605_p10 = scmp.lt.u32.totalorder %s2598_s17, %s3328_s11 }
  0x63   : > { %p2601_p5 = pnand %p2599_p4, %p2807_p13 }
  0x65   : > { %p2602_p6 = pneg %p2601_p5 }
  0x67   : > { %p2607_p12 = pnand %p2605_p10, %p2602_p6 }
  0x69   : > { %2610 = shalt.err (!%p2607_p12)
}
  0x6a   : > { %s2611_s19 = scalar_lea.vmem %s399_s28, 48  ;;  %s2618_s26 = scalar_lea.vmem %s399_s28, 64 }
  0x6b   : > { %p2612_p0 = scmp.ne.s32.totalorder %s399_s28, %s2611_s19  ;;  %p2619_p3 = scmp.lt.s32.totalorder %s399_s28, %s399_s28 }
  0x6c   : > { %p2620_p7 = scmp.lt.s32.totalorder %s2618_s26, %s2611_s19 }
  0x6d   : > { %p2614_p1 = pnand %p2612_p0, %p2807_p13 }
  0x6e   : > { %p2621_p8 = por %p2620_p7, %p2619_p3 }
  0x6f   : > { %p2615_p2 = pneg %p2614_p1 }
  0x71   : > { %p2622_p9 = pnand %p2621_p8, %p2615_p2 }
  0x73   : > { %2625 = shalt.err (!%p2622_p9)
}
  0x74   : > { %2290 = dma.hbm_to_vmem [thread:$0]  (!%p2791_p11), %s3328_s11, 48, %s399_s28, [#allocation9]  }
  0x75   : > { %s2683_s10 = smov [#allocation13]   ;;  %s2626_s17 = scalar_lea.hbm %s3330_s13, 16 }
  0x76   : > { %s422_s30 = sshll.u32 %s2683_s10, 4  ;;  %p2627_p4 = scmp.ne.s32.totalorder %s3330_s13, %s2626_s17  ;;  %s423_s30 = int_to_ptr.vmem [resolvable:$true] %s422_s30 }
  0x77   : > { %p2633_p5 = scmp.lt.u32.totalorder %s2626_s17, %s3330_s13 }
  0x78   : > { %p2629_p8 = pnand %p2627_p4, %p2807_p13 }
  0x7a   : > { %p2630_p9 = pneg %p2629_p8 }
  0x7c   : > { %p2635_p6 = pnand %p2633_p5, %p2630_p9 }
  0x7e   : > { %2638 = shalt.err (!%p2635_p6)
}
  0x7f   : > { %s2639_s28 = scalar_lea.vmem %s423_s30, 16  ;;  %s2646_s19 = scalar_lea.vmem %s423_s30, 32 }
  0x80   : > { %p2640_p10 = scmp.ne.s32.totalorder %s423_s30, %s2639_s28  ;;  %p2647_p1 = scmp.lt.s32.totalorder %s423_s30, %s423_s30 }
  0x81   : > { %p2648_p2 = scmp.lt.s32.totalorder %s2646_s19, %s2639_s28 }
  0x82   : > { %p2642_p12 = pnand %p2640_p10, %p2807_p13 }
  0x83   : > { %p2649_p3 = por %p2648_p2, %p2647_p1 }
  0x84   : > { %p2643_p0 = pneg %p2642_p12 }
  0x86   : > { %p2650_p7 = pnand %p2649_p3, %p2643_p0 }
  0x88   : > { %2653 = shalt.err (!%p2650_p7)
}
  0x89   : > { %2296 = dma.hbm_to_vmem [thread:$0]  (!%p2791_p11), %s3330_s13, 16, %s423_s30, [#allocation12]  }
  0x8a   : > { %p3341_p4 = scmp.ne.s32.totalorder %s3337_s21, 0 }
  0x8b   : > { %p3342_p8 = scmp.eq.s32.totalorder (!%p3341_p4), %s2773_s20, 0 }
  0x8c   : > { %442 = sbr.rel (%p3341_p4) target bundleno = 1459 (0x5b3), region = 72 }
  0x93   : > { %2661 = dma.done.wait (%p3342_p8), [#allocation7], 16   ;;  %p3343_p13 = pmov %p3342_p8 }
  0x94   : > { %p3344_p9 = pmov %p3342_p8 }
  0x95   : > { %2663 = vsyncadd (%p3343_p13), [#allocation7], 4294967280 }
  0x96   : > { %2665 = dma.done.wait (%p3344_p9), [#allocation9], 96   ;;  %p3345_p5 = pmov %p3342_p8 }
  0x98   : > { %2667 = vsyncadd (%p3345_p5), [#allocation9], 4294967200  ;;  %p3346_p6 = pmov %p3345_p5 }
  0x99   : > { %p3347_p11 = pmov %p3345_p5 }
  0x9a   : > { %2669 = dma.done.wait (%p3346_p6), [#allocation12], 3088  }
  0x9b   : > { %2671 = vsyncadd (%p3347_p11), [#allocation12], 4294964208  ;;  %p500_p10 = scmp.lt.s32.totalorder %s2773_s20, 3  ;;  %p3348_p12 = scmp.ne.s32.totalorder %s2773_s20, 0 }
  0x9c   : > { %vm515_vm0 = vcmask (!%p3348_p12), 7168   ;;  %v2684_v1 = vmov (!%p3348_p12), 0.0  }
  0x9d   : > { %s501_s21 = scalar_select %p500_p10, %s2773_s20, 3 }
  0x9e   : > { %512 = sbr.rel (%p3348_p12) target bundleno = 165 (0xa5), region = 96  ;;  %513 = vst [vmem:[#allocation2] sm:$0xff] (!%p3348_p12), %v2684_v1 }
  0x9f   : > { %s1965_s24 = sshll.u32 %s501_s21, 3 }
  0xa0   : > { %s503_s10 = scalar_lea.vmem %s3318_s1, %s1965_s24  ;;  %s2935_s16 = scalar_lea.vmem %s3331_s14, %s1965_s24 }
  0xa1   : > { %v514_v0 = vld [vmem:[%s503_s10] sm:$0xff] (!%p3348_p12) }
  0xa2   : > { %516 = vst.msk [vmem:[#allocation3] sm:$0xff] (!%p3348_p12), %vm515_vm0, %v514_v0 }
  0xa5 PF: > { %p3349_p0 = scmp.eq.s32.totalorder %s2773_s20, 0 }
  0xa6   : > { %s1969_s17 = sadd.s32 (!%p3349_p0), 4294967295, %s2773_s20  ;;  %v524_v2 = vld [vmem:[%s503_s10] sm:$0xff] (!%p3349_p0)  ;;  %vm530_vm1 = vcmask (!%p3349_p0), 7168  }
  0xa7   : > { %520 = sbr.rel (%p3349_p0) target bundleno = 181 (0xb5), region = 100  ;;  %s522_s22 = sld [smem:[#allocation5 + %s1969_s17]] (!%p3349_p0) }
  0xa9   : > { %v525_v3 = vld [vmem:[#allocation3] sm:$0xff] (!%p3349_p0) }
  0xad   : > { %p523_p1 = scmp.ne.s32.totalorder (!%p3349_p0), %s522_s22, 0 }
  0xaf   : > { %s526_s25 = scalar_select %p523_p1, 1, 0 }
  0xb1   : > { %v527_v4 = vstv %s526_s25 }
  0xb2   : > { %vm528_vm2 = vcmp.eq.s32.totalorder %v527_v4, 1 }
  0xb3   : > { %v529_v5 = vsel %vm528_vm2, %v524_v2, %v525_v3 }
  0xb4   : > { %531 = vst.msk [vmem:[#allocation3] sm:$0xff] %vm530_vm1, %v529_v5 }
  0xb5 PF: > { %v2329_v6 = vld [vmem:[%s3322_s5] sm:$0xff]   ;;  %v2685_v7 = vmov 0.0   ;;  %v2330_v8 = vld [vmem:[%s3322_s5 + $0x8] sm:$0xff]   ;;  %vm2686_vm3 = vmmov 0   ;;  %v2687_v9 = vmov 0   ;;  %v2331_v10 = vld [vmem:[%s3322_s5 + $0x10] sm:$0xff]   ;;  %v534_v27 = vlaneseq }
  0xb6   : > { %2191 = vmatprep.subr.bf16.mxu1 %v2685_v7  ;;  %2171 = vmatprep.subr.bf16.mxu0 %v2685_v7  ;;  %v2337_v12 = vld [vmem:[%s3321_s4] sm:$0xff]   ;;  %v2332_v13 = vld [vmem:[%s3322_s5 + $0x18] sm:$0xff]   ;;  %v2338_v14 = vld [vmem:[%s3321_s4 + $0x8] sm:$0xff]   ;;  %v2688_v30 = vmov 1.0|1.0   ;;  %vm1845_vm9 = vcmask 7168  }
  0xb7   : > { %2192 = vmatpush3.bf16.msra.mxu1 %v2329_v6  ;;  %2207 = vmatprep.mubr.msk.bf16.mxu1 %vm2686_vm3, %v2685_v7  ;;  %v2333_v15 = vld [vmem:[%s3322_s5 + $0x20] sm:$0xff]   ;;  %v2339_v16 = vld [vmem:[%s3321_s4 + $0x10] sm:$0xff]   ;;  %v2334_v17 = vld [vmem:[%s3322_s5 + $0x28] sm:$0xff]   ;;  %v3015_v28 = vand.u32 127, %v534_v27 }
  0xb8   : > { %2193 = vmatprep.subr.bf16.mxu1 %v2685_v7  ;;  %2328 = vset.pattern.permute.xlu0 %v2687_v9  ;;  %v2340_v18 = vld [vmem:[%s3321_s4 + $0x18] sm:$0xff]   ;;  %v2335_v19 = vld [vmem:[%s3322_s5 + $0x30] sm:$0xff]   ;;  %v533_v21 = vld [vmem:[#allocation2] sm:$0xff] }
  0xb9   : > { %2187 = vmatprep.mubr.msk.bf16.mxu0 %vm2686_vm3, %v2685_v7  ;;  %2172 = vmatpush3.bf16.msra.mxu0 %v2337_v12  ;;  %v2336_v20 = vld [vmem:[%s3322_s5 + $0x38] sm:$0xff]   ;;  %v2996_v22 = vpack.c.bf16 %v533_v21, %v533_v21  ;;  %v2341_v23 = vld [vmem:[%s3321_s4 + $0x20] sm:$0xff]   ;;  %v2342_v24 = vld [vmem:[%s3321_s4 + $0x28] sm:$0xff]   ;;  %vm1834_vm6 = vcmp.lt.s32.totalorder %v3015_v28, 12 }
  0xba   : > { %2173 = vmatprep.subr.bf16.mxu0 %v2685_v7  ;;  %v2343_v25 = vld [vmem:[%s3321_s4 + $0x30] sm:$0xff]   ;;  %v2344_v26 = vld [vmem:[%s3321_s4 + $0x38] sm:$0xff]   ;;  %v1980_v31 = vld [vmem:[%s3323_s6] ss:$0 sm:$0xff] }
  0xbb   : > { %2194 = vmatpush3.bf16.msra.mxu1 %v2330_v8  ;;  %v532_v11 = vld [vmem:[#allocation3] sm:$0xff]  ;;  %v758_v34 = vld [vmem:[%s3320_s3] sm:$0xff]  ;;  %v760_v45 = vld [vmem:[%s3320_s3 + $0x10] sm:$0xff] }
  0xbc   : > { %2195 = vmatprep.subr.bf16.mxu1 %v2685_v7  ;;  %537 = vperm.xlu0 %2328, %v532_v11   ;;  %v759_v33 = vld [vmem:[%s3320_s3 + $0x8] sm:$0xff]  ;;  %v762_v35 = vld [vmem:[%s3320_s3 + $0x20] sm:$0xff]  ;;  %v761_v47 = vld [vmem:[%s3320_s3 + $0x18] sm:$0xff] }
  0xbd   : > { %2174 = vmatpush3.bf16.msra.mxu0 %v2338_v14  ;;  %v763_v43 = vld [vmem:[%s3320_s3 + $0x28] sm:$0xff]  ;;  %v1989_v48 = vld [vmem:[#allocation6] ss:$0 sm:$0xff]  ;;  %v2348_v1 = vld [vmem:[%s3325_s8 + $0x18] ss:$12 sps:$4 sm:$0xff]  }
  0xbe   : > { %2175 = vmatprep.subr.bf16.mxu0 %v2685_v7  ;;  %v2345_v62 = vld [vmem:[%s3325_s8] ss:$12 sps:$4 sm:$0xff]   ;;  %v2347_v63 = vld [vmem:[%s3325_s8 + $0x4] ss:$12 sps:$4 sm:$0xff]   ;;  %v2350_v0 = vld [vmem:[%s3325_s8 + $0x1c] ss:$12 sps:$4 sm:$0xff]  }
  0xbf   : > { %2196 = vmatpush3.bf16.msra.mxu1 %v2331_v10  ;;  %v2353_v2 = vld [vmem:[%s3325_s8 + $0x34] ss:$12 sps:$4 sm:$0xff]   ;;  %v2351_v3 = vld [vmem:[%s3325_s8 + $0x30] ss:$12 sps:$4 sm:$0xff]   ;;  %v2356_v4 = vld [vmem:[%s3325_s8 + $0x4c] ss:$12 sps:$4 sm:$0xff]  }
  0xc0   : > { %2197 = vmatprep.subr.bf16.mxu1 %v2685_v7  ;;  %v2354_v5 = vld [vmem:[%s3325_s8 + $0x48] ss:$12 sps:$4 sm:$0xff]   ;;  %v2359_v6 = vld [vmem:[%s3325_s8 + $0x64] ss:$12 sps:$4 sm:$0xff]   ;;  %v2357_v8 = vld [vmem:[%s3325_s8 + $0x60] ss:$12 sps:$4 sm:$0xff]  }
  0xc1   : > { %2176 = vmatpush3.bf16.msra.mxu0 %v2339_v16  ;;  %v2362_v10 = vld [vmem:[%s3325_s8 + $0x7c] ss:$12 sps:$4 sm:$0xff]   ;;  %v2360_v11 = vld [vmem:[%s3325_s8 + $0x78] ss:$12 sps:$4 sm:$0xff]   ;;  %v2365_v12 = vld [vmem:[%s3325_s8 + $0x94] ss:$12 sps:$4 sm:$0xff]  }
  0xc2   : > { %2177 = vmatprep.subr.bf16.mxu0 %v2685_v7  ;;  %v2368_v14 = vld [vmem:[%s3325_s8 + $0xac] ss:$12 sps:$4 sm:$0xff]   ;;  %v2371_v16 = vld [vmem:[%s3325_s8 + $0xc4] ss:$12 sps:$4 sm:$0xff]   ;;  %v2376_v21 = vld [vmem:[%s3325_s8 + $0xdc] ss:$12 sps:$4 sm:$0xff]  }
  0xc3   : > { %2198 = vmatpush3.bf16.msra.mxu1 %v2332_v13  ;;  %v2363_v13 = vld [vmem:[%s3325_s8 + $0x90] ss:$12 sps:$4 sm:$0xff]  }
  0xc4   : > { %2199 = vmatprep.subr.bf16.mxu1 %v2685_v7 }
  0xc5   : > { %2178 = vmatpush3.bf16.msra.mxu0 %v2340_v18  ;;  %v2369_v18 = vld [vmem:[%s3325_s8 + $0xc0] ss:$12 sps:$4 sm:$0xff]  }
  0xc6   : > { %2179 = vmatprep.subr.bf16.mxu0 %v2685_v7 }
  0xc7   : > { %2200 = vmatpush3.bf16.msra.mxu1 %v2333_v15  ;;  %v2366_v15 = vld [vmem:[%s3325_s8 + $0xa8] ss:$12 sps:$4 sm:$0xff]  }
  0xc8   : > { %2201 = vmatprep.subr.bf16.mxu1 %v2685_v7 }
  0xc9   : > { %2180 = vmatpush3.bf16.msra.mxu0 %v2341_v23  ;;  %v2377_v23 = vld [vmem:[%s3325_s8 + $0xe0] ss:$12 sps:$4 sm:$0xff]  }
  0xca   : > { %2181 = vmatprep.subr.bf16.mxu0 %v2685_v7 }
  0xcb   : > { %2202 = vmatpush3.bf16.msra.mxu1 %v2334_v17  ;;  %v2372_v17 = vld [vmem:[%s3325_s8 + $0xc8] ss:$12 sps:$4 sm:$0xff]  }
  0xcc   : > { %2203 = vmatprep.subr.bf16.mxu1 %v2685_v7 }
  0xcd   : > { %2182 = vmatpush3.bf16.msra.mxu0 %v2342_v24  ;;  %v2378_v24 = vld [vmem:[%s3325_s8 + $0x20] ss:$12 sps:$4 sm:$0xff]  }
  0xce   : > { %2183 = vmatprep.subr.bf16.mxu0 %v2685_v7 }
  0xcf   : > { %2204 = vmatpush3.bf16.msra.mxu1 %v2335_v19  ;;  %v2373_v19 = vld [vmem:[%s3325_s8 + $0x8] ss:$12 sps:$4 sm:$0xff]  }
  0xd0   : > { %2205 = vmatprep.subr.bf16.mxu1 %v2685_v7 }
  0xd1   : > { %2184 = vmatpush3.bf16.msra.mxu0 %v2343_v25  ;;  %v2381_v25 = vld [vmem:[%s3325_s8 + $0xf4] ss:$12 sps:$4 sm:$0xff]  }
  0xd2   : > { %2185 = vmatprep.subr.bf16.mxu0 %v2685_v7 }
  0xd3   : > { %2206 = vmatpush3.bf16.msra.mxu1 %v2336_v20  ;;  %v2374_v20 = vld [vmem:[%s3325_s8 + $0xd8] ss:$12 sps:$4 sm:$0xff]  }
  0xd4   : > { %2109 = vmatprep.subr.bf16.mxu1 %v2372_v17 }
  0xd5   : > { %2186 = vmatpush3.bf16.msra.mxu0 %v2344_v26  ;;  %v2382_v26 = vld [vmem:[%s3325_s8 + $0xf8] ss:$12 sps:$4 sm:$0xff]  }
  0xd6   : > { %2208 = vmatmul.mubr.bf16.vlgmr.msra.gmra.mrb[0].mxu1 %v2996_v22  ;;  %1192 = vmatprep.subr.bf16.mxu0 %v2347_v63 }
  0xd7   : > { %2110 = vmatpush3.bf16.msra.mxu1 %v2373_v19 }
  0xd8   : > { %2111 = vmatprep.subr.bf16.mxu1 %v2377_v23 }
  0xdb   : > { %2112 = vmatpush3.bf16.msra.mxu1 %v2378_v24 }
  0xdc   : > { %2113 = vmatprep.subr.bf16.mxu1 %v2382_v26 }
 0x13b   : > { %v538_v29 = vpop.permute.xlu0 %537 }
 0x13c   : > { %vm539_vm4 = vcmp.eq.s32.totalorder %v3015_v28, %v538_v29  ;;  %v2379_v29 = vld [vmem:[%s3325_s8 + $0xf0] ss:$12 sps:$4 sm:$0xff]  }
 0x13d   : > { %vm1978_vm5 = vmpackc.low %vm539_vm4, %vm539_vm4 }
 0x13e   : > { %2188 = vmatmul.mubr.msk.bf16.vlgmr.msra.gmra.mrb[0].mxu0 %vm1978_vm5, %v2688_v30  ;;  %v2383_v30 = vld [vmem:[%s3325_s8 + $0x38] ss:$12 sps:$4 sm:$0xff]  }
 0x13f   : > { %1193 = vmatpush1.bf16.msra.mxu0 %v2345_v62  ;;  %2114 = vmatpush3.bf16.msra.mxu1 %v2383_v30 }
 0x140   : > { %1194 = vmatprep.subr.bf16.mxu0 %v2350_v0 }
 0x143   : > { %1195 = vmatpush1.bf16.msra.mxu0 %v2348_v1 }
 0x144   : > { %1196 = vmatprep.subr.bf16.mxu0 %v2353_v2 }
 0x147   : > { %1197 = vmatpush1.bf16.msra.mxu0 %v2351_v3 }
 0x148   : > { %1198 = vmatprep.subr.bf16.mxu0 %v2356_v4 }
 0x14b   : > { %1199 = vmatpush1.bf16.msra.mxu0 %v2354_v5 }
 0x14c   : > { %1200 = vmatprep.subr.bf16.mxu0 %v2359_v6 }
 0x14f   : > { %1201 = vmatpush1.bf16.msra.mxu0 %v2357_v8 }
 0x150   : > { %1202 = vmatprep.subr.bf16.mxu0 %v2362_v10 }
 0x153   : > { %1203 = vmatpush1.bf16.msra.mxu0 %v2360_v11 }
 0x154   : > { %1204 = vmatprep.subr.bf16.mxu0 %v2365_v12 }
 0x157   : > { %1205 = vmatpush1.bf16.msra.mxu0 %v2363_v13 }
 0x158   : > { %1206 = vmatprep.subr.bf16.mxu0 %v2368_v14 }
 0x15b   : > { %1207 = vmatpush1.bf16.msra.mxu0 %v2366_v15 }
 0x15c   : > { %1208 = vmatprep.subr.bf16.mxu0 %v2371_v16 }
 0x15f   : > { %1209 = vmatpush1.bf16.msra.mxu0 %v2369_v18 }
 0x160   : > { %1210 = vmatprep.subr.bf16.mxu0 %v2376_v21 }
 0x163   : > { %1211 = vmatpush1.bf16.msra.mxu0 %v2374_v20 }
 0x164   : > { %1212 = vmatprep.subr.bf16.mxu0 %v2381_v25 }
 0x167   : > { %1213 = vmatpush1.bf16.msra.mxu0 %v2379_v29 }
 0x1a9   : > { %v752_v32 = vpop.f32.mrb[0].mxu1 }
 0x1aa   : > { %v753_v36 = vadd.f32 %v1980_v31, %v752_v32  ;;  %v2209_v37 = vpop.f32.mrb[1].mxu1  ;;  %v2386_v31 = vld [vmem:[%s3325_s8 + $0x10c] ss:$12 sps:$4 sm:$0xff]   ;;  %v2387_v32 = vld [vmem:[%s3325_s8 + $0x110] ss:$12 sps:$4 sm:$0xff]  }
 0x1ab   : > { %v755_v38 = vpop.f32.mrb[2].mxu1  ;;  %1214 = vmatprep.subr.bf16.mxu0 %v2386_v31  ;;  %2115 = vmatprep.subr.bf16.mxu1 %v2387_v32  ;;  %v2389_v37 = vld [vmem:[%s3325_s8 + $0x120] ss:$12 sps:$4 sm:$0xff]  }
 0x1ac   : > { %v2210_v39 = vpop.f32.mrb[3].mxu1  ;;  %v765_v40 = vadd.f32 %v759_v33, %v753_v36  ;;  %v764_v41 = vadd.f32 %v758_v34, %v753_v36  ;;  %v768_v42 = vadd.f32 %v762_v35, %v753_v36  ;;  %v769_v44 = vadd.f32 %v763_v43, %v753_v36  ;;  %v2384_v33 = vld [vmem:[%s3325_s8 + $0x108] ss:$12 sps:$4 sm:$0xff]   ;;  %v2388_v34 = vld [vmem:[%s3325_s8 + $0x50] ss:$12 sps:$4 sm:$0xff]   ;;  %v836_v32 = vld [vmem:[%s3319_s2] sm:$0xff] }
 0x1ad   : > { %v766_v46 = vadd.f32 %v760_v45, %v753_v36  ;;  %v767_v50 = vadd.f32 %v761_v47, %v753_v36  ;;  %v2391_v35 = vld [vmem:[%s3325_s8 + $0x124] ss:$12 sps:$4 sm:$0xff]   ;;  %v2392_v36 = vld [vmem:[%s3325_s8 + $0x128] ss:$12 sps:$4 sm:$0xff]   ;;  %1215 = vmatpush1.bf16.msra.mxu0 %v2384_v33  ;;  %2116 = vmatpush3.bf16.msra.mxu1 %v2388_v34  ;;  %v2406_v47 = vld [vmem:[%s3325_s8 + $0x16c] ss:$12 sps:$4 sm:$0xff]  }
 0x1ae   : > { %2465 = vtanh.f32 %v765_v40  ;;  %v2393_v38 = vld [vmem:[%s3325_s8 + $0x68] ss:$12 sps:$4 sm:$0xff]   ;;  %1216 = vmatprep.subr.bf16.mxu0 %v2391_v35  ;;  %2117 = vmatprep.subr.bf16.mxu1 %v2392_v36  ;;  %v2397_v40 = vld [vmem:[%s3325_s8 + $0x140] ss:$12 sps:$4 sm:$0xff]   ;;  %v2399_v45 = vld [vmem:[%s3325_s8 + $0x150] ss:$12 sps:$4 sm:$0xff]  }
 0x1af   : > { %2467 = vtanh.f32 %v764_v41  ;;  %v2396_v39 = vld [vmem:[%s3325_s8 + $0x13c] ss:$12 sps:$4 sm:$0xff]   ;;  %v2394_v41 = vld [vmem:[%s3325_s8 + $0x138] ss:$12 sps:$4 sm:$0xff]   ;;  %v2401_v43 = vld [vmem:[%s3325_s8 + $0x154] ss:$12 sps:$4 sm:$0xff]  }
 0x1b0   : > { %2469 = vtanh.f32 %v768_v42  ;;  %v2398_v42 = vld [vmem:[%s3325_s8 + $0x80] ss:$12 sps:$4 sm:$0xff]  }
 0x1b1   : > { %2471 = vtanh.f32 %v769_v44  ;;  %1217 = vmatpush1.bf16.msra.mxu0 %v2389_v37  ;;  %2118 = vmatpush3.bf16.msra.mxu1 %v2393_v38  ;;  %v2402_v44 = vld [vmem:[%s3325_s8 + $0x158] ss:$12 sps:$4 sm:$0xff]   ;;  %v837_v33 = vld [vmem:[%s3319_s2 + $0x8] sm:$0xff]  ;;  %v838_v37 = vld [vmem:[%s3319_s2 + $0x10] sm:$0xff] }
 0x1b2   : > { %2473 = vtanh.f32 %v766_v46  ;;  %1218 = vmatprep.subr.bf16.mxu0 %v2396_v39  ;;  %2119 = vmatprep.subr.bf16.mxu1 %v2397_v40  ;;  %v2403_v46 = vld [vmem:[%s3325_s8 + $0x98] ss:$12 sps:$4 sm:$0xff]  }
 0x1b3   : > { %2475 = vtanh.f32 %v767_v50  ;;  %v2408_v50 = vld [vmem:[%s3325_s8 + $0xb0] ss:$12 sps:$4 sm:$0xff]  }
 0x1b5   : > { %1219 = vmatpush1.bf16.msra.mxu0 %v2394_v41  ;;  %2120 = vmatpush3.bf16.msra.mxu1 %v2398_v42  ;;  %v839_v41 = vld [vmem:[%s3319_s2 + $0x18] sm:$0xff] }
 0x1b6   : > { %1220 = vmatprep.subr.bf16.mxu0 %v2401_v43  ;;  %2121 = vmatprep.subr.bf16.mxu1 %v2402_v44 }
 0x1b8   : > { %v2466_v49 = vpop.eup %2465 }
 0x1b9   : > { %v2468_v51 = vpop.eup %2467  ;;  %v784_v52 = vmul.f32 %v2466_v49, %v1989_v48  ;;  %1221 = vmatpush1.bf16.msra.mxu0 %v2399_v45  ;;  %2122 = vmatpush3.bf16.msra.mxu1 %v2403_v46  ;;  %v2404_v49 = vld [vmem:[%s3325_s8 + $0x168] ss:$12 sps:$4 sm:$0xff]   ;;  %v840_v45 = vld [vmem:[%s3319_s2 + $0x20] sm:$0xff] }
 0x1ba   : > { %v2470_v53 = vpop.eup %2469  ;;  %v783_v54 = vmul.f32 %v2468_v51, %v1989_v48  ;;  %1222 = vmatprep.subr.bf16.mxu0 %v2406_v47  ;;  %v2411_v51 = vld [vmem:[%s3326_s9 + $0x4] ss:$12 sps:$4 sm:$0xff]  }
 0x1bb   : > { %791 = vadd.xlane.f32.xlu1 %v784_v52  ;;  %v787_v55 = vmul.f32 %v2470_v53, %v1989_v48  ;;  %v2472_v56 = vpop.eup %2471 }
 0x1bc   : > { %789 = vadd.xlane.f32.xlu0 %v783_v54  ;;  %v788_v57 = vmul.f32 %v2472_v56, %v1989_v48  ;;  %v2474_v58 = vpop.eup %2473 }
 0x1bd   : > { %v785_v59 = vmul.f32 %v2474_v58, %v1989_v48  ;;  %v2476_v60 = vpop.eup %2475  ;;  %1223 = vmatpush1.bf16.msra.mxu0 %v2404_v49  ;;  %v841_v49 = vld [vmem:[%s3319_s2 + $0x28] sm:$0xff] }
 0x1be   : > { %v786_v61 = vmul.f32 %v2476_v60, %v1989_v48  ;;  %v2407_v48 = vld [vmem:[%s3325_s8 + $0x170] ss:$12 sps:$4 sm:$0xff]   ;;  %1450 = vmatprep.subr.bf16.mxu0 %v2411_v51 }
 0x1bf   : > { %797 = vadd.xlane.f32.xlu1 %v787_v55  ;;  %2123 = vmatprep.subr.bf16.mxu1 %v2407_v48 }
 0x1c0   : > { %2124 = vmatpush3.bf16.msra.mxu1 %v2408_v50 }
 0x1c1   : > { %2211 = vmatprep.subr.bf16.mxu1 %v2685_v7 }
 0x1c3   : > { %799 = vadd.xlane.f32.xlu1 %v788_v57 }
 0x1c7   : > { %793 = vadd.xlane.f32.xlu1 %v785_v59 }
 0x1cb   : > { %795 = vadd.xlane.f32.xlu1 %v786_v61 }
 0x211   : > { %v3186_v52 = vpop.f32.mrb[0].mxu0 }
 0x212   : > { %v2189_v53 = vpop.f32.mrb[1].mxu0 }
 0x213   : > { %v643_v54 = vpop.f32.mrb[2].mxu0 }
 0x214   : > { %v2190_v55 = vpop.f32.mrb[3].mxu0 }
 0x248   : > { %v792_v56 = vpop.xlane.xlu1 %791 }
 0x249   : > { %v790_v61 = vpop.xlane.xlu0 %789 }
 0x24c   : > { %v798_v57 = vpop.xlane.xlu1 %797 }
 0x24d   : > { %v801_v62 = vmax.f32 %v790_v61, %v798_v57 }
 0x250   : > { %v800_v58 = vpop.xlane.xlu1 %799 }
 0x251   : > { %v802_v60 = vmax.f32 %v792_v56, %v800_v58 }
 0x253   : > { %v803_v0 = vmax.f32 %v801_v62, %v802_v60  ;;  %v2415_v60 = vld [vmem:[%s3326_s9 + $0x1c] ss:$12 sps:$4 sm:$0xff]   ;;  %v2419_v62 = vld [vmem:[%s3326_s9 + $0x34] ss:$12 sps:$4 sm:$0xff]  }
 0x254   : > { %v794_v59 = vpop.xlane.xlu1 %793 }
 0x258   : > { %v796_v63 = vpop.xlane.xlu1 %795 }
 0x259   : > { %v804_v1 = vmax.f32 %v794_v59, %v796_v63 }
 0x25b   : > { %v805_v2 = vmax.f32 %v803_v0, %v804_v1  ;;  %v2420_v0 = vld [vmem:[%s3326_s9 + $0x38] ss:$12 sps:$4 sm:$0xff]   ;;  %v2421_v1 = vld [vmem:[%s3326_s9 + $0x48] ss:$12 sps:$4 sm:$0xff]  }
 0x25d   : > { %v806_v3 = vsub.f32 %v790_v61, %v805_v2  ;;  %v807_v4 = vsub.f32 %v792_v56, %v805_v2  ;;  %v808_v5 = vsub.f32 %v794_v59, %v805_v2  ;;  %v809_v6 = vsub.f32 %v796_v63, %v805_v2  ;;  %v2412_v59 = vld [vmem:[%s3326_s9 + $0x8] ss:$12 sps:$4 sm:$0xff]   ;;  %v2416_v61 = vld [vmem:[%s3326_s9 + $0x20] ss:$12 sps:$4 sm:$0xff]   ;;  %v2417_v63 = vld [vmem:[%s3326_s9 + $0x30] ss:$12 sps:$4 sm:$0xff]  }
 0x25e   : > { %v810_v11 = vsub.f32 %v798_v57, %v805_v2  ;;  %v811_v13 = vsub.f32 %v800_v58, %v805_v2  ;;  %v3209_v56 = vpack.c.bf16 %v3186_v52, %v3186_v52  ;;  %v2409_v58 = vld [vmem:[%s3326_s9] ss:$12 sps:$4 sm:$0xff]   ;;  %v2413_v52 = vld [vmem:[%s3326_s9 + $0x18] ss:$12 sps:$4 sm:$0xff]   ;;  %v2424_v2 = vld [vmem:[%s3326_s9 + $0x50] ss:$12 sps:$4 sm:$0xff]  }
 0x25f   : > { %v812_v8 = vmul.f32 1.442695, %v806_v3  ;;  %v814_v10 = vmul.f32 1.442695, %v807_v4  ;;  %v816_v12 = vmul.f32 1.442695, %v808_v5 }
 0x260   : > { %v818_v14 = vmul.f32 1.442695, %v809_v6  ;;  %v820_v15 = vmul.f32 1.442695, %v810_v11  ;;  %v822_v16 = vmul.f32 1.442695, %v811_v13 }
 0x261   : > { %2477 = vpow2.f32 %v812_v8  ;;  %v2427_v3 = vld [vmem:[%s3326_s9 + $0x64] ss:$12 sps:$4 sm:$0xff]   ;;  %v2425_v4 = vld [vmem:[%s3326_s9 + $0x60] ss:$12 sps:$4 sm:$0xff]   ;;  %v2428_v5 = vld [vmem:[%s3326_s9 + $0x68] ss:$12 sps:$4 sm:$0xff]  }
 0x262   : > { %2479 = vpow2.f32 %v814_v10  ;;  %v2431_v6 = vld [vmem:[%s3326_s9 + $0x7c] ss:$12 sps:$4 sm:$0xff]   ;;  %v2429_v8 = vld [vmem:[%s3326_s9 + $0x78] ss:$12 sps:$4 sm:$0xff]   ;;  %v2432_v10 = vld [vmem:[%s3326_s9 + $0x80] ss:$12 sps:$4 sm:$0xff]  }
 0x263   : > { %2481 = vpow2.f32 %v816_v12  ;;  %v2435_v11 = vld [vmem:[%s3326_s9 + $0x94] ss:$12 sps:$4 sm:$0xff]   ;;  %v2433_v12 = vld [vmem:[%s3326_s9 + $0x90] ss:$12 sps:$4 sm:$0xff]   ;;  %v2436_v13 = vld [vmem:[%s3326_s9 + $0x98] ss:$12 sps:$4 sm:$0xff]  }
 0x264   : > { %2483 = vpow2.f32 %v818_v14  ;;  %v2439_v14 = vld [vmem:[%s3326_s9 + $0xac] ss:$12 sps:$4 sm:$0xff]  }
 0x265   : > { %2485 = vpow2.f32 %v820_v15  ;;  %v2437_v15 = vld [vmem:[%s3326_s9 + $0xa8] ss:$12 sps:$4 sm:$0xff]  }
 0x266   : > { %2487 = vpow2.f32 %v822_v16  ;;  %v2440_v16 = vld [vmem:[%s3326_s9 + $0xb0] ss:$12 sps:$4 sm:$0xff]  }
 0x26b   : > { %v2478_v17 = vpop.eup %2477 }
 0x26c   : > { %v2480_v18 = vpop.eup %2479 }
 0x26d   : > { %v824_v19 = vadd.f32 %v2480_v18, %v2478_v17  ;;  %v2482_v20 = vpop.eup %2481 }
 0x26e   : > { %v2484_v23 = vpop.eup %2483 }
 0x26f   : > { %v825_v21 = vadd.f32 %v2482_v20, %v824_v19  ;;  %v2486_v25 = vpop.eup %2485  ;;  %v2443_v19 = vld [vmem:[#allocation11 + $0x48] sm:$0xff]  }
 0x270   : > { %v2488_v29 = vpop.eup %2487 }
 0x271   : > { %v826_v24 = vadd.f32 %v2484_v23, %v825_v21  ;;  %v2445_v21 = vld [vmem:[#allocation11 + $0x50] sm:$0xff]  }
 0x273   : > { %v827_v26 = vadd.f32 %v2486_v25, %v826_v24  ;;  %v2447_v24 = vld [vmem:[#allocation11 + $0x58] sm:$0xff]  }
 0x275   : > { %v828_v30 = vadd.f32 %v2488_v29, %v827_v26  ;;  %v2449_v26 = vld [vmem:[#allocation11 + $0x60] sm:$0xff]  }
 0x277   : > { %2489 = vrcp.f32 %v828_v30  ;;  %v2452_v30 = vld [vmem:[#allocation11 + $0x28] sm:$0xff]  }
 0x281   : > { %v2490_v31 = vpop.eup %2489 }
 0x282   : > { %v830_v34 = vmul.f32 %v2490_v31, %v2478_v17  ;;  %v831_v35 = vmul.f32 %v2490_v31, %v2480_v18  ;;  %v832_v36 = vmul.f32 %v2490_v31, %v2482_v20  ;;  %v833_v38 = vmul.f32 %v2490_v31, %v2484_v23  ;;  %v2441_v17 = vld [vmem:[#allocation11 + $0x40] sm:$0xff]   ;;  %v2444_v20 = vld [vmem:[#allocation11 + $0x8] sm:$0xff]   ;;  %v2446_v23 = vld [vmem:[#allocation11 + $0x10] sm:$0xff]  }
 0x283   : > { %v834_v42 = vmul.f32 %v2490_v31, %v2486_v25  ;;  %v835_v46 = vmul.f32 %v2490_v31, %v2488_v29  ;;  %v2442_v18 = vld [vmem:[#allocation11] sm:$0xff]   ;;  %v2448_v25 = vld [vmem:[#allocation11 + $0x18] sm:$0xff]   ;;  %v2453_v31 = vld [vmem:[#allocation11 + $0x70] sm:$0xff]  }
 0x284   : > { %v842_v39 = vmul.f32 %v836_v32, %v830_v34  ;;  %v843_v40 = vmul.f32 %v837_v33, %v831_v35  ;;  %v844_v43 = vmul.f32 %v838_v37, %v832_v36  ;;  %v845_v47 = vmul.f32 %v839_v41, %v833_v38  ;;  %v2450_v29 = vld [vmem:[#allocation11 + $0x20] sm:$0xff]   ;;  %v2454_v32 = vld [vmem:[#allocation11 + $0x30] sm:$0xff]   ;;  %v2455_v33 = vld [vmem:[#allocation11 + $0x78] sm:$0xff]  }
 0x285   : > { %v846_v50 = vmul.f32 %v840_v45, %v834_v42  ;;  %v847_v53 = vmul.f32 %v841_v49, %v835_v46  ;;  %v2456_v34 = vld [vmem:[#allocation11 + $0x38] sm:$0xff]   ;;  %v2457_v35 = vld [vmem:[#allocation11 + $0x80] sm:$0xff]   ;;  %v2458_v36 = vld [vmem:[#allocation11 + $0x88] sm:$0xff]  }
 0x286   : > { %v848_v44 = vadd.f32 %v843_v40, %v842_v39  ;;  %v2459_v37 = vld [vmem:[#allocation11 + $0x90] sm:$0xff]   ;;  %v2460_v38 = vld [vmem:[#allocation11 + $0x98] sm:$0xff]   ;;  %v2461_v39 = vld [vmem:[#allocation11 + $0xa0] sm:$0xff]  }
 0x287   : > { %v2462_v40 = vld [vmem:[#allocation11 + $0xa8] sm:$0xff]   ;;  %v2463_v41 = vld [vmem:[#allocation11 + $0xb0] sm:$0xff]   ;;  %v2464_v42 = vld [vmem:[#allocation11 + $0xb8] sm:$0xff]  }
 0x288   : > { %v849_v48 = vadd.f32 %v848_v44, %v844_v43  ;;  %v922_v43 = vshrl.u32 %v534_v27, 7  ;;  %v919_v45 = vld [vmem:[#allocation8] sm:$0x7] }
 0x28a   : > { %v850_v51 = vadd.f32 %v849_v48, %v845_v47  ;;  %v931_v44 = vsub.s32 2, %v922_v43 }
 0x28c   : > { %v851_v54 = vadd.f32 %v850_v51, %v846_v50  ;;  %v932_v47 = vrot.slane %v919_v45, %v931_v44 }
 0x28e   : > { %v852_v55 = vadd.f32 %v851_v54, %v847_v53  ;;  %v923_v54 = vsub.s32 0, %v922_v43 }
 0x290   : > { %v3211_v57 = vpack.c.bf16 %v852_v55, %v852_v55  ;;  %v1305_v55 = vld [vmem:[#allocation10] sm:$0x7] }
 0x292   : > { %1224 = vmatprep.mubr.bf16.mxu0 %v3211_v57  ;;  %1265 = vmatprep.mubr.bf16.mxu1 %v3211_v57 }
 0x293   : > { %1225 = vmatmul.mubr.bf16.vlgmr.msra.gmra.mrb[4].mxu0 %v3209_v56  ;;  %1266 = vmatmul.mubr.bf16.vlgmr.msra.gmra.mrb[4].mxu1 %v3209_v56 }
 0x294   : > { %1451 = vmatpush1.bf16.msra.mxu0 %v2409_v58  ;;  %2212 = vmatpush3.bf16.msra.mxu1 %v2412_v59  ;;  %v1310_v58 = vrot.slane %v1305_v55, %v923_v54 }
 0x295   : > { %1452 = vmatprep.subr.bf16.mxu0 %v2415_v60  ;;  %2213 = vmatprep.subr.bf16.mxu1 %v2685_v7 }
 0x296   : > { %1482 = vmatprep.mubr.bf16.mxu0 %v2687_v9  ;;  %2227 = vmatprep.mubr.msk.bf16.mxu1 %vm2686_vm3, %v2685_v7  ;;  %v2423_v9 = vld [vmem:[%s3326_s9 + $0x4c] ss:$12 sps:$4 sm:$0xff]  }
 0x298   : > { %1453 = vmatpush1.bf16.msra.mxu0 %v2413_v52  ;;  %2214 = vmatpush3.bf16.msra.mxu1 %v2416_v61  ;;  %v1318_v52 = vrot.slane %v1305_v55, %v931_v44 }
 0x299   : > { %1454 = vmatprep.subr.bf16.mxu0 %v2419_v62  ;;  %2215 = vmatprep.subr.bf16.mxu1 %v2685_v7 }
 0x29c   : > { %1455 = vmatpush1.bf16.msra.mxu0 %v2417_v63  ;;  %2216 = vmatpush3.bf16.msra.mxu1 %v2420_v0 }
 0x29d   : > { %1456 = vmatprep.subr.bf16.mxu0 %v2423_v9  ;;  %2217 = vmatprep.subr.bf16.mxu1 %v2685_v7 }
 0x2a0   : > { %1457 = vmatpush1.bf16.msra.mxu0 %v2421_v1  ;;  %2218 = vmatpush3.bf16.msra.mxu1 %v2424_v2 }
 0x2a1   : > { %1458 = vmatprep.subr.bf16.mxu0 %v2427_v3  ;;  %2219 = vmatprep.subr.bf16.mxu1 %v2685_v7 }
 0x2a4   : > { %1459 = vmatpush1.bf16.msra.mxu0 %v2425_v4  ;;  %2220 = vmatpush3.bf16.msra.mxu1 %v2428_v5 }
 0x2a5   : > { %1460 = vmatprep.subr.bf16.mxu0 %v2431_v6  ;;  %2221 = vmatprep.subr.bf16.mxu1 %v2685_v7 }
 0x2a8   : > { %1461 = vmatpush1.bf16.msra.mxu0 %v2429_v8  ;;  %2222 = vmatpush3.bf16.msra.mxu1 %v2432_v10 }
 0x2a9   : > { %1462 = vmatprep.subr.bf16.mxu0 %v2435_v11  ;;  %2223 = vmatprep.subr.bf16.mxu1 %v2685_v7 }
 0x2ac   : > { %1463 = vmatpush1.bf16.msra.mxu0 %v2433_v12  ;;  %2224 = vmatpush3.bf16.msra.mxu1 %v2436_v13 }
 0x2ad   : > { %1464 = vmatprep.subr.bf16.mxu0 %v2439_v14  ;;  %2225 = vmatprep.subr.bf16.mxu1 %v2685_v7 }
 0x2b0   : > { %1465 = vmatpush1.bf16.msra.mxu0 %v2437_v15  ;;  %2226 = vmatpush3.bf16.msra.mxu1 %v2440_v16 }
 0x2b1   : > { %2140 = vmatprep.subr.bf16.mxu1 %v2441_v17  ;;  %2231 = vmatprep.subr.bf16.mxu0 %v2685_v7 }
 0x2b3   : > { %1483 = vmatmul.mubr.bf16.vlgmr.msra.gmra.mrb[4].mxu0 %v2996_v22  ;;  %2228 = vmatmul.mubr.bf16.vlgmr.msra.gmra.mrb[8].mxu1 %v2996_v22  ;;  %v2451_v22 = vld [vmem:[#allocation11 + $0x68] sm:$0xff]  }
 0x2b4   : > { %2141 = vmatpush3.bf16.msra.mxu1 %v2442_v18  ;;  %1785 = vmatprep.mubr.bf16.mxu1 %v3211_v57  ;;  %v924_v57 = vrot.slane %v919_v45, %v923_v54 }
 0x2b5   : > { %2142 = vmatprep.subr.bf16.mxu1 %v2443_v19  ;;  %2247 = vmatprep.mubr.msk.bf16.mxu0 %vm2686_vm3, %v2685_v7 }
 0x2b6   : > { %2232 = vmatpush3.bf16.msra.mxu0 %v2457_v35 }
 0x2b7   : > { %2233 = vmatprep.subr.bf16.mxu0 %v2685_v7 }
 0x2b8   : > { %2143 = vmatpush3.bf16.msra.mxu1 %v2444_v20 }
 0x2b9   : > { %2144 = vmatprep.subr.bf16.mxu1 %v2445_v21 }
 0x2ba   : > { %2234 = vmatpush3.bf16.msra.mxu0 %v2458_v36 }
 0x2bb   : > { %2235 = vmatprep.subr.bf16.mxu0 %v2685_v7 }
 0x2bc   : > { %2145 = vmatpush3.bf16.msra.mxu1 %v2446_v23 }
 0x2bd   : > { %2146 = vmatprep.subr.bf16.mxu1 %v2447_v24 }
 0x2be   : > { %2236 = vmatpush3.bf16.msra.mxu0 %v2459_v37 }
 0x2bf   : > { %2237 = vmatprep.subr.bf16.mxu0 %v2685_v7 }
 0x2c0   : > { %2147 = vmatpush3.bf16.msra.mxu1 %v2448_v25 }
 0x2c1   : > { %2148 = vmatprep.subr.bf16.mxu1 %v2449_v26 }
 0x2c2   : > { %2238 = vmatpush3.bf16.msra.mxu0 %v2460_v38 }
 0x2c3   : > { %2239 = vmatprep.subr.bf16.mxu0 %v2685_v7 }
 0x2c4   : > { %2149 = vmatpush3.bf16.msra.mxu1 %v2450_v29 }
 0x2c5   : > { %2150 = vmatprep.subr.bf16.mxu1 %v2451_v22  ;;  %v2501_v22 = vld [vmem:[#allocation2] sm:$0xff] }
 0x2c6   : > { %2240 = vmatpush3.bf16.msra.mxu0 %v2461_v39 }
 0x2c7   : > { %2241 = vmatprep.subr.bf16.mxu0 %v2685_v7 }
 0x2c8   : > { %2151 = vmatpush3.bf16.msra.mxu1 %v2452_v30 }
 0x2c9   : > { %2152 = vmatprep.subr.bf16.mxu1 %v2453_v31 }
 0x2ca   : > { %2242 = vmatpush3.bf16.msra.mxu0 %v2462_v40 }
 0x2cb   : > { %2243 = vmatprep.subr.bf16.mxu0 %v2685_v7 }
 0x2cc   : > { %2153 = vmatpush3.bf16.msra.mxu1 %v2454_v32 }
 0x2cd   : > { %2154 = vmatprep.subr.bf16.mxu1 %v2455_v33  ;;  %v2064_v33 = vld [vmem:[#allocation13] ss:$0 sm:$0xff] }
 0x2ce   : > { %2244 = vmatpush3.bf16.msra.mxu0 %v2463_v41  ;;  %v1840_v41 = vcvt.s32.f32 %v3015_v28 }
 0x2cf   : > { %2245 = vmatprep.subr.bf16.mxu0 %v2685_v7  ;;  %v2251_v7 = vadd.f32 %v1310_v58, %v924_v57 }
 0x2d0   : > { %2155 = vmatpush3.bf16.msra.mxu1 %v2456_v34 }
 0x2d2   : > { %2246 = vmatpush3.bf16.msra.mxu0 %v2464_v42 }
 0x2d3   : > { %1786 = vmatmul.mubr.bf16.vlgmr.msra.gmra.mrb[12].mxu1 %v3209_v56  ;;  %v927_v56 = vsub.s32 1, %v922_v43 }
 0x2d5   : > { %v928_v59 = vrot.slane %v919_v45, %v927_v56  ;;  %v1314_v60 = vrot.slane %v1305_v55, %v927_v56 }
 0x2d7   : > { %v2253_v61 = vadd.f32 %v1314_v60, %v928_v59 }
 0x366   : > { %v2125_v46 = vpop.f32.mrb[4].mxu1 }
 0x367   : > { %v2126_v48 = vpop.f32.mrb[5].mxu1 }
 0x368   : > { %v2127_v49 = vadd.f32 %v2126_v48, %v2125_v46  ;;  %v2128_v50 = vpop.f32.mrb[6].mxu1 }
 0x369   : > { %v2129_v51 = vpop.f32.mrb[7].mxu1 }
 0x36a   : > { %v1268_v53 = vadd.f32 %v2127_v49, %v932_v47 }
 0x386   : > { %v1484_v27 = vpop.f32.mrb[4].mxu0  ;;  %v1525_v62 = vpop.f32.mrb[8].mxu1 }
 0x387   : > { %v2252_v63 = vadd.f32 %v2251_v7, %v1484_v27  ;;  %v1486_v0 = vpop.f32.mrb[5].mxu0  ;;  %v1526_v9 = vadd.f32 %v1525_v62, %v1318_v52  ;;  %v2229_v1 = vpop.f32.mrb[9].mxu1 }
 0x388   : > { %v2254_v2 = vadd.f32 %v2253_v61, %v1486_v0  ;;  %v1488_v3 = vpop.f32.mrb[6].mxu0  ;;  %v1528_v4 = vpop.f32.mrb[10].mxu1 }
 0x389   : > { %v2062_v5 = vmul.f32 -1.442695, %v2252_v63  ;;  %v1489_v6 = vpop.f32.mrb[7].mxu0  ;;  %v2230_v8 = vpop.f32.mrb[11].mxu1 }
 0x38a   : > { %v2063_v10 = vmul.f32 -1.442695, %v2254_v2 }
 0x38b   : > { %2491 = vpow2.f32 %v2062_v5 }
 0x38c   : > { %2493 = vpow2.f32 %v2063_v10 }
 0x395   : > { %v2492_v11 = vpop.eup %2491 }
 0x396   : > { %v1535_v12 = vadd.f32 1.0, %v2492_v11  ;;  %v2494_v13 = vpop.eup %2493 }
 0x397   : > { %v1542_v14 = vadd.f32 1.0, %v2494_v13 }
 0x398   : > { %2495 = vrcp.f32 %v1535_v12 }
 0x399   : > { %2497 = vrcp.f32 %v1542_v14 }
 0x3a2   : > { %v2496_v15 = vpop.eup %2495 }
 0x3a3   : > { %v1545_v16 = vmul.f32 %v2496_v15, %v1526_v9  ;;  %v2498_v24 = vpop.eup %2497 }
 0x3a4   : > { %v1548_v25 = vsub.f32 1.0, %v2498_v24  ;;  %v1550_v30 = vmul.f32 %v2501_v22, %v2498_v24 }
 0x3a5   : > { %v1546_v17 = vadd.f32 %v1545_v16, %v1268_v53 }
 0x3a6   : > { %v2156_v18 = vpop.f32.mrb[12].mxu1 }
 0x3a7   : > { %2499 = vtanh.f32 %v1546_v17  ;;  %v2157_v19 = vpop.f32.mrb[13].mxu1 }
 0x3a8   : > { %v2158_v20 = vadd.f32 %v2157_v19, %v2156_v18  ;;  %v2159_v21 = vpop.f32.mrb[14].mxu1 }
 0x3a9   : > { %v2160_v23 = vpop.f32.mrb[15].mxu1 }
 0x3aa   : > { %v1788_v34 = vadd.f32 %v2158_v20, %v2064_v33 }
 0x3b1   : > { %v2500_v26 = vpop.eup %2499 }
 0x3b2   : > { %v1549_v29 = vmul.f32 %v2500_v26, %v1548_v25 }
 0x3b4   : > { %v1551_v31 = vadd.f32 %v1550_v30, %v1549_v29 }
 0x3b6   : > { %1552 = vst [vmem:[#allocation2] sm:$0xff] %v1551_v31  ;;  %v1601_v32 = vpack.c.bf16 %v1551_v31, %v1551_v31 }
 0x3b8   : > { %2248 = vmatmul.mubr.bf16.vlgmr.msra.gmra.mrb[8].mxu0 %v1601_v32 }
 0x48b   : > { %v1827_v35 = vpop.f32.mrb[8].mxu0 }
 0x48c   : > { %v1828_v36 = vadd.f32 %v1827_v35, %v1788_v34  ;;  %v2249_v37 = vpop.f32.mrb[9].mxu0 }
 0x48d   : > { %v1830_v38 = vpop.f32.mrb[10].mxu0 }
 0x48e   : > { %1833 = vst [vmem:[%s2935_s16] sm:$0xff] %v1828_v36  ;;  %v2250_v39 = vpop.f32.mrb[11].mxu0  ;;  %v1835_v40 = vsel %vm1834_vm6, %v1828_v36, -1e+30 }
 0x48f   : > { %1836 = vmax.xlane.f32.xlu1 %v1835_v40 }
 0x51c   : > { %v1837_v42 = vpop.xlane.xlu1 %1836 }
 0x51d   : > { %vm1838_vm7 = vcmp.eq.f32.partialorder %v1835_v40, %v1837_v42 }
 0x51e   : > { %vm1839_vm8 = vmand %vm1838_vm7, %vm1834_vm6 }
 0x51f   : > { %v1841_v43 = vsel %vm1839_vm8, %v1840_v41, 128.0 }
 0x520   : > { %1842 = vmin.xlane.f32.xlu1 %v1841_v43 }
 0x5ad   : > { %v1843_v44 = vpop.xlane.xlu1 %1842 }
 0x5ae   : > { %v2259_v45 = vtrunc.f32 %v1843_v44 }
 0x5b0   : > { %v2260_v46 = vcvt.f32.s32 %v2259_v45 }
 0x5b2   : > { %1846 = vst.msk [vmem:[#allocation3] sm:$0xff] %vm1845_vm9, %v2260_v46 }
 0x5b3 PF: > { %s3350_s22 = sld [smem:[#allocation18_spill]] }
 0x5b9   : > { %s33_s18 = sadd.s32 1, %s3350_s22  }
 0x5ba   : > { %p30_p2 = scmp.ge.s32.totalorder %s33_s18, 6  }
 0x5bc   :  { %32 = sbr.rel (!%p30_p2) target bundleno = 18 (0x12), region = 131 }
 0x5c3   :  { %1866 = vsyncpa [#allocation7], 1 }
 0x5c4   :  { %1868 = vsyncpa [#allocation7 + $0x1], 1 }
 0x5c5   :  { %1869 = vsyncpa [#allocation9], 1 }
 0x5c6   :  { %1870 = vsyncpa [#allocation12], 1 }

</bundles_post_ra>
